<compile_context>
chip_gen: v6e
topology: v6e:2x2x1
jax: 0.10.0
libtpu: 0.0.40
codegen_flags: <defaults>
</compile_context>

<pallas_src>
import functools

import jax
import jax.numpy as jnp
from jax.experimental import pallas as pl
from jax.experimental.pallas import tpu as pltpu

LANES = 128


def mlp_kernel(x_ref, w1_ref, b1_ref, w2_ref, b2_ref, w3_ref, b3_ref, o_ref):
    """Fused 3-layer MLP for one batch tile.

    x_ref : (tile_b, 13)  in x dtype (bf16 recommended)
    w1    : (13, 32), w2: (32, 32)  stored (in, out)
    w3    : (1, 32)   stored as a row (PyTorch layout of the last Linear)
    o_ref : (tile_b // 128, 128)  lane-dense output slab (f32)
    """
    x = x_ref[...]  # keep native dtype; MXU takes bf16 with f32 accumulate

    # Layer 1: (tile_b, 13) @ (13, 32) + (1, 32) -> ReLU   (MXU, f32 acc)
    h1 = jnp.dot(x, w1_ref[...], preferred_element_type=jnp.float32) + b1_ref[...]
    h1 = jnp.maximum(h1, 0.0)

    # Layer 2: (tile_b, 32) @ (32, 32) + (1, 32) -> ReLU   (MXU, f32 acc)
    h2 = jnp.dot(h1, w2_ref[...], preferred_element_type=jnp.float32) + b2_ref[...]
    h2 = jnp.maximum(h2, 0.0)

    # Layer 3 on VPU/XLU: out[r] = sum_j h2[r, j] * w3[j] + b3.
    # Split the batch rows (sublanes) into (S, 128) planes so the reduction
    # result lands directly in the lane-dense (S, 128) output block.
    S, L = o_ref.shape                    # (tile_b // 128, 128)
    H2 = h2.shape[-1]
    h2r = h2.reshape(S, L, H2)            # major-dim split, layout-preserving
    w3_row = w3_ref[...].reshape(1, 1, H2)
    out = jnp.sum(h2r * w3_row, axis=-1) + b3_ref[...]   # (S, 128) + (1, 1)
    o_ref[...] = out.astype(o_ref.dtype)


def _round_up(v, m):
    return ((v + m - 1) // m) * m


@functools.partial(jax.jit, static_argnames=("max_tile_b",))
def regression_model_hyper2(x, params, *, max_tile_b=8192):
    """Runs the fused MLP.

    x          : (B, 13), any float dtype (bfloat16 recommended).
    params     : (w1 (13,32), b1 (1,32), w2 (32,32), b2 (1,32), w3 (1,32), b3 (1,1))
    max_tile_b : upper bound on the batch tile; multiple of 1024.
                 8192 is safe on every generation with the default VMEM budget;
                 on v6e (128 MiB VMEM, single TC) values up to ~32768 are fine,
                 on v5e/v7x stay <= ~16384.
    Returns (B, 1) float32.
    """
    w1, b1, w2, b2, w3, b3 = params
    B, F = x.shape
    H1 = w1.shape[1]
    H2 = w2.shape[1]
    assert max_tile_b % 1024 == 0 and max_tile_b >= 1024, \
        "max_tile_b must be a multiple of 1024"

    # Batch tile: multiple of 1024 (keeps the (S,128) f32 output block at
    # >= 8 sublanes), as large as allowed, but capped so there are >= 2 grid
    # steps whenever B > 1024 (lets both v7x TensorCores work).
    tile_b = min(max_tile_b, max(1024, _round_up(-(-B // 2), 1024)))
    num_tiles = -(-B // tile_b)           # partial last block handled by Pallas
    S = tile_b // LANES

    # Layer-1 matmul runs in the input dtype (native bf16 MXU path when x is
    # bf16); casting the tiny (13, 32) weight is negligible.
    w1 = w1.astype(x.dtype)

    # VMEM budget: double-buffered lane-padded x tile + double-buffered output
    # slab + f32 temporaries (h1, h2, layer-3 products), with headroom.
    itemsize_x = jnp.dtype(x.dtype).itemsize
    vmem_need = tile_b * (2 * LANES * itemsize_x   # x tile, lane-padded, x2 buffers
                          + 2 * 4                  # output slab, x2 buffers
                          + 8 * H2 * 4)            # f32 temporaries + slack
    vmem_limit = int(min(max(vmem_need + (2 << 20), 32 << 20), 60 << 20))

    full = lambda shape: pl.BlockSpec(shape, lambda i: (0, 0))

    out_slab = pl.pallas_call(
        mlp_kernel,
        out_shape=jax.ShapeDtypeStruct((num_tiles * S, LANES), jnp.float32),
        grid=(num_tiles,),
        in_specs=[
            pl.BlockSpec((tile_b, F), lambda i: (i, 0)),   # x tile (partial tail OK)
            full((F, H1)),                                 # W1  (resident)
            full((1, H1)),                                 # b1
            full((H1, H2)),                                # W2
            full((1, H2)),                                 # b2
            full((1, H2)),                                 # W3 (row)
            full((1, 1)),                                  # b3
        ],
        out_specs=pl.BlockSpec((S, LANES), lambda i: (i, 0)),
        compiler_params=pltpu.CompilerParams(
            dimension_semantics=("parallel",),
            vmem_limit_bytes=vmem_limit),
    )(x, w1, b1, w2, b2, w3, b3)

    # Row-major (num_tiles*S, 128) slab is exactly padded-batch order; tail
    # garbage rows (when B % tile_b != 0) are dropped here.  The slice is a
    # no-op whenever tile_b divides B.
    return out_slab.reshape(num_tiles * tile_b, 1)[:B]


def init_params(key):
    """Deterministic init mimicking nn.Linear (uniform +/- 1/sqrt(fan_in))."""
    def uniform(k, shape, fan_in):
        bound = 1.0 / jnp.sqrt(fan_in)
        return jax.random.uniform(k, shape, jnp.float32, -bound, bound)

    k = jax.random.split(key, 6)
    w1 = uniform(k[0], (13, 32), 13)
    b1 = uniform(k[1], (1, 32), 13)
    w2 = uniform(k[2], (32, 32), 32)
    b2 = uniform(k[3], (1, 32), 32)
    w3 = uniform(k[4], (1, 32), 32)    # last Linear weight, stored as a row
    b3 = uniform(k[5], (1, 1), 32)
    return (w1, b1, w2, b2, w3, b3)


def reference_forward(x, params):
    """Pure-JAX reference matching the kernel's dtype handling."""
    w1, b1, w2, b2, w3, b3 = params
    xf = x.astype(jnp.float32)
    w1f = w1.astype(x.dtype).astype(jnp.float32)
    hi = jax.lax.Precision.HIGHEST
    h = jnp.maximum(jnp.dot(xf, w1f, precision=hi) + b1, 0.0)
    h = jnp.maximum(jnp.dot(h, w2, precision=hi) + b2, 0.0)
    return jnp.dot(h, w3.T, precision=hi) + b3


if __name__ == "__main__":
    key = jax.random.PRNGKey(0)
    kx, kp = jax.random.split(key)

    # B=2500 -> tile_b=2048, 2 grid steps (megacore-friendly), partial last
    # block (no wrapper-side padding) and a tail slice.
    B = 2500
    x = jax.random.normal(kx, (B, 13), dtype=jnp.float32).astype(jnp.bfloat16)
    params = init_params(kp)

    out = regression_model_hyper2(x, params)
    out = jax.block_until_ready(out)

    ref = reference_forward(x, params)
    assert out.shape == (B, 1)
    max_err = float(jnp.max(jnp.abs(out - ref)))
    assert jnp.allclose(out, ref, atol=2e-2, rtol=2e-2), (
        f"mismatch vs reference (max abs err {max_err})")

    print("KERNEL_OK")
</pallas_src>

<mosaic_0001>
module attributes {stable_mosaic.version = 11 : i64} {
  func.func @mlp_kernel(%arg0: i32, %arg1: memref<2048x13xbf16, #tpu.memory_space<vmem>>, %arg2: memref<13x32xbf16, #tpu.memory_space<vmem>>, %arg3: memref<1x32xf32, #tpu.memory_space<vmem>>, %arg4: memref<32x32xf32, #tpu.memory_space<vmem>>, %arg5: memref<1x32xf32, #tpu.memory_space<vmem>>, %arg6: memref<1x32xf32, #tpu.memory_space<vmem>>, %arg7: memref<1x1xf32, #tpu.memory_space<vmem>>, %arg8: memref<16x128xf32, #tpu.memory_space<vmem>>) attributes {dimension_semantics = [#tpu.dimension_semantics<parallel>], iteration_bounds = array<i64: 2>, scalar_prefetch = 0 : i64, scratch_operands = 0 : i64, tpu.core_type = #tpu.core_type<tc>, window_params = [{transform_indices = @transform_0, window_bounds = array<i64: 2048, 13>}, {pipeline_mode = #tpu.pipeline_mode<synchronous>, transform_indices = @transform_1, window_bounds = array<i64: 13, 32>}, {pipeline_mode = #tpu.pipeline_mode<synchronous>, transform_indices = @transform_2, window_bounds = array<i64: 1, 32>}, {pipeline_mode = #tpu.pipeline_mode<synchronous>, transform_indices = @transform_3, window_bounds = array<i64: 32, 32>}, {pipeline_mode = #tpu.pipeline_mode<synchronous>, transform_indices = @transform_4, window_bounds = array<i64: 1, 32>}, {pipeline_mode = #tpu.pipeline_mode<synchronous>, transform_indices = @transform_5, window_bounds = array<i64: 1, 32>}, {pipeline_mode = #tpu.pipeline_mode<synchronous>, transform_indices = @transform_6, window_bounds = array<i64: 1, 1>}, {transform_indices = @transform_7, window_bounds = array<i64: 16, 128>}]} {
    %c0 = arith.constant 0 : index
    %c0_0 = arith.constant 0 : index
    %0 = vector.load %arg1[%c0, %c0_0] : memref<2048x13xbf16, #tpu.memory_space<vmem>>, vector<2048x13xbf16>
    %c0_1 = arith.constant 0 : index
    %c0_2 = arith.constant 0 : index
    %1 = vector.load %arg2[%c0_1, %c0_2] : memref<13x32xbf16, #tpu.memory_space<vmem>>, vector<13x32xbf16>
    %cst = arith.constant dense<0.000000e+00> : vector<2048x32xf32>
    %2 = tpu.matmul %0, %1, %cst {dimension_numbers = #tpu.dot_dimension_numbers<[1], [0], [0], [1], [0, 0, 1, 1], [], []>} : vector<2048x13xbf16>, vector<13x32xbf16>, vector<2048x32xf32> -> vector<2048x32xf32>
    %c0_3 = arith.constant 0 : index
    %c0_4 = arith.constant 0 : index
    %3 = vector.load %arg3[%c0_3, %c0_4] : memref<1x32xf32, #tpu.memory_space<vmem>>, vector<1x32xf32>
    %4 = vector.broadcast %3 : vector<1x32xf32> to vector<2048x32xf32>
    %5 = arith.addf %2, %4 : vector<2048x32xf32>
    %cst_5 = arith.constant 0.000000e+00 : f32
    %6 = vector.broadcast %cst_5 : f32 to vector<2048x32xf32>
    %7 = arith.maximumf %5, %6 : vector<2048x32xf32>
    %c0_6 = arith.constant 0 : index
    %c0_7 = arith.constant 0 : index
    %8 = vector.load %arg4[%c0_6, %c0_7] : memref<32x32xf32, #tpu.memory_space<vmem>>, vector<32x32xf32>
    %cst_8 = arith.constant dense<0.000000e+00> : vector<2048x32xf32>
    %9 = tpu.matmul %7, %8, %cst_8 {dimension_numbers = #tpu.dot_dimension_numbers<[1], [0], [0], [1], [0, 0, 1, 1], [], []>} : vector<2048x32xf32>, vector<32x32xf32>, vector<2048x32xf32> -> vector<2048x32xf32>
    %c0_9 = arith.constant 0 : index
    %c0_10 = arith.constant 0 : index
    %10 = vector.load %arg5[%c0_9, %c0_10] : memref<1x32xf32, #tpu.memory_space<vmem>>, vector<1x32xf32>
    %11 = vector.broadcast %10 : vector<1x32xf32> to vector<2048x32xf32>
    %12 = arith.addf %9, %11 : vector<2048x32xf32>
    %cst_11 = arith.constant 0.000000e+00 : f32
    %13 = vector.broadcast %cst_11 : f32 to vector<2048x32xf32>
    %14 = arith.maximumf %12, %13 : vector<2048x32xf32>
    %15 = vector.shape_cast %14 : vector<2048x32xf32> to vector<16x128x32xf32>
    %c0_12 = arith.constant 0 : index
    %c0_13 = arith.constant 0 : index
    %16 = vector.load %arg6[%c0_12, %c0_13] : memref<1x32xf32, #tpu.memory_space<vmem>>, vector<1x32xf32>
    %17 = vector.shape_cast %16 : vector<1x32xf32> to vector<1x1x32xf32>
    %18 = vector.broadcast %17 : vector<1x1x32xf32> to vector<16x128x32xf32>
    %19 = arith.mulf %15, %18 : vector<16x128x32xf32>
    %cst_14 = arith.constant dense<0.000000e+00> : vector<16x128xf32>
    %20 = vector.multi_reduction <add>, %19, %cst_14 [2] : vector<16x128x32xf32> to vector<16x128xf32>
    %c0_15 = arith.constant 0 : index
    %c0_16 = arith.constant 0 : index
    %21 = vector.load %arg7[%c0_15, %c0_16] : memref<1x1xf32, #tpu.memory_space<vmem>>, vector<1x1xf32>
    %22 = vector.broadcast %21 : vector<1x1xf32> to vector<16x128xf32>
    %23 = arith.addf %20, %22 : vector<16x128xf32>
    %c0_17 = arith.constant 0 : index
    %c0_18 = arith.constant 0 : index
    %24 = vector.load %arg8[%c0_17, %c0_18] : memref<16x128xf32, #tpu.memory_space<vmem>>, vector<16x128xf32>
    tpu.vector_store %arg8[%c0_17, %c0_18], %23 {strides = array<i32>} : memref<16x128xf32, #tpu.memory_space<vmem>>, vector<16x128xf32>,
    return
  }
  func.func @transform_0(%arg0: i32) -> (i32, i32) {
    %c0_i32 = arith.constant 0 : i32
    %c0_i32_0 = arith.constant 0 : i32
    return %arg0, %c0_i32 : i32, i32
  }
  func.func @transform_1(%arg0: i32) -> (i32, i32) {
    %c0_i32 = arith.constant 0 : i32
    %c0_i32_0 = arith.constant 0 : i32
    %c0_i32_1 = arith.constant 0 : i32
    return %c0_i32, %c0_i32_0 : i32, i32
  }
  func.func @transform_2(%arg0: i32) -> (i32, i32) {
    %c0_i32 = arith.constant 0 : i32
    %c0_i32_0 = arith.constant 0 : i32
    %c0_i32_1 = arith.constant 0 : i32
    return %c0_i32, %c0_i32_0 : i32, i32
  }
  func.func @transform_3(%arg0: i32) -> (i32, i32) {
    %c0_i32 = arith.constant 0 : i32
    %c0_i32_0 = arith.constant 0 : i32
    %c0_i32_1 = arith.constant 0 : i32
    return %c0_i32, %c0_i32_0 : i32, i32
  }
  func.func @transform_4(%arg0: i32) -> (i32, i32) {
    %c0_i32 = arith.constant 0 : i32
    %c0_i32_0 = arith.constant 0 : i32
    %c0_i32_1 = arith.constant 0 : i32
    return %c0_i32, %c0_i32_0 : i32, i32
  }
  func.func @transform_5(%arg0: i32) -> (i32, i32) {
    %c0_i32 = arith.constant 0 : i32
    %c0_i32_0 = arith.constant 0 : i32
    %c0_i32_1 = arith.constant 0 : i32
    return %c0_i32, %c0_i32_0 : i32, i32
  }
  func.func @transform_6(%arg0: i32) -> (i32, i32) {
    %c0_i32 = arith.constant 0 : i32
    %c0_i32_0 = arith.constant 0 : i32
    %c0_i32_1 = arith.constant 0 : i32
    return %c0_i32, %c0_i32_0 : i32, i32
  }
  func.func @transform_7(%arg0: i32) -> (i32, i32) {
    %c0_i32 = arith.constant 0 : i32
    %c0_i32_0 = arith.constant 0 : i32
    return %arg0, %c0_i32 : i32, i32
  }
}

</mosaic_0001>

<bundles_post_ra>
// kernel: regression_model_hyper2.1
= control target key start
LH: loop header
LB: loop body
LE: loop exit
PB: predicated region body
PF: predicated region fallthrough
CT: control target
= control target key end

     0   :  { %s10006_s26 = smov 0   ;;  %s13303_s0 = inlined_call_operand.vmem [shape: bf16[2500,13], index: 0, kind: input, shape index: {}]   ;;  %s13304_s1 = inlined_call_operand.vmem [shape: bf16[13,32], index: 1, kind: input, shape index: {}]   ;;  %s13305_s2 = inlined_call_operand.vmem [shape: f32[1,32], index: 2, kind: input, shape index: {}]   ;;  %s13306_s3 = inlined_call_operand.vmem [shape: f32[32,32], index: 3, kind: input, shape index: {}]   ;;  %s13307_s4 = inlined_call_operand.vmem [shape: f32[1,32], index: 4, kind: input, shape index: {}]   ;;  %s13308_s5 = inlined_call_operand.vmem [shape: f32[1,32], index: 5, kind: input, shape index: {}]   ;;  %s13309_s6 = inlined_call_operand.<no memory space> [shape: f32[1,1], index: 6, kind: input, shape index: {}]   ;;  %s13310_s7 = inlined_call_operand.vmem [shape: f32[32,128], index: 7, kind: output, shape index: {}]  }
   0x1   :  { %v12_v0 = vstv %s13309_s6 }
   0x2   :  { %13 = vst [vmem:[#allocation2] sm:$0x1] %v12_v0 }
   0x3 LB: > { %s8231_s27 = sadd.s32 4294967295, %s9959_s26   ;;  %p8235_p0 = scmp.ge.s32.totalorder %s9959_s26, 1  ;;  %s9959_s26 = sphi %s10006_s26, %s19_s26  }
   0x4   : > { %p248_p1 = scmp.lt.s32.totalorder %s9959_s26, 3 }
   0x6   : > { %p249_p2 = pnand %p8235_p0, %p248_p1 }
   0x8   : > { %252 = sbr.rel (%p249_p2) target bundleno = 1124 (0x464), region = 48 }
   0xd   : > { %v9810_v1 = vld [vmem:[%s13304_s1] sm:$0x7f]   ;;  %vm1600_vm0 = vcmask 1045504   ;;  %vm1601_vm1 = vcmask 1046528   ;;  %s8236_s6 = sshll.u32 %s8231_s27, 8  ;;  %v9961_v2 = vmov 65535  }
   0xe   : > { %v1602_v3 = vsel %vm1600_vm0, 4294967295, %v9961_v2  ;;  %p289_p3 = scmp.lt.s32.totalorder %s8236_s6, 312  ;;  %vm1215_vm2 = vcmask 105472   ;;  %v2923_v26 = vld [vmem:[%s13306_s3 + $0x18] sm:$0xff]  ;;  %v2922_v27 = vld [vmem:[%s13306_s3 + $0x10] sm:$0xff]  ;;  %v2921_v29 = vld [vmem:[%s13306_s3 + $0x8] sm:$0xff] }
   0xf   : > { %v1603_v4 = vsel %vm1601_vm1, %v1602_v3, 0  ;;  %9406 = vmatprep.subr.mxu1 %v2923_v26  ;;  %v2920_v30 = vld [vmem:[%s13306_s3] sm:$0xff]  ;;  %vm2931_vm3 = vcmask 261120   ;;  %vm6865_vm4 = vcmask 130112   ;;  %vm6872_vm5 = vcmask 195712   ;;  %s12620_s29 = sshll.u32 %s8231_s27, 1 }
  0x10   : > { %v1605_v5 = vand.u32 %v9810_v1, %v1603_v4  ;;  %s13450_s6 = smov (!%p289_p3, %s8236_s6), 312  ;;  %9407 = vmatpush3.msra.mxu1 %v2923_v26  ;;  %v10141_v62 = vld [vmem:[%s13305_s2] ss:$0 sm:$0xff]  ;;  %vm6879_vm6 = vcmask 261312   ;;  %vm6886_vm7 = vcmask 326912   ;;  %vm6893_vm8 = vcmask 392512  }
  0x11   : > { %s8237_s30 = sshll.u32 %s13450_s6, 2  ;;  %9408 = vmatprep.subr.mxu1 %v2922_v27  ;;  %vm6900_vm9 = vcmask 458112   ;;  %vm6907_vm10 = vcmask 523712   ;;  %vm6914_vm11 = vcmask 589312   ;;  %vm6921_vm12 = vcmask 654912   ;;  %p299_p4 = scmp.lt.s32.totalorder %s12620_s29, 3 }
  0x12   : > { %9148 = vmatprep.subr.bf16.mxu0 %v1605_v5  ;;  %s10022_s10 = scalar_lea.vmem %s13303_s0, %s8237_s30  ;;  %9409 = vmatpush3.msra.mxu1 %v2922_v27  ;;  %vm6928_vm13 = vcmask 720512   ;;  %vm6935_vm14 = vcmask 786112   ;;  %vm13343_vm15 = vcmask 851712   ;;  %vm13339_vm0 = vcmask 917312  }
  0x13   : > { %9149 = vmatpush3.bf16.msra.mxu0 %v1605_v5  ;;  %v9811_v6 = vld [vmem:[%s10022_s10] sm:$0xff]   ;;  %v9812_v7 = vld [vmem:[%s10022_s10 + $0x8] sm:$0xff]   ;;  %v9813_v8 = vld [vmem:[%s10022_s10 + $0x10] sm:$0xff]   ;;  %9410 = vmatprep.subr.mxu1 %v2921_v29  ;;  %vm13333_vm1 = vcmask 982912   ;;  %s13452_s29 = smov (!%p299_p4, %s12620_s29), 3 }
  0x14   : > { %9150 = vmatprep.mubr.msk.bf16.mxu0 %vm1215_vm2, %v9811_v6  ;;  %v9814_v9 = vld [vmem:[%s10022_s10 + $0x18] sm:$0xff]   ;;  %v9815_v10 = vld [vmem:[%s10022_s10 + $0x20] sm:$0xff]   ;;  %v9816_v11 = vld [vmem:[%s10022_s10 + $0x28] sm:$0xff]   ;;  %9411 = vmatpush3.msra.mxu1 %v2921_v29  ;;  %s8239_s27 = sshll.u32 %s13452_s29, 3 }
  0x15   : > { %v9817_v12 = vld [vmem:[%s10022_s10 + $0x30] sm:$0xff]   ;;  %v9818_v13 = vld [vmem:[%s10022_s10 + $0x38] sm:$0xff]   ;;  %v9819_v14 = vld [vmem:[%s10022_s10 + $0x40] sm:$0xff]   ;;  %9412 = vmatprep.subr.mxu1 %v2920_v30  ;;  %s12686_s8 = scalar_lea.vmem %s13310_s7, %s8239_s27 }
  0x16   : > { %9151 = vmatmul.mubr.msk.bf16.vlgmr.msra.gmra.mxu0 %vm1215_vm2, %v9812_v7  ;;  %v9820_v15 = vld [vmem:[%s10022_s10 + $0x48] sm:$0xff]   ;;  %v9821_v16 = vld [vmem:[%s10022_s10 + $0x50] sm:$0xff]   ;;  %v9822_v17 = vld [vmem:[%s10022_s10 + $0x58] sm:$0xff]   ;;  %9413 = vmatpush3.msra.mxu1 %v2920_v30 }
  0x17   : > { %9154 = vmatprep.mubr.msk.bf16.mxu0 %vm1215_vm2, %v9813_v8  ;;  %v9823_v18 = vld [vmem:[%s10022_s10 + $0x60] sm:$0xff]   ;;  %v9824_v19 = vld [vmem:[%s10022_s10 + $0x68] sm:$0xff]   ;;  %v9825_v20 = vld [vmem:[%s10022_s10 + $0x70] sm:$0xff]  }
  0x18   : > { %v9826_v21 = vld [vmem:[%s10022_s10 + $0x78] sm:$0xff]   ;;  %v9827_v22 = vld [vmem:[%s10022_s10 + $0x80] sm:$0xff]   ;;  %v9828_v23 = vld [vmem:[%s10022_s10 + $0x88] sm:$0xff]  }
  0x19   : > { %v9829_v24 = vld [vmem:[%s10022_s10 + $0x90] sm:$0xff]   ;;  %v9830_v25 = vld [vmem:[%s10022_s10 + $0x98] sm:$0xff]   ;;  %v9831_v28 = vld [vmem:[%s10022_s10 + $0xa0] sm:$0xff]  }
  0x1a   : > { %v9832_v31 = vld [vmem:[%s10022_s10 + $0xa8] sm:$0xff]   ;;  %v9833_v32 = vld [vmem:[%s10022_s10 + $0xb0] sm:$0xff]   ;;  %v9834_v33 = vld [vmem:[%s10022_s10 + $0xb8] sm:$0xff]  }
  0x1b   : > { %v9835_v34 = vld [vmem:[%s10022_s10 + $0xc0] sm:$0xff]   ;;  %v9836_v35 = vld [vmem:[%s10022_s10 + $0xc8] sm:$0xff]   ;;  %v9837_v36 = vld [vmem:[%s10022_s10 + $0xd0] sm:$0xff]  }
  0x1c   : > { %v9838_v37 = vld [vmem:[%s10022_s10 + $0xd8] sm:$0xff]   ;;  %v9839_v38 = vld [vmem:[%s10022_s10 + $0xe0] sm:$0xff]   ;;  %v9840_v39 = vld [vmem:[%s10022_s10 + $0xe8] sm:$0xff]  }
  0x1d   : > { %v9841_v40 = vld [vmem:[%s10022_s10 + $0xf0] sm:$0xff]   ;;  %v9842_v41 = vld [vmem:[%s10022_s10 + $0xf8] sm:$0xff]   ;;  %v9843_v42 = vld [vmem:[%s10022_s10 + $0x100] sm:$0xff]  }
  0x1e   : > { %9155 = vmatmul.mubr.msk.bf16.gmra.mxu0 %vm1215_vm2, %v9814_v9  ;;  %v9844_v43 = vld [vmem:[%s10022_s10 + $0x108] sm:$0xff]   ;;  %v9845_v44 = vld [vmem:[%s10022_s10 + $0x110] sm:$0xff]   ;;  %v9846_v45 = vld [vmem:[%s10022_s10 + $0x118] sm:$0xff]  }
  0x1f   : > { %9158 = vmatprep.mubr.msk.bf16.mxu0 %vm1215_vm2, %v9815_v10  ;;  %v9847_v46 = vld [vmem:[%s10022_s10 + $0x120] sm:$0xff]   ;;  %v9848_v47 = vld [vmem:[%s10022_s10 + $0x128] sm:$0xff]   ;;  %v9849_v48 = vld [vmem:[%s10022_s10 + $0x130] sm:$0xff]  }
  0x20   : > { %v9850_v49 = vld [vmem:[%s10022_s10 + $0x138] sm:$0xff]   ;;  %v9851_v50 = vld [vmem:[%s10022_s10 + $0x140] sm:$0xff]   ;;  %v9852_v51 = vld [vmem:[%s10022_s10 + $0x148] sm:$0xff]  }
  0x21   : > { %v9853_v52 = vld [vmem:[%s10022_s10 + $0x150] sm:$0xff]   ;;  %v9854_v53 = vld [vmem:[%s10022_s10 + $0x158] sm:$0xff]   ;;  %v9855_v54 = vld [vmem:[%s10022_s10 + $0x160] sm:$0xff]  }
  0x22   : > { %v9856_v55 = vld [vmem:[%s10022_s10 + $0x168] sm:$0xff]   ;;  %v9857_v56 = vld [vmem:[%s10022_s10 + $0x170] sm:$0xff]   ;;  %v9858_v57 = vld [vmem:[%s10022_s10 + $0x178] sm:$0xff]  }
  0x23   : > { %v9859_v58 = vld [vmem:[%s10022_s10 + $0x180] sm:$0xff]   ;;  %v9860_v59 = vld [vmem:[%s10022_s10 + $0x188] sm:$0xff]   ;;  %v9861_v60 = vld [vmem:[%s10022_s10 + $0x190] sm:$0xff]  }
  0x24   : > { %v9862_v2 = vld [vmem:[%s10022_s10 + $0x198] sm:$0xff]   ;;  %v9863_v4 = vld [vmem:[%s10022_s10 + $0x1a0] sm:$0xff]  }
  0x25   : > { %v9866_v29 = vld [vmem:[%s10022_s10 + $0x1b8] sm:$0xff]  }
  0x26   : > { %9159 = vmatmul.mubr.msk.bf16.gmra.mxu0 %vm1215_vm2, %v9816_v11 }
  0x27   : > { %9162 = vmatprep.mubr.msk.bf16.mxu0 %vm1215_vm2, %v9817_v12 }
  0x2e   : > { %9163 = vmatmul.mubr.msk.bf16.gmra.mxu0 %vm1215_vm2, %v9818_v13 }
  0x2f   : > { %9166 = vmatprep.mubr.msk.bf16.mxu0 %vm1215_vm2, %v9819_v14 }
  0x36   : > { %9167 = vmatmul.mubr.msk.bf16.gmra.mxu0 %vm1215_vm2, %v9820_v15  ;;  %v9864_v15 = vld [vmem:[%s10022_s10 + $0x1a8] sm:$0xff]  }
  0x37   : > { %9170 = vmatprep.mubr.msk.bf16.mxu0 %vm1215_vm2, %v9821_v16 }
  0x3e   : > { %9171 = vmatmul.mubr.msk.bf16.gmra.mxu0 %vm1215_vm2, %v9822_v17 }
  0x3f   : > { %9174 = vmatprep.mubr.msk.bf16.mxu0 %vm1215_vm2, %v9823_v18  ;;  %v9865_v18 = vld [vmem:[%s10022_s10 + $0x1b0] sm:$0xff]  }
  0x46   : > { %9175 = vmatmul.mubr.msk.bf16.gmra.mxu0 %vm1215_vm2, %v9824_v19 }
  0x47   : > { %9178 = vmatprep.mubr.msk.bf16.mxu0 %vm1215_vm2, %v9825_v20 }
  0x4e   : > { %9179 = vmatmul.mubr.msk.bf16.gmra.mxu0 %vm1215_vm2, %v9826_v21 }
  0x4f   : > { %9182 = vmatprep.mubr.msk.bf16.mxu0 %vm1215_vm2, %v9827_v22 }
  0x56   : > { %9183 = vmatmul.mubr.msk.bf16.gmra.mxu0 %vm1215_vm2, %v9828_v23 }
  0x57   : > { %9186 = vmatprep.mubr.msk.bf16.mxu0 %vm1215_vm2, %v9829_v24 }
  0x5e   : > { %9187 = vmatmul.mubr.msk.bf16.gmra.mxu0 %vm1215_vm2, %v9830_v25 }
  0x5f   : > { %9190 = vmatprep.mubr.msk.bf16.mxu0 %vm1215_vm2, %v9831_v28 }
  0x66   : > { %9191 = vmatmul.mubr.msk.bf16.gmra.mxu0 %vm1215_vm2, %v9832_v31 }
  0x67   : > { %9194 = vmatprep.mubr.msk.bf16.mxu0 %vm1215_vm2, %v9833_v32  ;;  %v9867_v32 = vld [vmem:[%s10022_s10 + $0x1c0] sm:$0xff]  }
  0x6e   : > { %9195 = vmatmul.mubr.msk.bf16.gmra.mxu0 %vm1215_vm2, %v9834_v33 }
  0x6f   : > { %9198 = vmatprep.mubr.msk.bf16.mxu0 %vm1215_vm2, %v9835_v34 }
  0x76   : > { %9199 = vmatmul.mubr.msk.bf16.gmra.mxu0 %vm1215_vm2, %v9836_v35 }
  0x77   : > { %9202 = vmatprep.mubr.msk.bf16.mxu0 %vm1215_vm2, %v9837_v36 }
  0x7e   : > { %9203 = vmatmul.mubr.msk.bf16.gmra.mxu0 %vm1215_vm2, %v9838_v37 }
  0x7f   : > { %9206 = vmatprep.mubr.msk.bf16.mxu0 %vm1215_vm2, %v9839_v38 }
  0x86   : > { %9207 = vmatmul.mubr.msk.bf16.gmra.mxu0 %vm1215_vm2, %v9840_v39 }
  0x87   : > { %9210 = vmatprep.mubr.msk.bf16.mxu0 %vm1215_vm2, %v9841_v40 }
  0x8e   : > { %9211 = vmatmul.mubr.msk.bf16.gmra.mxu0 %vm1215_vm2, %v9842_v41 }
  0x8f   : > { %9214 = vmatprep.mubr.msk.bf16.mxu0 %vm1215_vm2, %v9843_v42 }
  0x96   : > { %9215 = vmatmul.mubr.msk.bf16.gmra.mxu0 %vm1215_vm2, %v9844_v43  ;;  %v9868_v43 = vld [vmem:[%s10022_s10 + $0x1c8] sm:$0xff]  }
  0x97   : > { %9218 = vmatprep.mubr.msk.bf16.mxu0 %vm1215_vm2, %v9845_v44 }
  0x9e   : > { %9219 = vmatmul.mubr.msk.bf16.gmra.mxu0 %vm1215_vm2, %v9846_v45 }
  0x9f   : > { %9222 = vmatprep.mubr.msk.bf16.mxu0 %vm1215_vm2, %v9847_v46  ;;  %v9869_v46 = vld [vmem:[%s10022_s10 + $0x1d0] sm:$0xff]  }
  0xa6   : > { %9223 = vmatmul.mubr.msk.bf16.gmra.mxu0 %vm1215_vm2, %v9848_v47 }
  0xa7   : > { %9226 = vmatprep.mubr.msk.bf16.mxu0 %vm1215_vm2, %v9849_v48 }
  0xae   : > { %9227 = vmatmul.mubr.msk.bf16.gmra.mxu0 %vm1215_vm2, %v9850_v49 }
  0xaf   : > { %9230 = vmatprep.mubr.msk.bf16.mxu0 %vm1215_vm2, %v9851_v50 }
  0xb6   : > { %9231 = vmatmul.mubr.msk.bf16.gmra.mxu0 %vm1215_vm2, %v9852_v51 }
  0xb7   : > { %9234 = vmatprep.mubr.msk.bf16.mxu0 %vm1215_vm2, %v9853_v52 }
  0xbe   : > { %9235 = vmatmul.mubr.msk.bf16.gmra.mxu0 %vm1215_vm2, %v9854_v53 }
  0xbf   : > { %9238 = vmatprep.mubr.msk.bf16.mxu0 %vm1215_vm2, %v9855_v54 }
  0xc6   : > { %9239 = vmatmul.mubr.msk.bf16.gmra.mxu0 %vm1215_vm2, %v9856_v55 }
  0xc7   : > { %9242 = vmatprep.mubr.msk.bf16.mxu0 %vm1215_vm2, %v9857_v56 }
  0xce   : > { %9243 = vmatmul.mubr.msk.bf16.gmra.mxu0 %vm1215_vm2, %v9858_v57  ;;  %v9870_v57 = vld [vmem:[%s10022_s10 + $0x1d8] sm:$0xff]  }
  0xcf   : > { %9246 = vmatprep.mubr.msk.bf16.mxu0 %vm1215_vm2, %v9859_v58 }
  0xd6   : > { %v9152_v61 = vpop.f32.mrf.mxu0  ;;  %9247 = vmatmul.mubr.msk.bf16.gmra.mxu0 %vm1215_vm2, %v9860_v59 }
  0xd7   : > { %9250 = vmatprep.mubr.msk.bf16.mxu0 %vm1215_vm2, %v9861_v60  ;;  %v1650_v5 = vadd.f32 %v9152_v61, %v10141_v62  ;;  %v9871_v60 = vld [vmem:[%s10022_s10 + $0x1e0] sm:$0xff]  }
  0xd8   : > { %v1641_v63 = vpop.f32.mrf.mxu0 }
  0xd9   : > { %v1642_v0 = vadd.f32 %v10141_v62, %v1641_v63  ;;  %v2666_v11 = vmax.f32 %v1650_v5, 0.0 }
  0xda   : > { %v9153_v1 = vpop.f32.mrf.mxu0 }
  0xdb   : > { %v2664_v3 = vmax.f32 %v1642_v0, 0.0  ;;  %v1653_v9 = vadd.f32 %v9153_v1, %v10141_v62 }
  0xdc   : > { %v1644_v6 = vpop.f32.mrf.mxu0 }
  0xdd   : > { %v1645_v7 = vadd.f32 %v10141_v62, %v1644_v6  ;;  %9414 = vmatprep.mubr.msk.f32.mxu1 %vm2931_vm3, %v2664_v3  ;;  %v2667_v16 = vmax.f32 %v1653_v9, 0.0 }
  0xde   : > { %v9156_v8 = vpop.f32.mrf.mxu0  ;;  %9251 = vmatmul.mubr.msk.bf16.gmra.mxu0 %vm1215_vm2, %v9862_v2 }
  0xdf   : > { %v2665_v10 = vmax.f32 %v1645_v7, 0.0  ;;  %9254 = vmatprep.mubr.msk.bf16.mxu0 %vm1215_vm2, %v9863_v4  ;;  %v1666_v19 = vadd.f32 %v9156_v8, %v10141_v62  ;;  %v9872_v8 = vld [vmem:[%s10022_s10 + $0x1e8] sm:$0xff]  }
  0xe0   : > { %v1657_v12 = vpop.f32.mrf.mxu0 }
  0xe1   : > { %v1658_v13 = vadd.f32 %v10141_v62, %v1657_v12  ;;  %9415 = vmatmul.mubr.msk.f32.vlgmr.msra.gmra.mxu1 %vm2931_vm3, %v2665_v10  ;;  %v2670_v25 = vmax.f32 %v1666_v19, 0.0 }
  0xe2   : > { %v9157_v14 = vpop.f32.mrf.mxu0  ;;  %9417 = vmatprep.mubr.msk.f32.mxu1 %vm2931_vm3, %v2666_v11  ;;  %v9873_v11 = vld [vmem:[%s10022_s10 + $0x1f0] sm:$0xff]  }
  0xe3   : > { %v2668_v17 = vmax.f32 %v1658_v13, 0.0  ;;  %v1669_v23 = vadd.f32 %v9157_v14, %v10141_v62 }
  0xe4   : > { %v1660_v20 = vpop.f32.mrf.mxu0 }
  0xe5   : > { %v1661_v21 = vadd.f32 %v10141_v62, %v1660_v20  ;;  %9418 = vmatmul.mubr.msk.f32.gmra.mxu1 %vm2931_vm3, %v2667_v16  ;;  %v2671_v30 = vmax.f32 %v1669_v23, 0.0  ;;  %v9962_v20 = vmov 0  }
  0xe6   : > { %v9160_v22 = vpop.f32.mrf.mxu0  ;;  %9255 = vmatmul.mubr.msk.bf16.gmra.mxu0 %vm1215_vm2, %v9864_v15  ;;  %9420 = vmatprep.mubr.msk.f32.mxu1 %vm2931_vm3, %v2668_v17 }
  0xe7   : > { %v2669_v24 = vmax.f32 %v1661_v21, 0.0  ;;  %9258 = vmatprep.mubr.msk.bf16.mxu0 %vm1215_vm2, %v9865_v18  ;;  %v1682_v33 = vadd.f32 %v9160_v22, %v10141_v62  ;;  %9808 = vset.pattern.permute.xlu1 %v9962_v20  ;;  %v8756_v21 = vld [vmem:[#allocation2] ss:$0 sm:$0xff] }
  0xe8   : > { %v1673_v26 = vpop.f32.mrf.mxu0  ;;  %9809 = vset.pattern.permute.xlu0 %v9962_v20  ;;  %6339 = vperm.xlu1 %9808, %v8756_v21   ;;  %v9883_v20 = vld [vmem:[%s10022_s10 + $0x240] sm:$0xff]  }
  0xe9   : > { %v1674_v27 = vadd.f32 %v10141_v62, %v1673_v26  ;;  %9421 = vmatmul.mubr.msk.f32.gmra.mxu1 %vm2931_vm3, %v2669_v24  ;;  %v2674_v39 = vmax.f32 %v1682_v33, 0.0  ;;  %v9874_v24 = vld [vmem:[%s10022_s10 + $0x1f8] sm:$0xff]  }
  0xea   : > { %v9161_v28 = vpop.f32.mrf.mxu0  ;;  %9423 = vmatprep.mubr.msk.f32.mxu1 %vm2931_vm3, %v2670_v25 }
  0xeb   : > { %v2672_v31 = vmax.f32 %v1674_v27, 0.0  ;;  %v1685_v37 = vadd.f32 %v9161_v28, %v10141_v62  ;;  %v9875_v27 = vld [vmem:[%s10022_s10 + $0x200] sm:$0xff]  }
  0xec   : > { %v1676_v34 = vpop.f32.mrf.mxu0 }
  0xed   : > { %v1677_v35 = vadd.f32 %v10141_v62, %v1676_v34  ;;  %9424 = vmatmul.mubr.msk.f32.gmra.mxu1 %vm2931_vm3, %v2671_v30  ;;  %v2675_v44 = vmax.f32 %v1685_v37, 0.0 }
  0xee   : > { %v9164_v36 = vpop.f32.mrf.mxu0  ;;  %9259 = vmatmul.mubr.msk.bf16.gmra.mxu0 %vm1215_vm2, %v9866_v29  ;;  %9426 = vmatprep.mubr.msk.f32.mxu1 %vm2931_vm3, %v2672_v31 }
  0xef   : > { %v2673_v38 = vmax.f32 %v1677_v35, 0.0  ;;  %9262 = vmatprep.mubr.msk.bf16.mxu0 %vm1215_vm2, %v9867_v32  ;;  %v1698_v47 = vadd.f32 %v9164_v36, %v10141_v62 }
  0xf0   : > { %v1689_v40 = vpop.f32.mrf.mxu0 }
  0xf1   : > { %v1690_v41 = vadd.f32 %v10141_v62, %v1689_v40  ;;  %9427 = vmatmul.mubr.msk.f32.gmra.mxu1 %vm2931_vm3, %v2673_v38  ;;  %v2678_v53 = vmax.f32 %v1698_v47, 0.0  ;;  %v9876_v38 = vld [vmem:[%s10022_s10 + $0x208] sm:$0xff]  }
  0xf2   : > { %v9165_v42 = vpop.f32.mrf.mxu0  ;;  %9429 = vmatprep.mubr.msk.f32.mxu1 %vm2931_vm3, %v2674_v39 }
  0xf3   : > { %v2676_v45 = vmax.f32 %v1690_v41, 0.0  ;;  %v1701_v51 = vadd.f32 %v9165_v42, %v10141_v62  ;;  %v9877_v41 = vld [vmem:[%s10022_s10 + $0x210] sm:$0xff]  }
  0xf4   : > { %v1692_v48 = vpop.f32.mrf.mxu0 }
  0xf5   : > { %v1693_v49 = vadd.f32 %v10141_v62, %v1692_v48  ;;  %9430 = vmatmul.mubr.msk.f32.gmra.mxu1 %vm2931_vm3, %v2675_v44  ;;  %v2679_v58 = vmax.f32 %v1701_v51, 0.0 }
  0xf6   : > { %v9168_v50 = vpop.f32.mrf.mxu0  ;;  %9263 = vmatmul.mubr.msk.bf16.gmra.mxu0 %vm1215_vm2, %v9868_v43  ;;  %9432 = vmatprep.mubr.msk.f32.mxu1 %vm2931_vm3, %v2676_v45 }
  0xf7   : > { %v2677_v52 = vmax.f32 %v1693_v49, 0.0  ;;  %9266 = vmatprep.mubr.msk.bf16.mxu0 %vm1215_vm2, %v9869_v46  ;;  %v1714_v61 = vadd.f32 %v9168_v50, %v10141_v62 }
  0xf8   : > { %v1705_v54 = vpop.f32.mrf.mxu0 }
  0xf9   : > { %v1706_v55 = vadd.f32 %v10141_v62, %v1705_v54  ;;  %9433 = vmatmul.mubr.msk.f32.gmra.mxu1 %vm2931_vm3, %v2677_v52  ;;  %v2682_v4 = vmax.f32 %v1714_v61, 0.0  ;;  %v9878_v52 = vld [vmem:[%s10022_s10 + $0x218] sm:$0xff]  }
  0xfa   : > { %v9169_v56 = vpop.f32.mrf.mxu0  ;;  %9435 = vmatprep.mubr.msk.f32.mxu1 %vm2931_vm3, %v2678_v53 }
  0xfb   : > { %v2680_v59 = vmax.f32 %v1706_v55, 0.0  ;;  %v1717_v2 = vadd.f32 %v9169_v56, %v10141_v62  ;;  %v9879_v55 = vld [vmem:[%s10022_s10 + $0x220] sm:$0xff]  }
  0xfc   : > { %v1708_v63 = vpop.f32.mrf.mxu0 }
  0xfd   : > { %v1709_v0 = vadd.f32 %v10141_v62, %v1708_v63  ;;  %9436 = vmatmul.mubr.msk.f32.gmra.mxu1 %vm2931_vm3, %v2679_v58  ;;  %v2683_v9 = vmax.f32 %v1717_v2, 0.0 }
  0xfe   : > { %v9172_v1 = vpop.f32.mrf.mxu0  ;;  %9267 = vmatmul.mubr.msk.bf16.gmra.mxu0 %vm1215_vm2, %v9870_v57  ;;  %9438 = vmatprep.mubr.msk.f32.mxu1 %vm2931_vm3, %v2680_v59 }
  0xff   : > { %v2681_v3 = vmax.f32 %v1709_v0, 0.0  ;;  %9270 = vmatprep.mubr.msk.bf16.mxu0 %vm1215_vm2, %v9871_v60  ;;  %v1730_v12 = vadd.f32 %v9172_v1, %v10141_v62 }
 0x100   : > { %v1721_v5 = vpop.f32.mrf.mxu0 }
 0x101   : > { %v1722_v6 = vadd.f32 %v10141_v62, %v1721_v5  ;;  %9439 = vmatmul.mubr.msk.f32.gmra.mxu1 %vm2931_vm3, %v2681_v3  ;;  %v2686_v18 = vmax.f32 %v1730_v12, 0.0  ;;  %v9880_v3 = vld [vmem:[%s10022_s10 + $0x228] sm:$0xff]  }
 0x102   : > { %v9173_v7 = vpop.f32.mrf.mxu0  ;;  %9441 = vmatprep.mubr.msk.f32.mxu1 %vm2931_vm3, %v2682_v4 }
 0x103   : > { %v2684_v10 = vmax.f32 %v1722_v6, 0.0  ;;  %v1733_v16 = vadd.f32 %v9173_v7, %v10141_v62  ;;  %v9881_v6 = vld [vmem:[%s10022_s10 + $0x230] sm:$0xff]  }
 0x104   : > { %v1724_v13 = vpop.f32.mrf.mxu0 }
 0x105   : > { %v1725_v14 = vadd.f32 %v10141_v62, %v1724_v13  ;;  %9442 = vmatmul.mubr.msk.f32.gmra.mxu1 %vm2931_vm3, %v2683_v9  ;;  %v2687_v25 = vmax.f32 %v1733_v16, 0.0 }
 0x106   : > { %v9176_v15 = vpop.f32.mrf.mxu0  ;;  %9271 = vmatmul.mubr.msk.bf16.gmra.mxu0 %vm1215_vm2, %v9872_v8  ;;  %9444 = vmatprep.mubr.msk.f32.mxu1 %vm2931_vm3, %v2684_v10 }
 0x107   : > { %v2685_v17 = vmax.f32 %v1725_v14, 0.0  ;;  %9274 = vmatprep.mubr.msk.bf16.mxu0 %vm1215_vm2, %v9873_v11  ;;  %v1746_v28 = vadd.f32 %v9176_v15, %v10141_v62 }
 0x108   : > { %v1737_v19 = vpop.f32.mrf.mxu0 }
 0x109   : > { %v1738_v22 = vadd.f32 %v10141_v62, %v1737_v19  ;;  %9445 = vmatmul.mubr.msk.f32.gmra.mxu1 %vm2931_vm3, %v2685_v17  ;;  %v2690_v34 = vmax.f32 %v1746_v28, 0.0  ;;  %v9882_v17 = vld [vmem:[%s10022_s10 + $0x238] sm:$0xff]  }
 0x10a   : > { %v9177_v23 = vpop.f32.mrf.mxu0  ;;  %9447 = vmatprep.mubr.msk.f32.mxu1 %vm2931_vm3, %v2686_v18 }
 0x10b   : > { %v2688_v26 = vmax.f32 %v1738_v22, 0.0  ;;  %v1749_v32 = vadd.f32 %v9177_v23, %v10141_v62 }
 0x10c   : > { %v1740_v29 = vpop.f32.mrf.mxu0 }
 0x10d   : > { %v1741_v30 = vadd.f32 %v10141_v62, %v1740_v29  ;;  %9448 = vmatmul.mubr.msk.f32.gmra.mxu1 %vm2931_vm3, %v2687_v25  ;;  %v2691_v39 = vmax.f32 %v1749_v32, 0.0 }
 0x10e   : > { %v9180_v31 = vpop.f32.mrf.mxu0  ;;  %9275 = vmatmul.mubr.msk.bf16.gmra.mxu0 %vm1215_vm2, %v9874_v24  ;;  %9450 = vmatprep.mubr.msk.f32.mxu1 %vm2931_vm3, %v2688_v26 }
 0x10f   : > { %v2689_v33 = vmax.f32 %v1741_v30, 0.0  ;;  %9278 = vmatprep.mubr.msk.bf16.mxu0 %vm1215_vm2, %v9875_v27  ;;  %v1762_v42 = vadd.f32 %v9180_v31, %v10141_v62  ;;  %v9884_v31 = vld [vmem:[%s10022_s10 + $0x248] sm:$0xff]  }
 0x110   : > { %v1753_v35 = vpop.f32.mrf.mxu0 }
 0x111   : > { %v1754_v36 = vadd.f32 %v10141_v62, %v1753_v35  ;;  %9451 = vmatmul.mubr.msk.f32.gmra.mxu1 %vm2931_vm3, %v2689_v33  ;;  %v2694_v48 = vmax.f32 %v1762_v42, 0.0 }
 0x112   : > { %v9181_v37 = vpop.f32.mrf.mxu0  ;;  %9453 = vmatprep.mubr.msk.f32.mxu1 %vm2931_vm3, %v2690_v34  ;;  %v9885_v34 = vld [vmem:[%s10022_s10 + $0x250] sm:$0xff]  }
 0x113   : > { %v2692_v40 = vmax.f32 %v1754_v36, 0.0  ;;  %v1765_v46 = vadd.f32 %v9181_v37, %v10141_v62 }
 0x114   : > { %v1756_v43 = vpop.f32.mrf.mxu0 }
 0x115   : > { %v1757_v44 = vadd.f32 %v10141_v62, %v1756_v43  ;;  %9454 = vmatmul.mubr.msk.f32.gmra.mxu1 %vm2931_vm3, %v2691_v39  ;;  %v2695_v53 = vmax.f32 %v1765_v46, 0.0 }
 0x116   : > { %v9184_v45 = vpop.f32.mrf.mxu0  ;;  %9279 = vmatmul.mubr.msk.bf16.gmra.mxu0 %vm1215_vm2, %v9876_v38  ;;  %9456 = vmatprep.mubr.msk.f32.mxu1 %vm2931_vm3, %v2692_v40 }
 0x117   : > { %v2693_v47 = vmax.f32 %v1757_v44, 0.0  ;;  %9282 = vmatprep.mubr.msk.bf16.mxu0 %vm1215_vm2, %v9877_v41  ;;  %v1778_v56 = vadd.f32 %v9184_v45, %v10141_v62  ;;  %v9886_v45 = vld [vmem:[%s10022_s10 + $0x258] sm:$0xff]  }
 0x118   : > { %v1769_v49 = vpop.f32.mrf.mxu0 }
 0x119   : > { %v1770_v50 = vadd.f32 %v10141_v62, %v1769_v49  ;;  %9457 = vmatmul.mubr.msk.f32.gmra.mxu1 %vm2931_vm3, %v2693_v47  ;;  %v2698_v63 = vmax.f32 %v1778_v56, 0.0 }
 0x11a   : > { %v9185_v51 = vpop.f32.mrf.mxu0  ;;  %9459 = vmatprep.mubr.msk.f32.mxu1 %vm2931_vm3, %v2694_v48  ;;  %v9887_v48 = vld [vmem:[%s10022_s10 + $0x260] sm:$0xff]  }
 0x11b   : > { %v2696_v54 = vmax.f32 %v1770_v50, 0.0  ;;  %v1781_v60 = vadd.f32 %v9185_v51, %v10141_v62 }
 0x11c   : > { %v1772_v57 = vpop.f32.mrf.mxu0 }
 0x11d   : > { %v1773_v58 = vadd.f32 %v10141_v62, %v1772_v57  ;;  %9460 = vmatmul.mubr.msk.f32.gmra.mxu1 %vm2931_vm3, %v2695_v53  ;;  %v2699_v4 = vmax.f32 %v1781_v60, 0.0 }
 0x11e   : > { %v9188_v59 = vpop.f32.mrf.mxu0  ;;  %9283 = vmatmul.mubr.msk.bf16.gmra.mxu0 %vm1215_vm2, %v9878_v52  ;;  %9462 = vmatprep.mubr.msk.f32.mxu1 %vm2931_vm3, %v2696_v54 }
 0x11f   : > { %v2697_v61 = vmax.f32 %v1773_v58, 0.0  ;;  %9286 = vmatprep.mubr.msk.bf16.mxu0 %vm1215_vm2, %v9879_v55  ;;  %v1794_v7 = vadd.f32 %v9188_v59, %v10141_v62  ;;  %v9888_v59 = vld [vmem:[%s10022_s10 + $0x268] sm:$0xff]  }
 0x120   : > { %v1785_v0 = vpop.f32.mrf.mxu0 }
 0x121   : > { %v1786_v1 = vadd.f32 %v10141_v62, %v1785_v0  ;;  %9463 = vmatmul.mubr.msk.f32.gmra.mxu1 %vm2931_vm3, %v2697_v61  ;;  %v2702_v13 = vmax.f32 %v1794_v7, 0.0 }
 0x122   : > { %v9189_v2 = vpop.f32.mrf.mxu0  ;;  %9465 = vmatprep.mubr.msk.f32.mxu1 %vm2931_vm3, %v2698_v63  ;;  %v9889_v63 = vld [vmem:[%s10022_s10 + $0x270] sm:$0xff]  }
 0x123   : > { %v2700_v5 = vmax.f32 %v1786_v1, 0.0  ;;  %v1797_v11 = vadd.f32 %v9189_v2, %v10141_v62 }
 0x124   : > { %v1788_v8 = vpop.f32.mrf.mxu0 }
 0x125   : > { %v1789_v9 = vadd.f32 %v10141_v62, %v1788_v8  ;;  %9466 = vmatmul.mubr.msk.f32.gmra.mxu1 %vm2931_vm3, %v2699_v4  ;;  %v2703_v18 = vmax.f32 %v1797_v11, 0.0 }
 0x126   : > { %v9192_v10 = vpop.f32.mrf.mxu0  ;;  %9287 = vmatmul.mubr.msk.bf16.gmra.mxu0 %vm1215_vm2, %v9880_v3  ;;  %9468 = vmatprep.mubr.msk.f32.mxu1 %vm2931_vm3, %v2700_v5 }
 0x127   : > { %v2701_v12 = vmax.f32 %v1789_v9, 0.0  ;;  %9290 = vmatprep.mubr.msk.bf16.mxu0 %vm1215_vm2, %v9881_v6  ;;  %v1810_v21 = vadd.f32 %v9192_v10, %v10141_v62  ;;  %v9890_v10 = vld [vmem:[%s10022_s10 + $0x278] sm:$0xff]  }
 0x128   : > { %v1801_v14 = vpop.f32.mrf.mxu0 }
 0x129   : > { %v1802_v15 = vadd.f32 %v10141_v62, %v1801_v14  ;;  %9469 = vmatmul.mubr.msk.f32.gmra.mxu1 %vm2931_vm3, %v2701_v12  ;;  %v2706_v27 = vmax.f32 %v1810_v21, 0.0 }
 0x12a   : > { %v9193_v16 = vpop.f32.mrf.mxu0  ;;  %9471 = vmatprep.mubr.msk.f32.mxu1 %vm2931_vm3, %v2702_v13  ;;  %v9891_v13 = vld [vmem:[%s10022_s10 + $0x280] sm:$0xff]  }
 0x12b   : > { %v2704_v19 = vmax.f32 %v1802_v15, 0.0  ;;  %v1813_v25 = vadd.f32 %v9193_v16, %v10141_v62 }
 0x12c   : > { %v1804_v22 = vpop.f32.mrf.mxu0 }
 0x12d   : > { %v1805_v23 = vadd.f32 %v10141_v62, %v1804_v22  ;;  %9472 = vmatmul.mubr.msk.f32.gmra.mxu1 %vm2931_vm3, %v2703_v18  ;;  %v2707_v32 = vmax.f32 %v1813_v25, 0.0 }
 0x12e   : > { %v9196_v24 = vpop.f32.mrf.mxu0  ;;  %9291 = vmatmul.mubr.msk.bf16.gmra.mxu0 %vm1215_vm2, %v9882_v17  ;;  %9474 = vmatprep.mubr.msk.f32.mxu1 %vm2931_vm3, %v2704_v19 }
 0x12f   : > { %v2705_v26 = vmax.f32 %v1805_v23, 0.0  ;;  %9294 = vmatprep.mubr.msk.bf16.mxu0 %vm1215_vm2, %v9883_v20  ;;  %v1826_v35 = vadd.f32 %v9196_v24, %v10141_v62  ;;  %v9892_v24 = vld [vmem:[%s10022_s10 + $0x288] sm:$0xff]  }
 0x130   : > { %v1817_v28 = vpop.f32.mrf.mxu0 }
 0x131   : > { %v1818_v29 = vadd.f32 %v10141_v62, %v1817_v28  ;;  %9475 = vmatmul.mubr.msk.f32.gmra.mxu1 %vm2931_vm3, %v2705_v26  ;;  %v2710_v41 = vmax.f32 %v1826_v35, 0.0 }
 0x132   : > { %v9197_v30 = vpop.f32.mrf.mxu0  ;;  %9477 = vmatprep.mubr.msk.f32.mxu1 %vm2931_vm3, %v2706_v27  ;;  %v9893_v27 = vld [vmem:[%s10022_s10 + $0x290] sm:$0xff]  }
 0x133   : > { %v2708_v33 = vmax.f32 %v1818_v29, 0.0  ;;  %v1829_v39 = vadd.f32 %v9197_v30, %v10141_v62 }
 0x134   : > { %v1820_v36 = vpop.f32.mrf.mxu0 }
 0x135   : > { %v1821_v37 = vadd.f32 %v10141_v62, %v1820_v36  ;;  %9478 = vmatmul.mubr.msk.f32.gmra.mxu1 %vm2931_vm3, %v2707_v32  ;;  %v2711_v46 = vmax.f32 %v1829_v39, 0.0 }
 0x136   : > { %v9200_v38 = vpop.f32.mrf.mxu0  ;;  %9295 = vmatmul.mubr.msk.bf16.gmra.mxu0 %vm1215_vm2, %v9884_v31  ;;  %9480 = vmatprep.mubr.msk.f32.mxu1 %vm2931_vm3, %v2708_v33 }
 0x137   : > { %v2709_v40 = vmax.f32 %v1821_v37, 0.0  ;;  %9298 = vmatprep.mubr.msk.bf16.mxu0 %vm1215_vm2, %v9885_v34  ;;  %v1842_v49 = vadd.f32 %v9200_v38, %v10141_v62  ;;  %v9894_v38 = vld [vmem:[%s10022_s10 + $0x298] sm:$0xff]  }
 0x138   : > { %v1833_v42 = vpop.f32.mrf.mxu0 }
 0x139   : > { %v1834_v43 = vadd.f32 %v10141_v62, %v1833_v42  ;;  %9481 = vmatmul.mubr.msk.f32.gmra.mxu1 %vm2931_vm3, %v2709_v40  ;;  %v2714_v55 = vmax.f32 %v1842_v49, 0.0 }
 0x13a   : > { %v9201_v44 = vpop.f32.mrf.mxu0  ;;  %9483 = vmatprep.mubr.msk.f32.mxu1 %vm2931_vm3, %v2710_v41  ;;  %v9895_v41 = vld [vmem:[%s10022_s10 + $0x2a0] sm:$0xff]  }
 0x13b   : > { %v2712_v47 = vmax.f32 %v1834_v43, 0.0  ;;  %v1845_v53 = vadd.f32 %v9201_v44, %v10141_v62 }
 0x13c   : > { %v1836_v50 = vpop.f32.mrf.mxu0 }
 0x13d   : > { %v1837_v51 = vadd.f32 %v10141_v62, %v1836_v50  ;;  %9484 = vmatmul.mubr.msk.f32.gmra.mxu1 %vm2931_vm3, %v2711_v46  ;;  %v2715_v60 = vmax.f32 %v1845_v53, 0.0 }
 0x13e   : > { %v9204_v52 = vpop.f32.mrf.mxu0  ;;  %9299 = vmatmul.mubr.msk.bf16.gmra.mxu0 %vm1215_vm2, %v9886_v45  ;;  %9486 = vmatprep.mubr.msk.f32.mxu1 %vm2931_vm3, %v2712_v47 }
 0x13f   : > { %v2713_v54 = vmax.f32 %v1837_v51, 0.0  ;;  %9302 = vmatprep.mubr.msk.bf16.mxu0 %vm1215_vm2, %v9887_v48  ;;  %v1858_v0 = vadd.f32 %v9204_v52, %v10141_v62  ;;  %v9896_v52 = vld [vmem:[%s10022_s10 + $0x2a8] sm:$0xff]  }
 0x140   : > { %v1849_v56 = vpop.f32.mrf.mxu0 }
 0x141   : > { %v1850_v57 = vadd.f32 %v10141_v62, %v1849_v56  ;;  %9487 = vmatmul.mubr.msk.f32.gmra.mxu1 %vm2931_vm3, %v2713_v54  ;;  %v2718_v6 = vmax.f32 %v1858_v0, 0.0 }
 0x142   : > { %v9205_v58 = vpop.f32.mrf.mxu0  ;;  %9489 = vmatprep.mubr.msk.f32.mxu1 %vm2931_vm3, %v2714_v55  ;;  %v9897_v55 = vld [vmem:[%s10022_s10 + $0x2b0] sm:$0xff]  }
 0x143   : > { %v2716_v61 = vmax.f32 %v1850_v57, 0.0  ;;  %v1861_v4 = vadd.f32 %v9205_v58, %v10141_v62 }
 0x144   : > { %v1852_v1 = vpop.f32.mrf.mxu0 }
 0x145   : > { %v1853_v2 = vadd.f32 %v10141_v62, %v1852_v1  ;;  %9490 = vmatmul.mubr.msk.f32.gmra.mxu1 %vm2931_vm3, %v2715_v60  ;;  %v2719_v11 = vmax.f32 %v1861_v4, 0.0 }
 0x146   : > { %v9208_v3 = vpop.f32.mrf.mxu0  ;;  %9303 = vmatmul.mubr.msk.bf16.gmra.mxu0 %vm1215_vm2, %v9888_v59  ;;  %9492 = vmatprep.mubr.msk.f32.mxu1 %vm2931_vm3, %v2716_v61 }
 0x147   : > { %v2717_v5 = vmax.f32 %v1853_v2, 0.0  ;;  %9306 = vmatprep.mubr.msk.bf16.mxu0 %vm1215_vm2, %v9889_v63  ;;  %v1874_v14 = vadd.f32 %v9208_v3, %v10141_v62  ;;  %v9898_v3 = vld [vmem:[%s10022_s10 + $0x2b8] sm:$0xff]  }
 0x148   : > { %v1865_v7 = vpop.f32.mrf.mxu0 }
 0x149   : > { %v1866_v8 = vadd.f32 %v10141_v62, %v1865_v7  ;;  %9493 = vmatmul.mubr.msk.f32.gmra.mxu1 %vm2931_vm3, %v2717_v5  ;;  %v2722_v20 = vmax.f32 %v1874_v14, 0.0 }
 0x14a   : > { %v9209_v9 = vpop.f32.mrf.mxu0  ;;  %9495 = vmatprep.mubr.msk.f32.mxu1 %vm2931_vm3, %v2718_v6  ;;  %v9899_v6 = vld [vmem:[%s10022_s10 + $0x2c0] sm:$0xff]  }
 0x14b   : > { %v2720_v12 = vmax.f32 %v1866_v8, 0.0  ;;  %v1877_v18 = vadd.f32 %v9209_v9, %v10141_v62 }
 0x14c   : > { %v1868_v15 = vpop.f32.mrf.mxu0 }
 0x14d   : > { %v1869_v16 = vadd.f32 %v10141_v62, %v1868_v15  ;;  %9496 = vmatmul.mubr.msk.f32.gmra.mxu1 %vm2931_vm3, %v2719_v11  ;;  %v2723_v25 = vmax.f32 %v1877_v18, 0.0 }
 0x14e   : > { %v9212_v17 = vpop.f32.mrf.mxu0  ;;  %9307 = vmatmul.mubr.msk.bf16.gmra.mxu0 %vm1215_vm2, %v9890_v10  ;;  %9498 = vmatprep.mubr.msk.f32.mxu1 %vm2931_vm3, %v2720_v12 }
 0x14f   : > { %v2721_v19 = vmax.f32 %v1869_v16, 0.0  ;;  %9310 = vmatprep.mubr.msk.bf16.mxu0 %vm1215_vm2, %v9891_v13  ;;  %v1890_v28 = vadd.f32 %v9212_v17, %v10141_v62  ;;  %v9900_v17 = vld [vmem:[%s10022_s10 + $0x2c8] sm:$0xff]  }
 0x150   : > { %v1881_v21 = vpop.f32.mrf.mxu0 }
 0x151   : > { %v1882_v22 = vadd.f32 %v10141_v62, %v1881_v21  ;;  %9499 = vmatmul.mubr.msk.f32.gmra.mxu1 %vm2931_vm3, %v2721_v19  ;;  %v2726_v34 = vmax.f32 %v1890_v28, 0.0 }
 0x152   : > { %v9213_v23 = vpop.f32.mrf.mxu0  ;;  %9501 = vmatprep.mubr.msk.f32.mxu1 %vm2931_vm3, %v2722_v20  ;;  %v9901_v20 = vld [vmem:[%s10022_s10 + $0x2d0] sm:$0xff]  }
 0x153   : > { %v2724_v26 = vmax.f32 %v1882_v22, 0.0  ;;  %v1893_v32 = vadd.f32 %v9213_v23, %v10141_v62 }
 0x154   : > { %v1884_v29 = vpop.f32.mrf.mxu0 }
 0x155   : > { %v1885_v30 = vadd.f32 %v10141_v62, %v1884_v29  ;;  %9502 = vmatmul.mubr.msk.f32.gmra.mxu1 %vm2931_vm3, %v2723_v25  ;;  %v2727_v39 = vmax.f32 %v1893_v32, 0.0 }
 0x156   : > { %v9216_v31 = vpop.f32.mrf.mxu0  ;;  %9311 = vmatmul.mubr.msk.bf16.gmra.mxu0 %vm1215_vm2, %v9892_v24  ;;  %9504 = vmatprep.mubr.msk.f32.mxu1 %vm2931_vm3, %v2724_v26 }
 0x157   : > { %v2725_v33 = vmax.f32 %v1885_v30, 0.0  ;;  %9314 = vmatprep.mubr.msk.bf16.mxu0 %vm1215_vm2, %v9893_v27  ;;  %v1906_v42 = vadd.f32 %v9216_v31, %v10141_v62  ;;  %v9902_v31 = vld [vmem:[%s10022_s10 + $0x2d8] sm:$0xff]  }
 0x158   : > { %v1897_v35 = vpop.f32.mrf.mxu0 }
 0x159   : > { %v1898_v36 = vadd.f32 %v10141_v62, %v1897_v35  ;;  %9505 = vmatmul.mubr.msk.f32.gmra.mxu1 %vm2931_vm3, %v2725_v33  ;;  %v2730_v48 = vmax.f32 %v1906_v42, 0.0 }
 0x15a   : > { %v9217_v37 = vpop.f32.mrf.mxu0  ;;  %9507 = vmatprep.mubr.msk.f32.mxu1 %vm2931_vm3, %v2726_v34  ;;  %v9903_v34 = vld [vmem:[%s10022_s10 + $0x2e0] sm:$0xff]  }
 0x15b   : > { %v2728_v40 = vmax.f32 %v1898_v36, 0.0  ;;  %v1909_v46 = vadd.f32 %v9217_v37, %v10141_v62 }
 0x15c   : > { %v1900_v43 = vpop.f32.mrf.mxu0 }
 0x15d   : > { %v1901_v44 = vadd.f32 %v10141_v62, %v1900_v43  ;;  %9508 = vmatmul.mubr.msk.f32.gmra.mxu1 %vm2931_vm3, %v2727_v39  ;;  %v2731_v53 = vmax.f32 %v1909_v46, 0.0 }
 0x15e   : > { %v9220_v45 = vpop.f32.mrf.mxu0  ;;  %9315 = vmatmul.mubr.msk.bf16.gmra.mxu0 %vm1215_vm2, %v9894_v38  ;;  %9510 = vmatprep.mubr.msk.f32.mxu1 %vm2931_vm3, %v2728_v40 }
 0x15f   : > { %v2729_v47 = vmax.f32 %v1901_v44, 0.0  ;;  %9318 = vmatprep.mubr.msk.bf16.mxu0 %vm1215_vm2, %v9895_v41  ;;  %v1922_v56 = vadd.f32 %v9220_v45, %v10141_v62  ;;  %v9904_v45 = vld [vmem:[%s10022_s10 + $0x2e8] sm:$0xff]  }
 0x160   : > { %v1913_v49 = vpop.f32.mrf.mxu0 }
 0x161   : > { %v1914_v50 = vadd.f32 %v10141_v62, %v1913_v49  ;;  %9511 = vmatmul.mubr.msk.f32.gmra.mxu1 %vm2931_vm3, %v2729_v47  ;;  %v2734_v63 = vmax.f32 %v1922_v56, 0.0 }
 0x162   : > { %v9221_v51 = vpop.f32.mrf.mxu0  ;;  %9513 = vmatprep.mubr.msk.f32.mxu1 %vm2931_vm3, %v2730_v48  ;;  %v9905_v48 = vld [vmem:[%s10022_s10 + $0x2f0] sm:$0xff]  }
 0x163   : > { %v2732_v54 = vmax.f32 %v1914_v50, 0.0  ;;  %v1925_v60 = vadd.f32 %v9221_v51, %v10141_v62 }
 0x164   : > { %v1916_v57 = vpop.f32.mrf.mxu0 }
 0x165   : > { %v1917_v58 = vadd.f32 %v10141_v62, %v1916_v57  ;;  %9514 = vmatmul.mubr.msk.f32.gmra.mxu1 %vm2931_vm3, %v2731_v53  ;;  %v2735_v4 = vmax.f32 %v1925_v60, 0.0 }
 0x166   : > { %v9224_v59 = vpop.f32.mrf.mxu0  ;;  %9319 = vmatmul.mubr.msk.bf16.gmra.mxu0 %vm1215_vm2, %v9896_v52  ;;  %9516 = vmatprep.mubr.msk.f32.mxu1 %vm2931_vm3, %v2732_v54 }
 0x167   : > { %v2733_v61 = vmax.f32 %v1917_v58, 0.0  ;;  %9322 = vmatprep.mubr.msk.bf16.mxu0 %vm1215_vm2, %v9897_v55  ;;  %v1938_v7 = vadd.f32 %v9224_v59, %v10141_v62  ;;  %v9906_v59 = vld [vmem:[%s10022_s10 + $0x2f8] sm:$0xff]  }
 0x168   : > { %v1929_v0 = vpop.f32.mrf.mxu0 }
 0x169   : > { %v1930_v1 = vadd.f32 %v10141_v62, %v1929_v0  ;;  %9517 = vmatmul.mubr.msk.f32.gmra.mxu1 %vm2931_vm3, %v2733_v61  ;;  %v2738_v13 = vmax.f32 %v1938_v7, 0.0 }
 0x16a   : > { %v9225_v2 = vpop.f32.mrf.mxu0  ;;  %9519 = vmatprep.mubr.msk.f32.mxu1 %vm2931_vm3, %v2734_v63  ;;  %v9907_v63 = vld [vmem:[%s10022_s10 + $0x300] sm:$0xff]  }
 0x16b   : > { %v2736_v5 = vmax.f32 %v1930_v1, 0.0  ;;  %v1941_v11 = vadd.f32 %v9225_v2, %v10141_v62 }
 0x16c   : > { %v1932_v8 = vpop.f32.mrf.mxu0 }
 0x16d   : > { %v1933_v9 = vadd.f32 %v10141_v62, %v1932_v8  ;;  %9520 = vmatmul.mubr.msk.f32.gmra.mxu1 %vm2931_vm3, %v2735_v4  ;;  %v2739_v18 = vmax.f32 %v1941_v11, 0.0 }
 0x16e   : > { %v9228_v10 = vpop.f32.mrf.mxu0  ;;  %9323 = vmatmul.mubr.msk.bf16.gmra.mxu0 %vm1215_vm2, %v9898_v3  ;;  %9522 = vmatprep.mubr.msk.f32.mxu1 %vm2931_vm3, %v2736_v5 }
 0x16f   : > { %v2737_v12 = vmax.f32 %v1933_v9, 0.0  ;;  %9326 = vmatprep.mubr.msk.bf16.mxu0 %vm1215_vm2, %v9899_v6  ;;  %v1954_v21 = vadd.f32 %v9228_v10, %v10141_v62  ;;  %v9908_v10 = vld [vmem:[%s10022_s10 + $0x308] sm:$0xff]  }
 0x170   : > { %v1945_v14 = vpop.f32.mrf.mxu0 }
 0x171   : > { %v1946_v15 = vadd.f32 %v10141_v62, %v1945_v14  ;;  %9523 = vmatmul.mubr.msk.f32.gmra.mxu1 %vm2931_vm3, %v2737_v12  ;;  %v2742_v27 = vmax.f32 %v1954_v21, 0.0 }
 0x172   : > { %v9229_v16 = vpop.f32.mrf.mxu0  ;;  %9525 = vmatprep.mubr.msk.f32.mxu1 %vm2931_vm3, %v2738_v13  ;;  %v9909_v13 = vld [vmem:[%s10022_s10 + $0x310] sm:$0xff]  }
 0x173   : > { %v2740_v19 = vmax.f32 %v1946_v15, 0.0  ;;  %v1957_v25 = vadd.f32 %v9229_v16, %v10141_v62 }
 0x174   : > { %v1948_v22 = vpop.f32.mrf.mxu0 }
 0x175   : > { %v1949_v23 = vadd.f32 %v10141_v62, %v1948_v22  ;;  %9526 = vmatmul.mubr.msk.f32.gmra.mxu1 %vm2931_vm3, %v2739_v18  ;;  %v2743_v32 = vmax.f32 %v1957_v25, 0.0 }
 0x176   : > { %v9232_v24 = vpop.f32.mrf.mxu0  ;;  %9327 = vmatmul.mubr.msk.bf16.gmra.mxu0 %vm1215_vm2, %v9900_v17  ;;  %9528 = vmatprep.mubr.msk.f32.mxu1 %vm2931_vm3, %v2740_v19 }
 0x177   : > { %v2741_v26 = vmax.f32 %v1949_v23, 0.0  ;;  %9330 = vmatprep.mubr.msk.bf16.mxu0 %vm1215_vm2, %v9901_v20  ;;  %v1970_v35 = vadd.f32 %v9232_v24, %v10141_v62  ;;  %v9910_v24 = vld [vmem:[%s10022_s10 + $0x318] sm:$0xff]  }
 0x178   : > { %v1961_v28 = vpop.f32.mrf.mxu0 }
 0x179   : > { %v1962_v29 = vadd.f32 %v10141_v62, %v1961_v28  ;;  %9529 = vmatmul.mubr.msk.f32.gmra.mxu1 %vm2931_vm3, %v2741_v26  ;;  %v2746_v41 = vmax.f32 %v1970_v35, 0.0 }
 0x17a   : > { %v9233_v30 = vpop.f32.mrf.mxu0  ;;  %9531 = vmatprep.mubr.msk.f32.mxu1 %vm2931_vm3, %v2742_v27  ;;  %v9911_v27 = vld [vmem:[%s10022_s10 + $0x320] sm:$0xff]  }
 0x17b   : > { %v2744_v33 = vmax.f32 %v1962_v29, 0.0  ;;  %v1973_v39 = vadd.f32 %v9233_v30, %v10141_v62 }
 0x17c   : > { %v1964_v36 = vpop.f32.mrf.mxu0 }
 0x17d   : > { %v1965_v37 = vadd.f32 %v10141_v62, %v1964_v36  ;;  %9532 = vmatmul.mubr.msk.f32.gmra.mxu1 %vm2931_vm3, %v2743_v32  ;;  %v2747_v46 = vmax.f32 %v1973_v39, 0.0 }
 0x17e   : > { %v9236_v38 = vpop.f32.mrf.mxu0  ;;  %9331 = vmatmul.mubr.msk.bf16.gmra.mxu0 %vm1215_vm2, %v9902_v31  ;;  %9534 = vmatprep.mubr.msk.f32.mxu1 %vm2931_vm3, %v2744_v33 }
 0x17f   : > { %v2745_v40 = vmax.f32 %v1965_v37, 0.0  ;;  %9334 = vmatprep.mubr.msk.bf16.mxu0 %vm1215_vm2, %v9903_v34  ;;  %v1986_v49 = vadd.f32 %v9236_v38, %v10141_v62  ;;  %v10442_v34 = vld [vmem:[%s13307_s4] ss:$0 sm:$0xff] }
 0x180   : > { %v1977_v42 = vpop.f32.mrf.mxu0 }
 0x181   : > { %v1978_v43 = vadd.f32 %v10141_v62, %v1977_v42  ;;  %9535 = vmatmul.mubr.msk.f32.gmra.mxu1 %vm2931_vm3, %v2745_v40  ;;  %v2750_v55 = vmax.f32 %v1986_v49, 0.0 }
 0x182   : > { %v9237_v44 = vpop.f32.mrf.mxu0  ;;  %9537 = vmatprep.mubr.msk.f32.mxu1 %vm2931_vm3, %v2746_v41  ;;  %v9912_v41 = vld [vmem:[%s10022_s10 + $0x328] sm:$0xff]  }
 0x183   : > { %v2748_v47 = vmax.f32 %v1978_v43, 0.0  ;;  %v1989_v53 = vadd.f32 %v9237_v44, %v10141_v62 }
 0x184   : > { %v1980_v50 = vpop.f32.mrf.mxu0 }
 0x185   : > { %v1981_v51 = vadd.f32 %v10141_v62, %v1980_v50  ;;  %9538 = vmatmul.mubr.msk.f32.gmra.mxu1 %vm2931_vm3, %v2747_v46  ;;  %v2751_v60 = vmax.f32 %v1989_v53, 0.0  ;;  %v9913_v46 = vld [vmem:[%s10022_s10 + $0x330] sm:$0xff]  }
 0x186   : > { %v9240_v52 = vpop.f32.mrf.mxu0  ;;  %9335 = vmatmul.mubr.msk.bf16.gmra.mxu0 %vm1215_vm2, %v9904_v45  ;;  %9540 = vmatprep.mubr.msk.f32.mxu1 %vm2931_vm3, %v2748_v47  ;;  %v10453_v45 = vld [vmem:[%s13308_s5] ss:$0 sm:$0xff] }
 0x187   : > { %v2749_v54 = vmax.f32 %v1981_v51, 0.0  ;;  %9338 = vmatprep.mubr.msk.bf16.mxu0 %vm1215_vm2, %v9905_v48  ;;  %v2002_v0 = vadd.f32 %v9240_v52, %v10141_v62 }
 0x188   : > { %v1993_v56 = vpop.f32.mrf.mxu0 }
 0x189   : > { %v1994_v57 = vadd.f32 %v10141_v62, %v1993_v56  ;;  %9541 = vmatmul.mubr.msk.f32.gmra.mxu1 %vm2931_vm3, %v2749_v54  ;;  %v2754_v6 = vmax.f32 %v2002_v0, 0.0 }
 0x18a   : > { %v9241_v58 = vpop.f32.mrf.mxu0  ;;  %9543 = vmatprep.mubr.msk.f32.mxu1 %vm2931_vm3, %v2750_v55 }
 0x18b   : > { %v2752_v61 = vmax.f32 %v1994_v57, 0.0  ;;  %v2005_v4 = vadd.f32 %v9241_v58, %v10141_v62 }
 0x18c   : > { %v1996_v1 = vpop.f32.mrf.mxu0 }
 0x18d   : > { %v1997_v2 = vadd.f32 %v10141_v62, %v1996_v1  ;;  %9544 = vmatmul.mubr.msk.f32.gmra.mxu1 %vm2931_vm3, %v2751_v60  ;;  %v2755_v11 = vmax.f32 %v2005_v4, 0.0 }
 0x18e   : > { %v9244_v3 = vpop.f32.mrf.mxu0  ;;  %9339 = vmatmul.mubr.msk.bf16.gmra.mxu0 %vm1215_vm2, %v9906_v59  ;;  %9546 = vmatprep.mubr.msk.f32.mxu1 %vm2931_vm3, %v2752_v61 }
 0x18f   : > { %v2753_v5 = vmax.f32 %v1997_v2, 0.0  ;;  %9342 = vmatprep.mubr.msk.bf16.mxu0 %vm1215_vm2, %v9907_v63  ;;  %v2018_v14 = vadd.f32 %v9244_v3, %v10141_v62 }
 0x190   : > { %v2009_v7 = vpop.f32.mrf.mxu0 }
 0x191   : > { %v2010_v8 = vadd.f32 %v10141_v62, %v2009_v7  ;;  %9547 = vmatmul.mubr.msk.f32.gmra.mxu1 %vm2931_vm3, %v2753_v5  ;;  %v2758_v20 = vmax.f32 %v2018_v14, 0.0  ;;  %v9915_v14 = vld [vmem:[%s10022_s10 + $0x340] sm:$0xff]  }
 0x192   : > { %v9245_v9 = vpop.f32.mrf.mxu0  ;;  %9549 = vmatprep.mubr.msk.f32.mxu1 %vm2931_vm3, %v2754_v6 }
 0x193   : > { %v2756_v12 = vmax.f32 %v2010_v8, 0.0  ;;  %v2021_v18 = vadd.f32 %v9245_v9, %v10141_v62  ;;  %v9914_v9 = vld [vmem:[%s10022_s10 + $0x338] sm:$0xff]  }
 0x194   : > { %v2012_v15 = vpop.f32.mrf.mxu0 }
 0x195   : > { %v2013_v16 = vadd.f32 %v10141_v62, %v2012_v15  ;;  %9550 = vmatmul.mubr.msk.f32.gmra.mxu1 %vm2931_vm3, %v2755_v11  ;;  %v2759_v25 = vmax.f32 %v2021_v18, 0.0 }
 0x196   : > { %v9248_v17 = vpop.f32.mrf.mxu0  ;;  %9343 = vmatmul.mubr.msk.bf16.gmra.mxu0 %vm1215_vm2, %v9908_v10  ;;  %9552 = vmatprep.mubr.msk.f32.mxu1 %vm2931_vm3, %v2756_v12 }
 0x197   : > { %v2757_v19 = vmax.f32 %v2013_v16, 0.0  ;;  %9346 = vmatprep.mubr.msk.bf16.mxu0 %vm1215_vm2, %v9909_v13  ;;  %v2034_v28 = vadd.f32 %v9248_v17, %v10141_v62 }
 0x198   : > { %v2025_v21 = vpop.f32.mrf.mxu0 }
 0x199   : > { %v2026_v22 = vadd.f32 %v10141_v62, %v2025_v21  ;;  %9553 = vmatmul.mubr.msk.f32.gmra.mxu1 %vm2931_vm3, %v2757_v19  ;;  %v2762_v35 = vmax.f32 %v2034_v28, 0.0 }
 0x19a   : > { %v9249_v23 = vpop.f32.mrf.mxu0  ;;  %9555 = vmatprep.mubr.msk.f32.mxu1 %vm2931_vm3, %v2758_v20 }
 0x19b   : > { %v2760_v26 = vmax.f32 %v2026_v22, 0.0  ;;  %v2037_v32 = vadd.f32 %v9249_v23, %v10141_v62 }
 0x19c   : > { %v2028_v29 = vpop.f32.mrf.mxu0 }
 0x19d   : > { %v2029_v30 = vadd.f32 %v10141_v62, %v2028_v29  ;;  %9556 = vmatmul.mubr.msk.f32.gmra.mxu1 %vm2931_vm3, %v2759_v25  ;;  %v2763_v42 = vmax.f32 %v2037_v32, 0.0 }
 0x19e   : > { %v9252_v31 = vpop.f32.mrf.mxu0  ;;  %9347 = vmatmul.mubr.msk.bf16.gmra.mxu0 %vm1215_vm2, %v9910_v24  ;;  %9558 = vmatprep.mubr.msk.f32.mxu1 %vm2931_vm3, %v2760_v26 }
 0x19f   : > { %v2761_v33 = vmax.f32 %v2029_v30, 0.0  ;;  %9350 = vmatprep.mubr.msk.bf16.mxu0 %vm1215_vm2, %v9911_v27 }
 0x1a0   : > { %v2041_v36 = vpop.f32.mrf.mxu0 }
 0x1a1   : > { %v2042_v37 = vadd.f32 %v10141_v62, %v2041_v36  ;;  %v9416_v38 = vpop.f32.mrf.mxu1  ;;  %9559 = vmatmul.mubr.msk.f32.gmra.mxu1 %vm2931_vm3, %v2761_v33  ;;  %v10459_v62 = vld [vmem:[%s13305_s2] ss:$0 sm:$0xff] }
 0x1a2   : > { %v3772_v39 = vadd.f32 %v9416_v38, %v10442_v34  ;;  %v9253_v40 = vpop.f32.mrf.mxu0  ;;  %9561 = vmatprep.mubr.msk.f32.mxu1 %vm2931_vm3, %v2762_v35  ;;  %v2050_v47 = vadd.f32 %v10459_v62, %v9252_v31 }
 0x1a3   : > { %v2764_v43 = vmax.f32 %v2042_v37, 0.0  ;;  %v3766_v44 = vpop.f32.mrf.mxu1  ;;  %v2053_v57 = vadd.f32 %v10459_v62, %v9253_v40 }
 0x1a4   : > { %v5046_v48 = vmax.f32 %v3772_v39, 0.0  ;;  %v3767_v49 = vadd.f32 %v10442_v34, %v3766_v44  ;;  %v2044_v50 = vpop.f32.mrf.mxu0  ;;  %v2766_v60 = vmax.f32 %v2050_v47, 0.0 }
 0x1a5   : > { %v2045_v51 = vadd.f32 %v10459_v62, %v2044_v50  ;;  %v9419_v52 = vpop.f32.mrf.mxu1  ;;  %9562 = vmatmul.mubr.msk.f32.gmra.mxu1 %vm2931_vm3, %v2763_v42  ;;  %v2767_v10 = vmax.f32 %v2053_v57, 0.0  ;;  %v9917_v50 = vld [vmem:[%s10022_s10 + $0x350] sm:$0xff]  }
 0x1a6   : > { %v5045_v53 = vmax.f32 %v3767_v49, 0.0  ;;  %v3782_v54 = vadd.f32 %v9419_v52, %v10442_v34  ;;  %v9256_v55 = vpop.f32.mrf.mxu0  ;;  %9351 = vmatmul.mubr.msk.bf16.gmra.mxu0 %vm1215_vm2, %v9912_v41  ;;  %9564 = vmatprep.mubr.msk.f32.mxu1 %vm2931_vm3, %v2764_v43  ;;  %v5309_v56 = vmul.f32 %v10453_v45, %v5046_v48  ;;  %v9916_v43 = vld [vmem:[%s10022_s10 + $0x348] sm:$0xff]  }
 0x1a7   : > { %v2765_v58 = vmax.f32 %v2045_v51, 0.0  ;;  %v3776_v59 = vpop.f32.mrf.mxu1  ;;  %9354 = vmatprep.mubr.msk.bf16.mxu0 %vm1215_vm2, %v9913_v46  ;;  %v2066_v11 = vadd.f32 %v10459_v62, %v9256_v55 }
 0x1a8   : > { %v5048_v61 = vmax.f32 %v3782_v54, 0.0  ;;  %v3777_v63 = vadd.f32 %v10442_v34, %v3776_v59  ;;  %v2057_v0 = vpop.f32.mrf.mxu0  ;;  %v5567_v1 = vsel %vm2931_vm3, %v5309_v56, 0.0  ;;  %v5308_v4 = vmul.f32 %v10453_v45, %v5045_v53 }
 0x1a9   : > { %v2058_v2 = vadd.f32 %v10459_v62, %v2057_v0  ;;  %9565 = vmatmul.mubr.msk.f32.gmra.mxu1 %vm2931_vm3, %v2765_v58  ;;  %5568 = vadd.xlane.f32.xlu0 %v5567_v1  ;;  %v9422_v3 = vpop.f32.mrf.mxu1  ;;  %v2770_v26 = vmax.f32 %v2066_v11, 0.0 }
 0x1aa   : > { %v5047_v5 = vmax.f32 %v3777_v63, 0.0  ;;  %v3792_v6 = vadd.f32 %v9422_v3, %v10442_v34  ;;  %v9257_v7 = vpop.f32.mrf.mxu0  ;;  %9567 = vmatprep.mubr.msk.f32.mxu1 %vm2931_vm3, %v2766_v60  ;;  %v5311_v8 = vmul.f32 %v10453_v45, %v5048_v61  ;;  %v5564_v22 = vsel %vm2931_vm3, %v5308_v4, 0.0 }
 0x1ab   : > { %v2768_v12 = vmax.f32 %v2058_v2, 0.0  ;;  %v3786_v13 = vpop.f32.mrf.mxu1  ;;  %v2069_v27 = vadd.f32 %v10459_v62, %v9257_v7 }
 0x1ac   : > { %v5050_v15 = vmax.f32 %v3792_v6, 0.0  ;;  %v3787_v16 = vadd.f32 %v10442_v34, %v3786_v13  ;;  %v2060_v17 = vpop.f32.mrf.mxu0  ;;  %v5573_v18 = vsel %vm2931_vm3, %v5311_v8, 0.0  ;;  %v5310_v19 = vmul.f32 %v10453_v45, %v5047_v5 }
 0x1ad   : > { %v2061_v20 = vadd.f32 %v10459_v62, %v2060_v17  ;;  %9568 = vmatmul.mubr.msk.f32.gmra.mxu1 %vm2931_vm3, %v2767_v10  ;;  %5574 = vadd.xlane.f32.xlu1 %v5573_v18  ;;  %v9425_v21 = vpop.f32.mrf.mxu1  ;;  %v2771_v44 = vmax.f32 %v2069_v27, 0.0 }
 0x1ae   : > { %v5049_v23 = vmax.f32 %v3787_v16, 0.0  ;;  %v3802_v24 = vadd.f32 %v9425_v21, %v10442_v34  ;;  %5565 = vadd.xlane.f32.xlu0 %v5564_v22  ;;  %v9260_v25 = vpop.f32.mrf.mxu0  ;;  %9355 = vmatmul.mubr.msk.bf16.gmra.mxu0 %vm1215_vm2, %v9914_v9  ;;  %v5313_v30 = vmul.f32 %v10453_v45, %v5050_v15  ;;  %v5570_v35 = vsel %vm2931_vm3, %v5310_v19, 0.0  ;;  %v9918_v15 = vld [vmem:[%s10022_s10 + $0x358] sm:$0xff]   ;;  %v9919_v21 = vld [vmem:[%s10022_s10 + $0x360] sm:$0xff]  }
 0x1af   : > { %v2769_v28 = vmax.f32 %v2061_v20, 0.0  ;;  %9570 = vmatprep.mubr.msk.f32.mxu1 %vm2931_vm3, %v2768_v12  ;;  %v3796_v29 = vpop.f32.mrf.mxu1  ;;  %9358 = vmatprep.mubr.msk.bf16.mxu0 %vm1215_vm2, %v9915_v14  ;;  %v2082_v46 = vadd.f32 %v10459_v62, %v9260_v25 }
 0x1b0   : > { %v5052_v31 = vmax.f32 %v3802_v24, 0.0  ;;  %v3797_v32 = vadd.f32 %v10442_v34, %v3796_v29  ;;  %v2073_v33 = vpop.f32.mrf.mxu0  ;;  %v5312_v36 = vmul.f32 %v10453_v45, %v5049_v23  ;;  %v5579_v49 = vsel %vm2931_vm3, %v5313_v30, 0.0 }
 0x1b1   : > { %v2074_v37 = vadd.f32 %v10459_v62, %v2073_v33  ;;  %v9428_v38 = vpop.f32.mrf.mxu1  ;;  %9571 = vmatmul.mubr.msk.f32.gmra.mxu1 %vm2931_vm3, %v2769_v28  ;;  %5571 = vadd.xlane.f32.xlu1 %v5570_v35  ;;  %v2774_v63 = vmax.f32 %v2082_v46, 0.0 }
 0x1b2   : > { %v5051_v39 = vmax.f32 %v3797_v32, 0.0  ;;  %v3812_v40 = vadd.f32 %v9428_v38, %v10442_v34  ;;  %v9261_v41 = vpop.f32.mrf.mxu0  ;;  %9573 = vmatprep.mubr.msk.f32.mxu1 %vm2931_vm3, %v2770_v26  ;;  %v5576_v42 = vsel %vm2931_vm3, %v5312_v36, 0.0  ;;  %v5315_v55 = vmul.f32 %v10453_v45, %v5052_v31 }
 0x1b3   : > { %v2772_v47 = vmax.f32 %v2074_v37, 0.0  ;;  %v3806_v48 = vpop.f32.mrf.mxu1  ;;  %5577 = vadd.xlane.f32.xlu0 %v5576_v42  ;;  %v2085_v0 = vadd.f32 %v10459_v62, %v9261_v41 }
 0x1b4   : > { %v5054_v51 = vmax.f32 %v3812_v40, 0.0  ;;  %v3807_v52 = vadd.f32 %v10442_v34, %v3806_v48  ;;  %v2076_v53 = vpop.f32.mrf.mxu0  ;;  %v5314_v54 = vmul.f32 %v10453_v45, %v5051_v39  ;;  %v5585_v7 = vsel %vm2931_vm3, %v5315_v55, 0.0 }
 0x1b5   : > { %v2077_v56 = vadd.f32 %v10459_v62, %v2076_v53  ;;  %v9431_v57 = vpop.f32.mrf.mxu1  ;;  %9574 = vmatmul.mubr.msk.f32.gmra.mxu1 %vm2931_vm3, %v2771_v44  ;;  %5580 = vadd.xlane.f32.xlu1 %v5579_v49  ;;  %v2775_v16 = vmax.f32 %v2085_v0, 0.0 }
 0x1b6   : > { %v5053_v58 = vmax.f32 %v3807_v52, 0.0  ;;  %v3822_v59 = vadd.f32 %v9431_v57, %v10442_v34  ;;  %v9264_v60 = vpop.f32.mrf.mxu0  ;;  %9359 = vmatmul.mubr.msk.bf16.gmra.mxu0 %vm1215_vm2, %v9916_v43  ;;  %9576 = vmatprep.mubr.msk.f32.mxu1 %vm2931_vm3, %v2772_v47  ;;  %v5582_v61 = vsel %vm2931_vm3, %v5314_v54, 0.0  ;;  %v5317_v3 = vmul.f32 %v10453_v45, %v5054_v51  ;;  %v9920_v51 = vld [vmem:[%s10022_s10 + $0x368] sm:$0xff]   ;;  %v9921_v57 = vld [vmem:[%s10022_s10 + $0x370] sm:$0xff]  }
 0x1b7   : > { %v2773_v1 = vmax.f32 %v2077_v56, 0.0  ;;  %v3816_v2 = vpop.f32.mrf.mxu1  ;;  %5583 = vadd.xlane.f32.xlu0 %v5582_v61  ;;  %9362 = vmatprep.mubr.msk.bf16.mxu0 %vm1215_vm2, %v9917_v50  ;;  %v2098_v17 = vadd.f32 %v10459_v62, %v9264_v60 }
 0x1b8   : > { %v5056_v4 = vmax.f32 %v3822_v59, 0.0  ;;  %v3817_v5 = vadd.f32 %v10442_v34, %v3816_v2  ;;  %v2089_v6 = vpop.f32.mrf.mxu0  ;;  %v5316_v8 = vmul.f32 %v10453_v45, %v5053_v58  ;;  %v5591_v20 = vsel %vm2931_vm3, %v5317_v3, 0.0 }
 0x1b9   : > { %v2090_v9 = vadd.f32 %v10459_v62, %v2089_v6  ;;  %v9434_v10 = vpop.f32.mrf.mxu1  ;;  %9577 = vmatmul.mubr.msk.f32.gmra.mxu1 %vm2931_vm3, %v2773_v1  ;;  %5586 = vadd.xlane.f32.xlu1 %v5585_v7  ;;  %v2778_v33 = vmax.f32 %v2098_v17, 0.0 }
 0x1ba   : > { %v5055_v11 = vmax.f32 %v3817_v5, 0.0  ;;  %v3832_v12 = vadd.f32 %v9434_v10, %v10442_v34  ;;  %v9265_v13 = vpop.f32.mrf.mxu0  ;;  %9579 = vmatprep.mubr.msk.f32.mxu1 %vm2931_vm3, %v2774_v63  ;;  %v5588_v14 = vsel %vm2931_vm3, %v5316_v8, 0.0  ;;  %v5319_v26 = vmul.f32 %v10453_v45, %v5056_v4 }
 0x1bb   : > { %v2776_v18 = vmax.f32 %v2090_v9, 0.0  ;;  %v3826_v19 = vpop.f32.mrf.mxu1  ;;  %5589 = vadd.xlane.f32.xlu0 %v5588_v14  ;;  %v2101_v35 = vadd.f32 %v10459_v62, %v9265_v13 }
 0x1bc   : > { %v5058_v22 = vmax.f32 %v3832_v12, 0.0  ;;  %v3827_v23 = vadd.f32 %v10442_v34, %v3826_v19  ;;  %v2092_v24 = vpop.f32.mrf.mxu0  ;;  %v5318_v25 = vmul.f32 %v10453_v45, %v5055_v11  ;;  %v5597_v42 = vsel %vm2931_vm3, %v5319_v26, 0.0 }
 0x1bd   : > { %v2093_v27 = vadd.f32 %v10459_v62, %v2092_v24  ;;  %v9437_v28 = vpop.f32.mrf.mxu1  ;;  %9580 = vmatmul.mubr.msk.f32.gmra.mxu1 %vm2931_vm3, %v2775_v16  ;;  %5592 = vadd.xlane.f32.xlu1 %v5591_v20  ;;  %v2779_v52 = vmax.f32 %v2101_v35, 0.0 }
 0x1be   : > { %v5057_v29 = vmax.f32 %v3827_v23, 0.0  ;;  %v3842_v30 = vadd.f32 %v9437_v28, %v10442_v34  ;;  %v9268_v31 = vpop.f32.mrf.mxu0  ;;  %9363 = vmatmul.mubr.msk.bf16.gmra.mxu0 %vm1215_vm2, %v9918_v15  ;;  %9582 = vmatprep.mubr.msk.f32.mxu1 %vm2931_vm3, %v2776_v18  ;;  %v5594_v32 = vsel %vm2931_vm3, %v5318_v25, 0.0  ;;  %v5321_v38 = vmul.f32 %v10453_v45, %v5058_v22  ;;  %v9922_v22 = vld [vmem:[%s10022_s10 + $0x378] sm:$0xff]   ;;  %v9923_v28 = vld [vmem:[%s10022_s10 + $0x380] sm:$0xff]  }
 0x1bf   : > { %v2777_v36 = vmax.f32 %v2093_v27, 0.0  ;;  %v3836_v37 = vpop.f32.mrf.mxu1  ;;  %5595 = vadd.xlane.f32.xlu0 %v5594_v32  ;;  %9366 = vmatprep.mubr.msk.bf16.mxu0 %vm1215_vm2, %v9919_v21  ;;  %v2114_v53 = vadd.f32 %v10459_v62, %v9268_v31 }
 0x1c0   : > { %v5060_v39 = vmax.f32 %v3842_v30, 0.0  ;;  %v3837_v40 = vadd.f32 %v10442_v34, %v3836_v37  ;;  %v2105_v41 = vpop.f32.mrf.mxu0  ;;  %v5320_v43 = vmul.f32 %v10453_v45, %v5057_v29  ;;  %v5603_v56 = vsel %vm2931_vm3, %v5321_v38, 0.0 }
 0x1c1   : > { %v2106_v44 = vadd.f32 %v10459_v62, %v2105_v41  ;;  %v9440_v46 = vpop.f32.mrf.mxu1  ;;  %9583 = vmatmul.mubr.msk.f32.gmra.mxu1 %vm2931_vm3, %v2777_v36  ;;  %5598 = vadd.xlane.f32.xlu1 %v5597_v42  ;;  %v2782_v6 = vmax.f32 %v2114_v53, 0.0 }
 0x1c2   : > { %v5059_v47 = vmax.f32 %v3837_v40, 0.0  ;;  %v3852_v48 = vadd.f32 %v9440_v46, %v10442_v34  ;;  %v9269_v49 = vpop.f32.mrf.mxu0  ;;  %9585 = vmatprep.mubr.msk.f32.mxu1 %vm2931_vm3, %v2778_v33  ;;  %v5600_v50 = vsel %vm2931_vm3, %v5320_v43, 0.0  ;;  %v5323_v63 = vmul.f32 %v10453_v45, %v5060_v39 }
 0x1c3   : > { %v2780_v54 = vmax.f32 %v2106_v44, 0.0  ;;  %v3846_v55 = vpop.f32.mrf.mxu1  ;;  %5601 = vadd.xlane.f32.xlu0 %v5600_v50  ;;  %v2117_v7 = vadd.f32 %v10459_v62, %v9269_v49 }
 0x1c4   : > { %v5062_v58 = vmax.f32 %v3852_v48, 0.0  ;;  %v3847_v59 = vadd.f32 %v10442_v34, %v3846_v55  ;;  %v2108_v60 = vpop.f32.mrf.mxu0  ;;  %v5322_v61 = vmul.f32 %v10453_v45, %v5059_v47  ;;  %v5609_v14 = vsel %vm2931_vm3, %v5323_v63, 0.0 }
 0x1c5   : > { %v2109_v0 = vadd.f32 %v10459_v62, %v2108_v60  ;;  %v9443_v1 = vpop.f32.mrf.mxu1  ;;  %9586 = vmatmul.mubr.msk.f32.gmra.mxu1 %vm2931_vm3, %v2779_v52  ;;  %5604 = vadd.xlane.f32.xlu1 %v5603_v56  ;;  %v2783_v23 = vmax.f32 %v2117_v7, 0.0 }
 0x1c6   : > { %v5061_v2 = vmax.f32 %v3847_v59, 0.0  ;;  %v3862_v3 = vadd.f32 %v9443_v1, %v10442_v34  ;;  %v9272_v4 = vpop.f32.mrf.mxu0  ;;  %9367 = vmatmul.mubr.msk.bf16.gmra.mxu0 %vm1215_vm2, %v9920_v51  ;;  %9588 = vmatprep.mubr.msk.f32.mxu1 %vm2931_vm3, %v2780_v54  ;;  %v5606_v5 = vsel %vm2931_vm3, %v5322_v61, 0.0  ;;  %v5325_v10 = vmul.f32 %v10453_v45, %v5062_v58  ;;  %v9924_v58 = vld [vmem:[%s10022_s10 + $0x388] sm:$0xff]   ;;  %v9925_v1 = vld [vmem:[%s10022_s10 + $0x390] sm:$0xff]  }
 0x1c7   : > { %v2781_v8 = vmax.f32 %v2109_v0, 0.0  ;;  %v3856_v9 = vpop.f32.mrf.mxu1  ;;  %5607 = vadd.xlane.f32.xlu0 %v5606_v5  ;;  %9370 = vmatprep.mubr.msk.bf16.mxu0 %vm1215_vm2, %v9921_v57  ;;  %v2130_v24 = vadd.f32 %v10459_v62, %v9272_v4 }
 0x1c8   : > { %v5064_v11 = vmax.f32 %v3862_v3, 0.0  ;;  %v3857_v12 = vadd.f32 %v10442_v34, %v3856_v9  ;;  %v2121_v13 = vpop.f32.mrf.mxu0  ;;  %v5324_v15 = vmul.f32 %v10453_v45, %v5061_v2  ;;  %v5615_v27 = vsel %vm2931_vm3, %v5325_v10, 0.0 }
 0x1c9   : > { %v2122_v16 = vadd.f32 %v10459_v62, %v2121_v13  ;;  %v9446_v17 = vpop.f32.mrf.mxu1  ;;  %9589 = vmatmul.mubr.msk.f32.gmra.mxu1 %vm2931_vm3, %v2781_v8  ;;  %5610 = vadd.xlane.f32.xlu1 %v5609_v14  ;;  %v2786_v41 = vmax.f32 %v2130_v24, 0.0 }
 0x1ca   : > { %v5063_v18 = vmax.f32 %v3857_v12, 0.0  ;;  %v3872_v19 = vadd.f32 %v9446_v17, %v10442_v34  ;;  %v9273_v20 = vpop.f32.mrf.mxu0  ;;  %9591 = vmatprep.mubr.msk.f32.mxu1 %vm2931_vm3, %v2782_v6  ;;  %v5612_v21 = vsel %vm2931_vm3, %v5324_v15, 0.0  ;;  %v5327_v33 = vmul.f32 %v10453_v45, %v5064_v11 }
 0x1cb   : > { %v2784_v25 = vmax.f32 %v2122_v16, 0.0  ;;  %v3866_v26 = vpop.f32.mrf.mxu1  ;;  %5613 = vadd.xlane.f32.xlu0 %v5612_v21  ;;  %v2133_v42 = vadd.f32 %v10459_v62, %v9273_v20 }
 0x1cc   : > { %v5066_v29 = vmax.f32 %v3872_v19, 0.0  ;;  %v3867_v30 = vadd.f32 %v10442_v34, %v3866_v26  ;;  %v2124_v31 = vpop.f32.mrf.mxu0  ;;  %v5326_v32 = vmul.f32 %v10453_v45, %v5063_v18  ;;  %v5621_v50 = vsel %vm2931_vm3, %v5327_v33, 0.0 }
 0x1cd   : > { %v2125_v35 = vadd.f32 %v10459_v62, %v2124_v31  ;;  %v9449_v36 = vpop.f32.mrf.mxu1  ;;  %9592 = vmatmul.mubr.msk.f32.gmra.mxu1 %vm2931_vm3, %v2783_v23  ;;  %5616 = vadd.xlane.f32.xlu1 %v5615_v27  ;;  %v2787_v59 = vmax.f32 %v2133_v42, 0.0 }
 0x1ce   : > { %v5065_v37 = vmax.f32 %v3867_v30, 0.0  ;;  %v3882_v38 = vadd.f32 %v9449_v36, %v10442_v34  ;;  %v9276_v39 = vpop.f32.mrf.mxu0  ;;  %9371 = vmatmul.mubr.msk.bf16.gmra.mxu0 %vm1215_vm2, %v9922_v22  ;;  %9594 = vmatprep.mubr.msk.f32.mxu1 %vm2931_vm3, %v2784_v25  ;;  %v5618_v40 = vsel %vm2931_vm3, %v5326_v32, 0.0  ;;  %v5329_v46 = vmul.f32 %v10453_v45, %v5066_v29  ;;  %v9926_v29 = vld [vmem:[%s10022_s10 + $0x398] sm:$0xff]   ;;  %v9927_v36 = vld [vmem:[%s10022_s10 + $0x3a0] sm:$0xff]  }
 0x1cf   : > { %v2785_v43 = vmax.f32 %v2125_v35, 0.0  ;;  %v3876_v44 = vpop.f32.mrf.mxu1  ;;  %5619 = vadd.xlane.f32.xlu0 %v5618_v40  ;;  %9374 = vmatprep.mubr.msk.bf16.mxu0 %vm1215_vm2, %v9923_v28  ;;  %v2146_v60 = vadd.f32 %v10459_v62, %v9276_v39 }
 0x1d0   : > { %v5068_v47 = vmax.f32 %v3882_v38, 0.0  ;;  %v3877_v48 = vadd.f32 %v10442_v34, %v3876_v44  ;;  %v2137_v49 = vpop.f32.mrf.mxu0  ;;  %v5328_v51 = vmul.f32 %v10453_v45, %v5065_v37  ;;  %v5627_v0 = vsel %vm2931_vm3, %v5329_v46, 0.0 }
 0x1d1   : > { %v2138_v52 = vadd.f32 %v10459_v62, %v2137_v49  ;;  %v9452_v53 = vpop.f32.mrf.mxu1  ;;  %9595 = vmatmul.mubr.msk.f32.gmra.mxu1 %vm2931_vm3, %v2785_v43  ;;  %5622 = vadd.xlane.f32.xlu1 %v5621_v50  ;;  %v2790_v13 = vmax.f32 %v2146_v60, 0.0 }
 0x1d2   : > { %v5067_v54 = vmax.f32 %v3877_v48, 0.0  ;;  %v3892_v55 = vadd.f32 %v9452_v53, %v10442_v34  ;;  %v9277_v56 = vpop.f32.mrf.mxu0  ;;  %9597 = vmatprep.mubr.msk.f32.mxu1 %vm2931_vm3, %v2786_v41  ;;  %v5624_v57 = vsel %vm2931_vm3, %v5328_v51, 0.0  ;;  %v5331_v6 = vmul.f32 %v10453_v45, %v5068_v47 }
 0x1d3   : > { %v2788_v61 = vmax.f32 %v2138_v52, 0.0  ;;  %v3886_v63 = vpop.f32.mrf.mxu1  ;;  %5625 = vadd.xlane.f32.xlu0 %v5624_v57  ;;  %v2149_v14 = vadd.f32 %v10459_v62, %v9277_v56 }
 0x1d4   : > { %v5070_v2 = vmax.f32 %v3892_v55, 0.0  ;;  %v3887_v3 = vadd.f32 %v10442_v34, %v3886_v63  ;;  %v2140_v4 = vpop.f32.mrf.mxu0  ;;  %v5330_v5 = vmul.f32 %v10453_v45, %v5067_v54  ;;  %v5633_v21 = vsel %vm2931_vm3, %v5331_v6, 0.0 }
 0x1d5   : > { %v2141_v7 = vadd.f32 %v10459_v62, %v2140_v4  ;;  %v9455_v8 = vpop.f32.mrf.mxu1  ;;  %9598 = vmatmul.mubr.msk.f32.gmra.mxu1 %vm2931_vm3, %v2787_v59  ;;  %5628 = vadd.xlane.f32.xlu1 %v5627_v0  ;;  %v2791_v30 = vmax.f32 %v2149_v14, 0.0 }
 0x1d6   : > { %v5069_v9 = vmax.f32 %v3887_v3, 0.0  ;;  %v3902_v10 = vadd.f32 %v9455_v8, %v10442_v34  ;;  %v9280_v11 = vpop.f32.mrf.mxu0  ;;  %9375 = vmatmul.mubr.msk.bf16.gmra.mxu0 %vm1215_vm2, %v9924_v58  ;;  %9600 = vmatprep.mubr.msk.f32.mxu1 %vm2931_vm3, %v2788_v61  ;;  %v5630_v12 = vsel %vm2931_vm3, %v5330_v5, 0.0  ;;  %v5333_v17 = vmul.f32 %v10453_v45, %v5070_v2  ;;  %v9928_v2 = vld [vmem:[%s10022_s10 + $0x3a8] sm:$0xff]   ;;  %v9929_v8 = vld [vmem:[%s10022_s10 + $0x3b0] sm:$0xff]  }
 0x1d7   : > { %v2789_v15 = vmax.f32 %v2141_v7, 0.0  ;;  %v3896_v16 = vpop.f32.mrf.mxu1  ;;  %5631 = vadd.xlane.f32.xlu0 %v5630_v12  ;;  %9378 = vmatprep.mubr.msk.bf16.mxu0 %vm1215_vm2, %v9925_v1  ;;  %v2162_v31 = vadd.f32 %v10459_v62, %v9280_v11 }
 0x1d8   : > { %v5072_v18 = vmax.f32 %v3902_v10, 0.0  ;;  %v3897_v19 = vadd.f32 %v10442_v34, %v3896_v16  ;;  %v2153_v20 = vpop.f32.mrf.mxu0  ;;  %v5332_v22 = vmul.f32 %v10453_v45, %v5069_v9  ;;  %v5639_v35 = vsel %vm2931_vm3, %v5333_v17, 0.0 }
 0x1d9   : > { %v2154_v23 = vadd.f32 %v10459_v62, %v2153_v20  ;;  %v9458_v24 = vpop.f32.mrf.mxu1  ;;  %9601 = vmatmul.mubr.msk.f32.gmra.mxu1 %vm2931_vm3, %v2789_v15  ;;  %5634 = vadd.xlane.f32.xlu1 %v5633_v21  ;;  %v2794_v49 = vmax.f32 %v2162_v31, 0.0 }
 0x1da   : > { %v5071_v25 = vmax.f32 %v3897_v19, 0.0  ;;  %v3912_v26 = vadd.f32 %v9458_v24, %v10442_v34  ;;  %v9281_v27 = vpop.f32.mrf.mxu0  ;;  %9603 = vmatprep.mubr.msk.f32.mxu1 %vm2931_vm3, %v2790_v13  ;;  %v5636_v28 = vsel %vm2931_vm3, %v5332_v22, 0.0  ;;  %v5335_v41 = vmul.f32 %v10453_v45, %v5072_v18 }
 0x1db   : > { %v2792_v32 = vmax.f32 %v2154_v23, 0.0  ;;  %v3906_v33 = vpop.f32.mrf.mxu1  ;;  %5637 = vadd.xlane.f32.xlu0 %v5636_v28  ;;  %v2165_v50 = vadd.f32 %v10459_v62, %v9281_v27 }
 0x1dc   : > { %v5074_v37 = vmax.f32 %v3912_v26, 0.0  ;;  %v3907_v38 = vadd.f32 %v10442_v34, %v3906_v33  ;;  %v2156_v39 = vpop.f32.mrf.mxu0  ;;  %v5334_v40 = vmul.f32 %v10453_v45, %v5071_v25  ;;  %v5645_v57 = vsel %vm2931_vm3, %v5335_v41, 0.0 }
 0x1dd   : > { %v2157_v42 = vadd.f32 %v10459_v62, %v2156_v39  ;;  %v9461_v43 = vpop.f32.mrf.mxu1  ;;  %9604 = vmatmul.mubr.msk.f32.gmra.mxu1 %vm2931_vm3, %v2791_v30  ;;  %5640 = vadd.xlane.f32.xlu1 %v5639_v35  ;;  %v2795_v3 = vmax.f32 %v2165_v50, 0.0 }
 0x1de   : > { %v5073_v44 = vmax.f32 %v3907_v38, 0.0  ;;  %v3922_v46 = vadd.f32 %v9461_v43, %v10442_v34  ;;  %v9284_v47 = vpop.f32.mrf.mxu0  ;;  %9379 = vmatmul.mubr.msk.bf16.gmra.mxu0 %vm1215_vm2, %v9926_v29  ;;  %9606 = vmatprep.mubr.msk.f32.mxu1 %vm2931_vm3, %v2792_v32  ;;  %v5642_v48 = vsel %vm2931_vm3, %v5334_v40, 0.0  ;;  %v5337_v53 = vmul.f32 %v10453_v45, %v5074_v37  ;;  %v9930_v37 = vld [vmem:[%s10022_s10 + $0x3b8] sm:$0xff]   ;;  %v9931_v43 = vld [vmem:[%s10022_s10 + $0x3c0] sm:$0xff]  }
 0x1df   : > { %v2793_v51 = vmax.f32 %v2157_v42, 0.0  ;;  %v3916_v52 = vpop.f32.mrf.mxu1  ;;  %5643 = vadd.xlane.f32.xlu0 %v5642_v48  ;;  %9382 = vmatprep.mubr.msk.bf16.mxu0 %vm1215_vm2, %v9927_v36  ;;  %v2178_v4 = vadd.f32 %v10459_v62, %v9284_v47 }
 0x1e0   : > { %v5076_v54 = vmax.f32 %v3922_v46, 0.0  ;;  %v3917_v55 = vadd.f32 %v10442_v34, %v3916_v52  ;;  %v2169_v56 = vpop.f32.mrf.mxu0  ;;  %v5336_v58 = vmul.f32 %v10453_v45, %v5073_v44  ;;  %v5651_v7 = vsel %vm2931_vm3, %v5337_v53, 0.0 }
 0x1e1   : > { %v2170_v59 = vadd.f32 %v10459_v62, %v2169_v56  ;;  %v9464_v60 = vpop.f32.mrf.mxu1  ;;  %9607 = vmatmul.mubr.msk.f32.gmra.mxu1 %vm2931_vm3, %v2793_v51  ;;  %5646 = vadd.xlane.f32.xlu1 %v5645_v57  ;;  %v2798_v20 = vmax.f32 %v2178_v4, 0.0 }
 0x1e2   : > { %v5075_v61 = vmax.f32 %v3917_v55, 0.0  ;;  %v3932_v63 = vadd.f32 %v9464_v60, %v10442_v34  ;;  %v9285_v0 = vpop.f32.mrf.mxu0  ;;  %9609 = vmatprep.mubr.msk.f32.mxu1 %vm2931_vm3, %v2794_v49  ;;  %v5648_v1 = vsel %vm2931_vm3, %v5336_v58, 0.0  ;;  %v5339_v13 = vmul.f32 %v10453_v45, %v5076_v54 }
 0x1e3   : > { %v2796_v5 = vmax.f32 %v2170_v59, 0.0  ;;  %v3926_v6 = vpop.f32.mrf.mxu1  ;;  %5649 = vadd.xlane.f32.xlu0 %v5648_v1  ;;  %v2181_v21 = vadd.f32 %v10459_v62, %v9285_v0 }
 0x1e4   : > { %v5078_v9 = vmax.f32 %v3932_v63, 0.0  ;;  %v3927_v10 = vadd.f32 %v10442_v34, %v3926_v6  ;;  %v2172_v11 = vpop.f32.mrf.mxu0  ;;  %v5338_v12 = vmul.f32 %v10453_v45, %v5075_v61  ;;  %v5657_v28 = vsel %vm2931_vm3, %v5339_v13, 0.0 }
 0x1e5   : > { %v2173_v14 = vadd.f32 %v10459_v62, %v2172_v11  ;;  %v9467_v15 = vpop.f32.mrf.mxu1  ;;  %9610 = vmatmul.mubr.msk.f32.gmra.mxu1 %vm2931_vm3, %v2795_v3  ;;  %5652 = vadd.xlane.f32.xlu1 %v5651_v7  ;;  %v2799_v38 = vmax.f32 %v2181_v21, 0.0 }
 0x1e6   : > { %v5077_v16 = vmax.f32 %v3927_v10, 0.0  ;;  %v3942_v17 = vadd.f32 %v9467_v15, %v10442_v34  ;;  %v9288_v18 = vpop.f32.mrf.mxu0  ;;  %9383 = vmatmul.mubr.msk.bf16.gmra.mxu0 %vm1215_vm2, %v9928_v2  ;;  %9612 = vmatprep.mubr.msk.f32.mxu1 %vm2931_vm3, %v2796_v5  ;;  %v5654_v19 = vsel %vm2931_vm3, %v5338_v12, 0.0  ;;  %v5341_v24 = vmul.f32 %v10453_v45, %v5078_v9  ;;  %v9932_v9 = vld [vmem:[%s10022_s10 + $0x3c8] sm:$0xff]   ;;  %v9933_v15 = vld [vmem:[%s10022_s10 + $0x3d0] sm:$0xff]  }
 0x1e7   : > { %v2797_v22 = vmax.f32 %v2173_v14, 0.0  ;;  %v3936_v23 = vpop.f32.mrf.mxu1  ;;  %5655 = vadd.xlane.f32.xlu0 %v5654_v19  ;;  %9386 = vmatprep.mubr.msk.bf16.mxu0 %vm1215_vm2, %v9929_v8  ;;  %v2194_v39 = vadd.f32 %v10459_v62, %v9288_v18 }
 0x1e8   : > { %v5080_v25 = vmax.f32 %v3942_v17, 0.0  ;;  %v3937_v26 = vadd.f32 %v10442_v34, %v3936_v23  ;;  %v2185_v27 = vpop.f32.mrf.mxu0  ;;  %v5340_v29 = vmul.f32 %v10453_v45, %v5077_v16  ;;  %v5663_v42 = vsel %vm2931_vm3, %v5341_v24, 0.0 }
 0x1e9   : > { %v2186_v30 = vadd.f32 %v10459_v62, %v2185_v27  ;;  %v9470_v31 = vpop.f32.mrf.mxu1  ;;  %9613 = vmatmul.mubr.msk.f32.gmra.mxu1 %vm2931_vm3, %v2797_v22  ;;  %5658 = vadd.xlane.f32.xlu1 %v5657_v28  ;;  %v2802_v56 = vmax.f32 %v2194_v39, 0.0 }
 0x1ea   : > { %v5079_v32 = vmax.f32 %v3937_v26, 0.0  ;;  %v3952_v33 = vadd.f32 %v9470_v31, %v10442_v34  ;;  %v9289_v35 = vpop.f32.mrf.mxu0  ;;  %9615 = vmatprep.mubr.msk.f32.mxu1 %vm2931_vm3, %v2798_v20  ;;  %v5660_v36 = vsel %vm2931_vm3, %v5340_v29, 0.0  ;;  %v5343_v49 = vmul.f32 %v10453_v45, %v5080_v25 }
 0x1eb   : > { %v2800_v40 = vmax.f32 %v2186_v30, 0.0  ;;  %v3946_v41 = vpop.f32.mrf.mxu1  ;;  %5661 = vadd.xlane.f32.xlu0 %v5660_v36  ;;  %v2197_v57 = vadd.f32 %v10459_v62, %v9289_v35 }
 0x1ec   : > { %v5082_v44 = vmax.f32 %v3952_v33, 0.0  ;;  %v3947_v46 = vadd.f32 %v10442_v34, %v3946_v41  ;;  %v2188_v47 = vpop.f32.mrf.mxu0  ;;  %v5342_v48 = vmul.f32 %v10453_v45, %v5079_v32  ;;  %v5669_v1 = vsel %vm2931_vm3, %v5343_v49, 0.0 }
 0x1ed   : > { %v2189_v50 = vadd.f32 %v10459_v62, %v2188_v47  ;;  %v9473_v51 = vpop.f32.mrf.mxu1  ;;  %9616 = vmatmul.mubr.msk.f32.gmra.mxu1 %vm2931_vm3, %v2799_v38  ;;  %5664 = vadd.xlane.f32.xlu1 %v5663_v42  ;;  %v2803_v10 = vmax.f32 %v2197_v57, 0.0 }
 0x1ee   : > { %v5081_v52 = vmax.f32 %v3947_v46, 0.0  ;;  %v3962_v53 = vadd.f32 %v9473_v51, %v10442_v34  ;;  %v9292_v54 = vpop.f32.mrf.mxu0  ;;  %9387 = vmatmul.mubr.msk.bf16.gmra.mxu0 %vm1215_vm2, %v9930_v37  ;;  %9618 = vmatprep.mubr.msk.f32.mxu1 %vm2931_vm3, %v2800_v40  ;;  %v5666_v55 = vsel %vm2931_vm3, %v5342_v48, 0.0  ;;  %v5345_v60 = vmul.f32 %v10453_v45, %v5082_v44  ;;  %v9934_v44 = vld [vmem:[%s10022_s10 + $0x3d8] sm:$0xff]   ;;  %v9935_v51 = vld [vmem:[%s10022_s10 + $0x3e0] sm:$0xff]  }
 0x1ef   : > { %v2801_v58 = vmax.f32 %v2189_v50, 0.0  ;;  %v3956_v59 = vpop.f32.mrf.mxu1  ;;  %5667 = vadd.xlane.f32.xlu0 %v5666_v55  ;;  %9390 = vmatprep.mubr.msk.bf16.mxu0 %vm1215_vm2, %v9931_v43  ;;  %v2210_v11 = vadd.f32 %v10459_v62, %v9292_v54 }
 0x1f0   : > { %v5084_v61 = vmax.f32 %v3962_v53, 0.0  ;;  %v3957_v63 = vadd.f32 %v10442_v34, %v3956_v59  ;;  %v2201_v0 = vpop.f32.mrf.mxu0  ;;  %v5344_v2 = vmul.f32 %v10453_v45, %v5081_v52  ;;  %v5675_v14 = vsel %vm2931_vm3, %v5345_v60, 0.0 }
 0x1f1   : > { %v2202_v3 = vadd.f32 %v10459_v62, %v2201_v0  ;;  %v9476_v4 = vpop.f32.mrf.mxu1  ;;  %9619 = vmatmul.mubr.msk.f32.gmra.mxu1 %vm2931_vm3, %v2801_v58  ;;  %5670 = vadd.xlane.f32.xlu1 %v5669_v1  ;;  %v2806_v27 = vmax.f32 %v2210_v11, 0.0 }
 0x1f2   : > { %v5083_v5 = vmax.f32 %v3957_v63, 0.0  ;;  %v3972_v6 = vadd.f32 %v9476_v4, %v10442_v34  ;;  %v9293_v7 = vpop.f32.mrf.mxu0  ;;  %9621 = vmatprep.mubr.msk.f32.mxu1 %vm2931_vm3, %v2802_v56  ;;  %v5672_v8 = vsel %vm2931_vm3, %v5344_v2, 0.0  ;;  %v5347_v20 = vmul.f32 %v10453_v45, %v5084_v61 }
 0x1f3   : > { %v2804_v12 = vmax.f32 %v2202_v3, 0.0  ;;  %v3966_v13 = vpop.f32.mrf.mxu1  ;;  %5673 = vadd.xlane.f32.xlu0 %v5672_v8  ;;  %v2213_v28 = vadd.f32 %v10459_v62, %v9293_v7 }
 0x1f4   : > { %v5086_v16 = vmax.f32 %v3972_v6, 0.0  ;;  %v3967_v17 = vadd.f32 %v10442_v34, %v3966_v13  ;;  %v2204_v18 = vpop.f32.mrf.mxu0  ;;  %v5346_v19 = vmul.f32 %v10453_v45, %v5083_v5  ;;  %v5681_v36 = vsel %vm2931_vm3, %v5347_v20, 0.0 }
 0x1f5   : > { %v2205_v21 = vadd.f32 %v10459_v62, %v2204_v18  ;;  %v9479_v22 = vpop.f32.mrf.mxu1  ;;  %9622 = vmatmul.mubr.msk.f32.gmra.mxu1 %vm2931_vm3, %v2803_v10  ;;  %5676 = vadd.xlane.f32.xlu1 %v5675_v14  ;;  %v2807_v46 = vmax.f32 %v2213_v28, 0.0 }
 0x1f6   : > { %v5085_v23 = vmax.f32 %v3967_v17, 0.0  ;;  %v3982_v24 = vadd.f32 %v9479_v22, %v10442_v34  ;;  %v9296_v25 = vpop.f32.mrf.mxu0  ;;  %9391 = vmatmul.mubr.msk.bf16.gmra.mxu0 %vm1215_vm2, %v9932_v9  ;;  %9624 = vmatprep.mubr.msk.f32.mxu1 %vm2931_vm3, %v2804_v12  ;;  %v5678_v26 = vsel %vm2931_vm3, %v5346_v19, 0.0  ;;  %v5349_v31 = vmul.f32 %v10453_v45, %v5086_v16  ;;  %v9936_v16 = vld [vmem:[%s10022_s10 + $0x3e8] sm:$0xff]  }
 0x1f7   : > { %v2805_v29 = vmax.f32 %v2205_v21, 0.0  ;;  %v3976_v30 = vpop.f32.mrf.mxu1  ;;  %5679 = vadd.xlane.f32.xlu0 %v5678_v26  ;;  %9394 = vmatprep.mubr.msk.bf16.mxu0 %vm1215_vm2, %v9933_v15  ;;  %v2226_v47 = vadd.f32 %v10459_v62, %v9296_v25  ;;  %v9937_v21 = vld [vmem:[%s10022_s10 + $0x3f0] sm:$0xff]   ;;  %v10760_v25 = vld [vmem:[%s13308_s5] ss:$0 sm:$0xff] }
 0x1f8   : > { %v5088_v32 = vmax.f32 %v3982_v24, 0.0  ;;  %v3977_v33 = vadd.f32 %v10442_v34, %v3976_v30  ;;  %v2217_v35 = vpop.f32.mrf.mxu0  ;;  %v5348_v37 = vmul.f32 %v10453_v45, %v5085_v23  ;;  %v5687_v50 = vsel %vm2931_vm3, %v5349_v31, 0.0 }
 0x1f9   : > { %v2218_v38 = vadd.f32 %v10459_v62, %v2217_v35  ;;  %v9482_v39 = vpop.f32.mrf.mxu1  ;;  %9625 = vmatmul.mubr.msk.f32.gmra.mxu1 %vm2931_vm3, %v2805_v29  ;;  %5682 = vadd.xlane.f32.xlu1 %v5681_v36  ;;  %v2810_v0 = vmax.f32 %v2226_v47, 0.0 }
 0x1fa   : > { %v5087_v40 = vmax.f32 %v3977_v33, 0.0  ;;  %v3992_v41 = vadd.f32 %v9482_v39, %v10442_v34  ;;  %v9297_v42 = vpop.f32.mrf.mxu0  ;;  %9627 = vmatprep.mubr.msk.f32.mxu1 %vm2931_vm3, %v2806_v27  ;;  %v5684_v43 = vsel %vm2931_vm3, %v5348_v37, 0.0  ;;  %v5351_v56 = vmul.f32 %v10453_v45, %v5088_v32 }
 0x1fb   : > { %v2808_v48 = vmax.f32 %v2218_v38, 0.0  ;;  %v3986_v49 = vpop.f32.mrf.mxu1  ;;  %5685 = vadd.xlane.f32.xlu0 %v5684_v43  ;;  %v2229_v1 = vadd.f32 %v10459_v62, %v9297_v42 }
 0x1fc   : > { %v5090_v52 = vmax.f32 %v3992_v41, 0.0  ;;  %v3987_v53 = vadd.f32 %v10442_v34, %v3986_v49  ;;  %v2220_v54 = vpop.f32.mrf.mxu0  ;;  %v5350_v55 = vmul.f32 %v10453_v45, %v5087_v40  ;;  %v5693_v8 = vsel %vm2931_vm3, %v5351_v56, 0.0 }
 0x1fd   : > { %v2221_v57 = vadd.f32 %v10459_v62, %v2220_v54  ;;  %v9485_v58 = vpop.f32.mrf.mxu1  ;;  %9628 = vmatmul.mubr.msk.f32.gmra.mxu1 %vm2931_vm3, %v2807_v46  ;;  %5688 = vadd.xlane.f32.xlu1 %v5687_v50  ;;  %v2811_v17 = vmax.f32 %v2229_v1, 0.0 }
 0x1fe   : > { %v5089_v59 = vmax.f32 %v3987_v53, 0.0  ;;  %v4002_v60 = vadd.f32 %v9485_v58, %v10442_v34  ;;  %v9300_v61 = vpop.f32.mrf.mxu0  ;;  %9395 = vmatmul.mubr.msk.bf16.gmra.mxu0 %vm1215_vm2, %v9934_v44  ;;  %9630 = vmatprep.mubr.msk.f32.mxu1 %vm2931_vm3, %v2808_v48  ;;  %v5690_v63 = vsel %vm2931_vm3, %v5350_v55, 0.0  ;;  %v5353_v4 = vmul.f32 %v10453_v45, %v5090_v52  ;;  %v10737_v34 = vld [vmem:[%s13307_s4] ss:$0 sm:$0xff]  ;;  %v9938_v52 = vld [vmem:[%s10022_s10 + $0x3f8] sm:$0xff]  }
 0x1ff   : > { %v2809_v2 = vmax.f32 %v2221_v57, 0.0  ;;  %v3996_v3 = vpop.f32.mrf.mxu1  ;;  %5691 = vadd.xlane.f32.xlu0 %v5690_v63  ;;  %9398 = vmatprep.mubr.msk.bf16.mxu0 %vm1215_vm2, %v9935_v51 }
 0x200   : > { %v5092_v5 = vmax.f32 %v4002_v60, 0.0  ;;  %v3997_v6 = vadd.f32 %v10737_v34, %v3996_v3  ;;  %v2233_v7 = vpop.f32.mrf.mxu0  ;;  %v5352_v9 = vmul.f32 %v10453_v45, %v5089_v59  ;;  %v10751_v45 = vld [vmem:[%s13305_s2] ss:$0 sm:$0xff]  ;;  %v5699_v20 = vsel %vm2931_vm3, %v5353_v4, 0.0 }
 0x201   : > { %v2234_v10 = vadd.f32 %v10459_v62, %v2233_v7  ;;  %v9488_v11 = vpop.f32.mrf.mxu1  ;;  %9631 = vmatmul.mubr.msk.f32.gmra.mxu1 %vm2931_vm3, %v2809_v2  ;;  %5694 = vadd.xlane.f32.xlu1 %v5693_v8  ;;  %v2242_v62 = vadd.f32 %v10751_v45, %v9300_v61 }
 0x202   : > { %v5091_v12 = vmax.f32 %v3997_v6, 0.0  ;;  %v4012_v13 = vadd.f32 %v10737_v34, %v9488_v11  ;;  %v9301_v14 = vpop.f32.mrf.mxu0  ;;  %9633 = vmatprep.mubr.msk.f32.mxu1 %vm2931_vm3, %v2810_v0  ;;  %v5696_v15 = vsel %vm2931_vm3, %v5352_v9, 0.0  ;;  %v5355_v27 = vmul.f32 %v10760_v25, %v5092_v5 }
 0x203   : > { %v2812_v18 = vmax.f32 %v2234_v10, 0.0  ;;  %v4006_v19 = vpop.f32.mrf.mxu1  ;;  %5697 = vadd.xlane.f32.xlu0 %v5696_v15  ;;  %v2814_v35 = vmax.f32 %v2242_v62, 0.0  ;;  %v2245_v36 = vadd.f32 %v10751_v45, %v9301_v14 }
 0x204   : > { %v5094_v22 = vmax.f32 %v4012_v13, 0.0  ;;  %v4007_v23 = vadd.f32 %v10737_v34, %v4006_v19  ;;  %v2236_v24 = vpop.f32.mrf.mxu0  ;;  %v5354_v26 = vmul.f32 %v10760_v25, %v5091_v12  ;;  %v5705_v43 = vsel %vm2931_vm3, %v5355_v27, 0.0 }
 0x205   : > { %v2237_v28 = vadd.f32 %v10751_v45, %v2236_v24  ;;  %v9491_v29 = vpop.f32.mrf.mxu1  ;;  %9634 = vmatmul.mubr.msk.f32.gmra.mxu1 %vm2931_vm3, %v2811_v17  ;;  %5700 = vadd.xlane.f32.xlu1 %v5699_v20  ;;  %v2815_v53 = vmax.f32 %v2245_v36, 0.0 }
 0x206   : > { %v5093_v30 = vmax.f32 %v4007_v23, 0.0  ;;  %v4022_v31 = vadd.f32 %v10737_v34, %v9491_v29  ;;  %v9304_v32 = vpop.f32.mrf.mxu0  ;;  %9399 = vmatmul.mubr.msk.bf16.gmra.mxu0 %vm1215_vm2, %v9936_v16  ;;  %9636 = vmatprep.mubr.msk.f32.mxu1 %vm2931_vm3, %v2812_v18  ;;  %v5702_v33 = vsel %vm2931_vm3, %v5354_v26, 0.0  ;;  %v5357_v39 = vmul.f32 %v10760_v25, %v5094_v22 }
 0x207   : > { %v2813_v37 = vmax.f32 %v2237_v28, 0.0  ;;  %v4016_v38 = vpop.f32.mrf.mxu1  ;;  %5703 = vadd.xlane.f32.xlu0 %v5702_v33  ;;  %9402 = vmatprep.mubr.msk.bf16.mxu0 %vm1215_vm2, %v9937_v21  ;;  %v2258_v54 = vadd.f32 %v10751_v45, %v9304_v32 }
 0x208   : > { %v5096_v40 = vmax.f32 %v4022_v31, 0.0  ;;  %v4017_v41 = vadd.f32 %v10737_v34, %v4016_v38  ;;  %v2249_v42 = vpop.f32.mrf.mxu0  ;;  %v5356_v44 = vmul.f32 %v10760_v25, %v5093_v30  ;;  %v5711_v57 = vsel %vm2931_vm3, %v5357_v39, 0.0 }
 0x209   : > { %v2250_v46 = vadd.f32 %v10751_v45, %v2249_v42  ;;  %v9494_v47 = vpop.f32.mrf.mxu1  ;;  %9637 = vmatmul.mubr.msk.f32.gmra.mxu1 %vm2931_vm3, %v2813_v37  ;;  %5706 = vadd.xlane.f32.xlu1 %v5705_v43  ;;  %v2818_v6 = vmax.f32 %v2258_v54, 0.0 }
 0x20a   : > { %v5095_v48 = vmax.f32 %v4017_v41, 0.0  ;;  %v4032_v49 = vadd.f32 %v10737_v34, %v9494_v47  ;;  %v9305_v50 = vpop.f32.mrf.mxu0  ;;  %9639 = vmatprep.mubr.msk.f32.mxu1 %vm2931_vm3, %v2814_v35  ;;  %v5708_v51 = vsel %vm2931_vm3, %v5356_v44, 0.0  ;;  %v5359_v63 = vmul.f32 %v10760_v25, %v5096_v40 }
 0x20b   : > { %v2816_v55 = vmax.f32 %v2250_v46, 0.0  ;;  %v4026_v56 = vpop.f32.mrf.mxu1  ;;  %5709 = vadd.xlane.f32.xlu0 %v5708_v51  ;;  %v2261_v7 = vadd.f32 %v10751_v45, %v9305_v50 }
 0x20c   : > { %v5098_v58 = vmax.f32 %v4032_v49, 0.0  ;;  %v4027_v59 = vadd.f32 %v10737_v34, %v4026_v56  ;;  %v2252_v60 = vpop.f32.mrf.mxu0  ;;  %v5358_v61 = vmul.f32 %v10760_v25, %v5095_v48  ;;  %v5717_v14 = vsel %vm2931_vm3, %v5359_v63, 0.0 }
 0x20d   : > { %v2253_v0 = vadd.f32 %v10751_v45, %v2252_v60  ;;  %v9497_v1 = vpop.f32.mrf.mxu1  ;;  %9640 = vmatmul.mubr.msk.f32.gmra.mxu1 %vm2931_vm3, %v2815_v53  ;;  %5712 = vadd.xlane.f32.xlu1 %v5711_v57  ;;  %v2819_v21 = vmax.f32 %v2261_v7, 0.0 }
 0x20e   : > { %v5097_v2 = vmax.f32 %v4027_v59, 0.0  ;;  %v4042_v3 = vadd.f32 %v10737_v34, %v9497_v1  ;;  %v9308_v4 = vpop.f32.mrf.mxu0  ;;  %9403 = vmatmul.mubr.msk.bf16.gmra.mxu0 %vm1215_vm2, %v9938_v52  ;;  %9642 = vmatprep.mubr.msk.f32.mxu1 %vm2931_vm3, %v2816_v55  ;;  %v5714_v5 = vsel %vm2931_vm3, %v5358_v61, 0.0  ;;  %v5361_v10 = vmul.f32 %v10760_v25, %v5098_v58 }
 0x20f   : > { %v2817_v8 = vmax.f32 %v2253_v0, 0.0  ;;  %v4036_v9 = vpop.f32.mrf.mxu1  ;;  %5715 = vadd.xlane.f32.xlu0 %v5714_v5  ;;  %v2274_v22 = vadd.f32 %v10751_v45, %v9308_v4  ;;  %vm13334_vm2 = vcmask 1048512  }
 0x210   : > { %v5100_v11 = vmax.f32 %v4042_v3, 0.0  ;;  %v4037_v12 = vadd.f32 %v10737_v34, %v4036_v9  ;;  %v2265_v13 = vpop.f32.mrf.mxu0  ;;  %v5360_v15 = vmul.f32 %v10760_v25, %v5097_v2  ;;  %v5723_v26 = vsel %vm2931_vm3, %v5361_v10, 0.0 }
 0x211   : > { %v2266_v16 = vadd.f32 %v10751_v45, %v2265_v13  ;;  %v9500_v17 = vpop.f32.mrf.mxu1  ;;  %9643 = vmatmul.mubr.msk.f32.gmra.mxu1 %vm2931_vm3, %v2817_v8  ;;  %5718 = vadd.xlane.f32.xlu1 %v5717_v14  ;;  %v2822_v39 = vmax.f32 %v2274_v22, 0.0 }
 0x212   : > { %v5099_v62 = vmax.f32 %v4037_v12, 0.0  ;;  %v4052_v18 = vadd.f32 %v10737_v34, %v9500_v17  ;;  %v9309_v19 = vpop.f32.mrf.mxu0  ;;  %9645 = vmatprep.mubr.msk.f32.mxu1 %vm2931_vm3, %v2818_v6  ;;  %v5720_v20 = vsel %vm2931_vm3, %v5360_v15, 0.0  ;;  %v5363_v31 = vmul.f32 %v10760_v25, %v5100_v11 }
 0x213   : > { %v2820_v23 = vmax.f32 %v2266_v16, 0.0  ;;  %v4046_v24 = vpop.f32.mrf.mxu1  ;;  %5721 = vadd.xlane.f32.xlu0 %v5720_v20  ;;  %v2277_v40 = vadd.f32 %v10751_v45, %v9309_v19 }
 0x214   : > { %v5102_v27 = vmax.f32 %v4052_v18, 0.0  ;;  %v4047_v28 = vadd.f32 %v10737_v34, %v4046_v24  ;;  %v2268_v29 = vpop.f32.mrf.mxu0  ;;  %v5362_v30 = vmul.f32 %v10760_v25, %v5099_v62  ;;  %v5729_v48 = vsel %vm2931_vm3, %v5363_v31, 0.0 }
 0x215   : > { %v2269_v32 = vadd.f32 %v10751_v45, %v2268_v29  ;;  %v9503_v33 = vpop.f32.mrf.mxu1  ;;  %9646 = vmatmul.mubr.msk.f32.gmra.mxu1 %vm2931_vm3, %v2819_v21  ;;  %5724 = vadd.xlane.f32.xlu1 %v5723_v26  ;;  %v2823_v56 = vmax.f32 %v2277_v40, 0.0 }
 0x216   : > { %v5101_v35 = vmax.f32 %v4047_v28, 0.0  ;;  %v4062_v36 = vadd.f32 %v10737_v34, %v9503_v33  ;;  %v9312_v37 = vpop.f32.mrf.mxu0  ;;  %9648 = vmatprep.mubr.msk.f32.mxu1 %vm2931_vm3, %v2820_v23  ;;  %v5726_v38 = vsel %vm2931_vm3, %v5362_v30, 0.0  ;;  %v5365_v43 = vmul.f32 %v10760_v25, %v5102_v27 }
 0x217   : > { %v2821_v41 = vmax.f32 %v2269_v32, 0.0  ;;  %v4056_v42 = vpop.f32.mrf.mxu1  ;;  %5727 = vadd.xlane.f32.xlu0 %v5726_v38  ;;  %v2290_v57 = vadd.f32 %v10751_v45, %v9312_v37  ;;  %v6854_v38 = vlaneseq }
 0x218   : > { %v5104_v44 = vmax.f32 %v4062_v36, 0.0  ;;  %v4057_v46 = vadd.f32 %v10737_v34, %v4056_v42  ;;  %v2281_v47 = vpop.f32.mrf.mxu0  ;;  %v5364_v49 = vmul.f32 %v10760_v25, %v5101_v35  ;;  %v5735_v60 = vsel %vm2931_vm3, %v5365_v43, 0.0 }
 0x219   : > { %v2282_v50 = vadd.f32 %v10751_v45, %v2281_v47  ;;  %v9506_v51 = vpop.f32.mrf.mxu1  ;;  %9649 = vmatmul.mubr.msk.f32.gmra.mxu1 %vm2931_vm3, %v2821_v41  ;;  %5730 = vadd.xlane.f32.xlu1 %v5729_v48  ;;  %v2826_v9 = vmax.f32 %v2290_v57, 0.0 }
 0x21a   : > { %v5103_v52 = vmax.f32 %v4057_v46, 0.0  ;;  %v4072_v53 = vadd.f32 %v10737_v34, %v9506_v51  ;;  %v9313_v54 = vpop.f32.mrf.mxu0  ;;  %9651 = vmatprep.mubr.msk.f32.mxu1 %vm2931_vm3, %v2822_v39  ;;  %v5732_v55 = vsel %vm2931_vm3, %v5364_v49, 0.0  ;;  %v5367_v2 = vmul.f32 %v10760_v25, %v5104_v44 }
 0x21b   : > { %v2824_v58 = vmax.f32 %v2282_v50, 0.0  ;;  %v4066_v59 = vpop.f32.mrf.mxu1  ;;  %5733 = vadd.xlane.f32.xlu0 %v5732_v55  ;;  %v2293_v10 = vadd.f32 %v10751_v45, %v9313_v54 }
 0x21c   : > { %v5106_v61 = vmax.f32 %v4072_v53, 0.0  ;;  %v4067_v63 = vadd.f32 %v10737_v34, %v4066_v59  ;;  %v2284_v0 = vpop.f32.mrf.mxu0  ;;  %v5366_v1 = vmul.f32 %v10760_v25, %v5103_v52  ;;  %v5741_v17 = vsel %vm2931_vm3, %v5367_v2, 0.0 }
 0x21d   : > { %v2285_v3 = vadd.f32 %v10751_v45, %v2284_v0  ;;  %v9509_v4 = vpop.f32.mrf.mxu1  ;;  %9652 = vmatmul.mubr.msk.f32.gmra.mxu1 %vm2931_vm3, %v2823_v56  ;;  %5736 = vadd.xlane.f32.xlu1 %v5735_v60  ;;  %v2827_v24 = vmax.f32 %v2293_v10, 0.0  ;;  %v10860_v56 = vand.u32 127, %v6854_v38  ;;  %v10872_v10 = vshrl.u32 %v6854_v38, 7 }
 0x21e   : > { %v5105_v5 = vmax.f32 %v4067_v63, 0.0  ;;  %v4082_v6 = vadd.f32 %v10737_v34, %v9509_v4  ;;  %v9316_v7 = vpop.f32.mrf.mxu0  ;;  %9654 = vmatprep.mubr.msk.f32.mxu1 %vm2931_vm3, %v2824_v58  ;;  %v5738_v8 = vsel %vm2931_vm3, %v5366_v1, 0.0  ;;  %v5369_v13 = vmul.f32 %v10760_v25, %v5106_v61 }
 0x21f   : > { %v2825_v11 = vmax.f32 %v2285_v3, 0.0  ;;  %v4076_v12 = vpop.f32.mrf.mxu1  ;;  %5739 = vadd.xlane.f32.xlu0 %v5738_v8  ;;  %v2306_v26 = vadd.f32 %v10751_v45, %v9316_v7 }
 0x220   : > { %v5108_v14 = vmax.f32 %v4082_v6, 0.0  ;;  %v4077_v15 = vadd.f32 %v10737_v34, %v4076_v12  ;;  %v2297_v16 = vpop.f32.mrf.mxu0  ;;  %v5368_v62 = vmul.f32 %v10760_v25, %v5105_v5  ;;  %v5747_v29 = vsel %vm2931_vm3, %v5369_v13, 0.0 }
 0x221   : > { %v2298_v18 = vadd.f32 %v10751_v45, %v2297_v16  ;;  %v9512_v19 = vpop.f32.mrf.mxu1  ;;  %9655 = vmatmul.mubr.msk.f32.gmra.mxu1 %vm2931_vm3, %v2825_v11  ;;  %5742 = vadd.xlane.f32.xlu1 %v5741_v17  ;;  %v2830_v43 = vmax.f32 %v2306_v26, 0.0  ;;  %v6860_v11 = vadd.s32 4294967288, %v10860_v56 }
 0x222   : > { %v5107_v20 = vmax.f32 %v4077_v15, 0.0  ;;  %v4092_v21 = vadd.f32 %v10737_v34, %v9512_v19  ;;  %v9317_v22 = vpop.f32.mrf.mxu0  ;;  %9657 = vmatprep.mubr.msk.f32.mxu1 %vm2931_vm3, %v2826_v9  ;;  %v5744_v23 = vsel %vm2931_vm3, %v5368_v62, 0.0  ;;  %v5371_v35 = vmul.f32 %v10760_v25, %v5108_v14 }
 0x223   : > { %v2828_v27 = vmax.f32 %v2298_v18, 0.0  ;;  %v4086_v28 = vpop.f32.mrf.mxu1  ;;  %5745 = vadd.xlane.f32.xlu0 %v5744_v23  ;;  %v2309_v44 = vadd.f32 %v10751_v45, %v9317_v22 }
 0x224   : > { %v5110_v30 = vmax.f32 %v4092_v21, 0.0  ;;  %v4087_v31 = vadd.f32 %v10737_v34, %v4086_v28  ;;  %v2300_v32 = vpop.f32.mrf.mxu0  ;;  %v5370_v33 = vmul.f32 %v10760_v25, %v5107_v20  ;;  %v5753_v52 = vsel %vm2931_vm3, %v5371_v35, 0.0 }
 0x225   : > { %v2301_v36 = vadd.f32 %v10751_v45, %v2300_v32  ;;  %v9515_v37 = vpop.f32.mrf.mxu1  ;;  %9658 = vmatmul.mubr.msk.f32.gmra.mxu1 %vm2931_vm3, %v2827_v24  ;;  %5748 = vadd.xlane.f32.xlu1 %v5747_v29  ;;  %v2831_v61 = vmax.f32 %v2309_v44, 0.0  ;;  %v10882_v24 = vpop.permute.xlu1 %6339  ;;  %v10888_v29 = vsub.s32 %v6860_v11, %v10872_v10 }
 0x226   : > { %v5109_v39 = vmax.f32 %v4087_v31, 0.0  ;;  %v4102_v40 = vadd.f32 %v10737_v34, %v9515_v37  ;;  %v9320_v41 = vpop.f32.mrf.mxu0  ;;  %9660 = vmatprep.mubr.msk.f32.mxu1 %vm2931_vm3, %v2828_v27  ;;  %v5750_v42 = vsel %vm2931_vm3, %v5370_v33, 0.0  ;;  %v5373_v48 = vmul.f32 %v10760_v25, %v5110_v30 }
 0x227   : > { %v2829_v46 = vmax.f32 %v2301_v36, 0.0  ;;  %v4096_v47 = vpop.f32.mrf.mxu1  ;;  %5751 = vadd.xlane.f32.xlu0 %v5750_v42  ;;  %v2322_v63 = vadd.f32 %v10751_v45, %v9320_v41  ;;  %v6874_v30 = vadd.s32 4294967272, %v10860_v56  ;;  %v6867_v37 = vadd.s32 4294967280, %v10860_v56 }
 0x228   : > { %v5112_v49 = vmax.f32 %v4102_v40, 0.0  ;;  %v4097_v50 = vadd.f32 %v10737_v34, %v4096_v47  ;;  %v2313_v51 = vpop.f32.mrf.mxu0  ;;  %v5372_v53 = vmul.f32 %v10760_v25, %v5109_v39  ;;  %v5759_v2 = vsel %vm2931_vm3, %v5373_v48, 0.0 }
 0x229   : > { %v2314_v54 = vadd.f32 %v10751_v45, %v2313_v51  ;;  %v9518_v55 = vpop.f32.mrf.mxu1  ;;  %9661 = vmatmul.mubr.msk.f32.gmra.mxu1 %vm2931_vm3, %v2829_v46  ;;  %5754 = vadd.xlane.f32.xlu1 %v5753_v52  ;;  %v2834_v16 = vmax.f32 %v2322_v63, 0.0  ;;  %v10903_v51 = vsub.s32 %v6874_v30, %v10872_v10  ;;  %v10907_v52 = vsub.s32 %v10860_v56, %v10872_v10 }
 0x22a   : > { %v5111_v57 = vmax.f32 %v4097_v50, 0.0  ;;  %v4112_v58 = vadd.f32 %v10737_v34, %v9518_v55  ;;  %v9321_v59 = vpop.f32.mrf.mxu0  ;;  %9663 = vmatprep.mubr.msk.f32.mxu1 %vm2931_vm3, %v2830_v43  ;;  %v5756_v60 = vsel %vm2931_vm3, %v5372_v53, 0.0  ;;  %v5375_v7 = vmul.f32 %v10760_v25, %v5112_v49 }
 0x22b   : > { %v2832_v0 = vmax.f32 %v2314_v54, 0.0  ;;  %v4106_v1 = vpop.f32.mrf.mxu1  ;;  %5757 = vadd.xlane.f32.xlu0 %v5756_v60  ;;  %v2325_v17 = vadd.f32 %v10751_v45, %v9321_v59  ;;  %13345 = vst [vmem:[#allocation3_spill] sm:$0xff] %v10907_v52  ;;  %v6881_v53 = vadd.s32 4294967264, %v10860_v56 }
 0x22c   : > { %v5114_v3 = vmax.f32 %v4112_v58, 0.0  ;;  %v4107_v4 = vadd.f32 %v10737_v34, %v4106_v1  ;;  %v2316_v5 = vpop.f32.mrf.mxu0  ;;  %v5374_v6 = vmul.f32 %v10760_v25, %v5111_v57  ;;  %v5765_v23 = vsel %vm2931_vm3, %v5375_v7, 0.0 }
 0x22d   : > { %v2317_v8 = vadd.f32 %v10751_v45, %v2316_v5  ;;  %v9521_v9 = vpop.f32.mrf.mxu1  ;;  %9664 = vmatmul.mubr.msk.f32.gmra.mxu1 %vm2931_vm3, %v2831_v61  ;;  %5760 = vadd.xlane.f32.xlu1 %v5759_v2  ;;  %v2835_v38 = vmax.f32 %v2325_v17, 0.0  ;;  %v10917_v1 = vsub.s32 %v6867_v37, %v10872_v10 }
 0x22e   : > { %v5113_v12 = vmax.f32 %v4107_v4, 0.0  ;;  %v4122_v13 = vadd.f32 %v10737_v34, %v9521_v9  ;;  %v9324_v14 = vpop.f32.mrf.mxu0  ;;  %9666 = vmatprep.mubr.msk.f32.mxu1 %vm2931_vm3, %v2832_v0  ;;  %v5762_v15 = vsel %vm2931_vm3, %v5374_v6, 0.0  ;;  %v5377_v19 = vmul.f32 %v10760_v25, %v5114_v3 }
 0x22f   : > { %v2833_v62 = vmax.f32 %v2317_v8, 0.0  ;;  %v4116_v18 = vpop.f32.mrf.mxu1  ;;  %5763 = vadd.xlane.f32.xlu0 %v5762_v15  ;;  %v2338_v39 = vadd.f32 %v10751_v45, %v9324_v14  ;;  %v6895_v14 = vadd.s32 4294967248, %v10860_v56 }
 0x230   : > { %v5116_v20 = vmax.f32 %v4122_v13, 0.0  ;;  %v4117_v21 = vadd.f32 %v10737_v34, %v4116_v18  ;;  %v2329_v22 = vpop.f32.mrf.mxu0  ;;  %v5376_v26 = vmul.f32 %v10760_v25, %v5113_v12  ;;  %v5771_v42 = vsel %vm2931_vm3, %v5377_v19, 0.0 }
 0x231   : > { %v2330_v27 = vadd.f32 %v10751_v45, %v2329_v22  ;;  %v9524_v28 = vpop.f32.mrf.mxu1  ;;  %9667 = vmatmul.mubr.msk.f32.gmra.mxu1 %vm2931_vm3, %v2833_v62  ;;  %5766 = vadd.xlane.f32.xlu1 %v5765_v23  ;;  %v2838_v61 = vmax.f32 %v2338_v39, 0.0  ;;  %v10926_v12 = vsub.s32 %v6881_v53, %v10872_v10  ;;  %v6888_v13 = vadd.s32 4294967256, %v10860_v56 }
 0x232   : > { %v5115_v31 = vmax.f32 %v4117_v21, 0.0  ;;  %v4132_v32 = vadd.f32 %v10737_v34, %v9524_v28  ;;  %v9325_v33 = vpop.f32.mrf.mxu0  ;;  %v5569_v35 = vpop.xlane.xlu0 %5568  ;;  %9669 = vmatprep.mubr.msk.f32.mxu1 %vm2931_vm3, %v2834_v16  ;;  %v5768_v36 = vsel %vm2931_vm3, %v5376_v26, 0.0  ;;  %v5379_v48 = vmul.f32 %v10760_v25, %v5116_v20 }
 0x233   : > { %v2836_v40 = vmax.f32 %v2330_v27, 0.0  ;;  %v4126_v41 = vpop.f32.mrf.mxu1  ;;  %5769 = vadd.xlane.f32.xlu0 %v5768_v36  ;;  %v2341_v54 = vadd.f32 %v10751_v45, %v9325_v33  ;;  %13346 = vst [vmem:[#allocation4_spill] sm:$0xff] %v10926_v12  ;;  %v6343_v16 = vadd.f32 %v10882_v24, %v5569_v35  ;;  %v10943_v37 = vsub.s32 %v6888_v13, %v10872_v10 }
 0x234   : > { %v5118_v43 = vmax.f32 %v4132_v32, 0.0  ;;  %v4127_v44 = vadd.f32 %v10737_v34, %v4126_v41  ;;  %v2332_v46 = vpop.f32.mrf.mxu0  ;;  %v5378_v47 = vmul.f32 %v10760_v25, %v5115_v31  ;;  %v5777_v7 = vsel %vm2931_vm3, %v5379_v48, 0.0 }
 0x235   : > { %v2333_v49 = vadd.f32 %v10751_v45, %v2332_v46  ;;  %v9527_v50 = vpop.f32.mrf.mxu1  ;;  %9670 = vmatmul.mubr.msk.f32.gmra.mxu1 %vm2931_vm3, %v2835_v38  ;;  %5772 = vadd.xlane.f32.xlu1 %v5771_v42  ;;  %v2839_v15 = vmax.f32 %v2341_v54, 0.0  ;;  %13347 = vst [vmem:[#allocation5_spill] sm:$0xff] %v10943_v37  ;;  %v10946_v38 = vsub.s32 %v6895_v14, %v10872_v10 }
 0x236   : > { %v5117_v55 = vmax.f32 %v4127_v44, 0.0  ;;  %v4142_v57 = vadd.f32 %v10737_v34, %v9527_v50  ;;  %v9328_v58 = vpop.f32.mrf.mxu0  ;;  %v10912_v59 = vpop.xlane.xlu1 %5574  ;;  %9672 = vmatprep.mubr.msk.f32.mxu1 %vm2931_vm3, %v2836_v40  ;;  %v5774_v60 = vsel %vm2931_vm3, %v5378_v47, 0.0  ;;  %v5381_v2 = vmul.f32 %v10760_v25, %v5118_v43 }
 0x237   : > { %v2837_v63 = vmax.f32 %v2333_v49, 0.0  ;;  %v4136_v0 = vpop.f32.mrf.mxu1  ;;  %5775 = vadd.xlane.f32.xlu0 %v5774_v60  ;;  %v5566_v4 = vpop.xlane.xlu0 %5565  ;;  %v2354_v20 = vadd.f32 %v10751_v45, %v9328_v58  ;;  %13348 = vst [vmem:[#allocation6_spill] sm:$0xff] %v10946_v38  ;;  %v6902_v44 = vadd.s32 4294967240, %v10860_v56  ;;  %v6909_v50 = vadd.s32 4294967232, %v10860_v56 }
 0x238   : > { %v5120_v3 = vmax.f32 %v4142_v57, 0.0  ;;  %v4137_v5 = vadd.f32 %v10737_v34, %v4136_v0  ;;  %v2345_v6 = vpop.f32.mrf.mxu0  ;;  %v5380_v8 = vmul.f32 %v10760_v25, %v5117_v55  ;;  %v6342_v21 = vadd.f32 %v10882_v24, %v5566_v4 }
 0x239   : > { %v2346_v9 = vadd.f32 %v10751_v45, %v2345_v6  ;;  %v9530_v11 = vpop.f32.mrf.mxu1  ;;  %9673 = vmatmul.mubr.msk.f32.gmra.mxu1 %vm2931_vm3, %v2837_v63  ;;  %5778 = vadd.xlane.f32.xlu1 %v5777_v7  ;;  %v5783_v26 = vsel %vm2931_vm3, %v5381_v2, 0.0  ;;  %v6864_v53 = vrot.slane %v6343_v16, %v10888_v29  ;;  %v2842_v54 = vmax.f32 %v2354_v20, 0.0 }
 0x23a   : > { %v5119_v17 = vmax.f32 %v4137_v5, 0.0  ;;  %v9329_v62 = vpop.f32.mrf.mxu0  ;;  %9675 = vmatprep.mubr.msk.f32.mxu1 %vm2931_vm3, %v2838_v61  ;;  %v5572_v18 = vpop.xlane.xlu1 %5571  ;;  %v5780_v19 = vsel %vm2931_vm3, %v5380_v8, 0.0  ;;  %v5383_v33 = vmul.f32 %v10760_v25, %v5120_v3  ;;  %v4152_v39 = vadd.f32 %v10737_v34, %v9530_v11 }
 0x23b   : > { %v2840_v22 = vmax.f32 %v2346_v9, 0.0  ;;  %v4146_v23 = vpop.f32.mrf.mxu1  ;;  %5781 = vadd.xlane.f32.xlu0 %v5780_v19  ;;  %v6344_v27 = vadd.f32 %v10882_v24, %v5572_v18  ;;  %v6859_v46 = vrot.slane %v6342_v21, %v10907_v52  ;;  %v2357_v47 = vadd.f32 %v10751_v45, %v9329_v62 }
 0x23c   : > { %v4147_v28 = vadd.f32 %v10737_v34, %v4146_v23  ;;  %v2348_v30 = vpop.f32.mrf.mxu0  ;;  %v5578_v31 = vpop.xlane.xlu0 %5577  ;;  %v5382_v32 = vmul.f32 %v10760_v25, %v5119_v17  ;;  %v5789_v60 = vsel %vm2931_vm3, %v5383_v33, 0.0  ;;  %v6345_v61 = vadd.f32 %v10882_v24, %v10912_v59 }
 0x23d   : > { %v2349_v35 = vadd.f32 %v10751_v45, %v2348_v30  ;;  %v9533_v36 = vpop.f32.mrf.mxu1  ;;  %9676 = vmatmul.mubr.msk.f32.gmra.mxu1 %vm2931_vm3, %v2839_v15  ;;  %5784 = vadd.xlane.f32.xlu1 %v5783_v26  ;;  %v6871_v55 = vrot.slane %v6344_v27, %v10917_v1  ;;  %v5122_v3 = vmax.f32 %v4152_v39, 0.0  ;;  %v6346_v4 = vadd.f32 %v10882_v24, %v5578_v31 }
 0x23e   : > { %v5121_v40 = vmax.f32 %v4147_v28, 0.0  ;;  %v9332_v41 = vpop.f32.mrf.mxu0  ;;  %9678 = vmatprep.mubr.msk.f32.mxu1 %vm2931_vm3, %v2840_v22  ;;  %v5581_v42 = vpop.xlane.xlu1 %5580  ;;  %v5786_v43 = vsel %vm2931_vm3, %v5382_v32, 0.0  ;;  %v10966_v6 = vsub.s32 %v6902_v44, %v10872_v10  ;;  %v6866_v8 = vsel %vm6865_vm4, %v6864_v53, %v6859_v46 }
 0x23f   : > { %v2841_v48 = vmax.f32 %v2349_v35, 0.0  ;;  %v4156_v49 = vpop.f32.mrf.mxu1  ;;  %5787 = vadd.xlane.f32.xlu0 %v5786_v43  ;;  %v2843_v9 = vmax.f32 %v2357_v47, 0.0  ;;  %v4162_v11 = vadd.f32 %v10737_v34, %v9533_v36  ;;  %v6873_v15 = vsel %vm6872_vm5, %v6871_v55, %v6866_v8 }
 0x240   : > { %v2361_v57 = vpop.f32.mrf.mxu0  ;;  %v5584_v58 = vpop.xlane.xlu0 %5583  ;;  %v4157_v63 = vadd.f32 %v10737_v34, %v4156_v49  ;;  %13349 = vst [vmem:[#allocation7_spill] sm:$0xff] %v10966_v6  ;;  %v5384_v59 = vmul.f32 %v10760_v25, %v5121_v40  ;;  %v2370_v16 = vadd.f32 %v10751_v45, %v9332_v41  ;;  %v10977_v18 = vsub.s32 %v6909_v50, %v10872_v10 }
 0x241   : > { %v2362_v0 = vadd.f32 %v10751_v45, %v2361_v57  ;;  %v9536_v2 = vpop.f32.mrf.mxu1  ;;  %9679 = vmatmul.mubr.msk.f32.gmra.mxu1 %vm2931_vm3, %v2841_v48  ;;  %5790 = vadd.xlane.f32.xlu1 %v5789_v60  ;;  %v6878_v20 = vrot.slane %v6345_v61, %v10903_v51  ;;  %v6885_v27 = vrot.slane %v6346_v4, %v10926_v12  ;;  %v6916_v32 = vadd.s32 4294967224, %v10860_v56 }
 0x242   : > { %v9333_v5 = vpop.f32.mrf.mxu0  ;;  %9681 = vmatprep.mubr.msk.f32.mxu1 %vm2931_vm3, %v2842_v54  ;;  %v10968_v7 = vpop.xlane.xlu1 %5586  ;;  %v5792_v17 = vsel %vm2931_vm3, %v5384_v59, 0.0  ;;  %13350 = vst [vmem:[#allocation8_spill] sm:$0xff] %v10977_v18  ;;  %v5123_v21 = vmax.f32 %v4157_v63, 0.0  ;;  %v6347_v28 = vadd.f32 %v10882_v24, %v5581_v42  ;;  %v5385_v30 = vmul.f32 %v10760_v25, %v5122_v3 }
 0x243   : > { %v2844_v13 = vmax.f32 %v2362_v0, 0.0  ;;  %v4166_v14 = vpop.f32.mrf.mxu1  ;;  %5793 = vadd.xlane.f32.xlu0 %v5792_v17  ;;  %v6880_v35 = vsel %vm6879_vm6, %v6878_v20, %v6873_v15  ;;  %v5124_v36 = vmax.f32 %v4162_v11, 0.0  ;;  %v2373_v39 = vadd.f32 %v10751_v45, %v9333_v5 }
 0x244   : > { %v2364_v62 = vpop.f32.mrf.mxu0  ;;  %v10979_v19 = vpop.xlane.xlu0 %5589  ;;  %v4167_v22 = vadd.f32 %v10737_v34, %v4166_v14  ;;  %v2846_v43 = vmax.f32 %v2370_v16, 0.0  ;;  %v6348_v42 = vadd.f32 %v10882_v24, %v5584_v58  ;;  %v4172_v44 = vadd.f32 %v10737_v34, %v9536_v2 }
 0x245   : > { %v2365_v23 = vadd.f32 %v10751_v45, %v2364_v62  ;;  %v9539_v26 = vpop.f32.mrf.mxu1  ;;  %9682 = vmatmul.mubr.msk.f32.gmra.mxu1 %vm2931_vm3, %v2843_v9  ;;  %v5795_v46 = vsel %vm2931_vm3, %v5385_v30, 0.0  ;;  %v5386_v53 = vmul.f32 %v10760_v25, %v5123_v21  ;;  %v6887_v57 = vsel %vm6886_vm7, %v6885_v27, %v6880_v35 }
 0x246   : > { %v9336_v31 = vpop.f32.mrf.mxu0  ;;  %9684 = vmatprep.mubr.msk.f32.mxu1 %vm2931_vm3, %v2844_v13  ;;  %v10990_v33 = vpop.xlane.xlu1 %5592  ;;  %v5125_v49 = vmax.f32 %v4167_v22, 0.0  ;;  %5796 = vadd.xlane.f32.xlu1 %v5795_v46  ;;  %v6892_v58 = vrot.slane %v6347_v28, %v10943_v37  ;;  %v11006_v60 = vsub.s32 %v6916_v32, %v10872_v10  ;;  %v6923_v61 = vadd.s32 4294967216, %v10860_v56 }
 0x247   : > { %v2845_v40 = vmax.f32 %v2365_v23, 0.0  ;;  %v4176_v41 = vpop.f32.mrf.mxu1  ;;  %v2847_v2 = vmax.f32 %v2373_v39, 0.0  ;;  %v5798_v3 = vsel %vm2931_vm3, %v5386_v53, 0.0  ;;  %v5387_v5 = vmul.f32 %v10760_v25, %v5124_v36 }
 0x248   : > { %v2377_v47 = vpop.f32.mrf.mxu0  ;;  %v10997_v48 = vpop.xlane.xlu0 %5595  ;;  %v4177_v50 = vadd.f32 %v10737_v34, %v4176_v41  ;;  %v6899_v8 = vrot.slane %v6348_v42, %v10946_v38  ;;  %v5126_v9 = vmax.f32 %v4172_v44, 0.0  ;;  %v4182_v11 = vadd.f32 %v10737_v34, %v9539_v26  ;;  %5799 = vadd.xlane.f32.xlu0 %v5798_v3 }
 0x249   : > { %v2378_v54 = vadd.f32 %v10751_v45, %v2377_v47  ;;  %v9542_v55 = vpop.f32.mrf.mxu1  ;;  %9685 = vmatmul.mubr.msk.f32.gmra.mxu1 %vm2931_vm3, %v2845_v40  ;;  %v2386_v13 = vadd.f32 %v10751_v45, %v9336_v31  ;;  %v5801_v17 = vsel %vm2931_vm3, %v5387_v5, 0.0  ;;  %v5388_v62 = vmul.f32 %v10760_v25, %v5125_v49 }
 0x24a   : > { %v9337_v63 = vpop.f32.mrf.mxu0  ;;  %9687 = vmatprep.mubr.msk.f32.mxu1 %vm2931_vm3, %v2846_v43  ;;  %v11010_v0 = vpop.xlane.xlu1 %5598  ;;  %v5127_v16 = vmax.f32 %v4177_v50, 0.0  ;;  %v6894_v22 = vsel %vm6893_vm8, %v6892_v58, %v6887_v57  ;;  %v11025_v23 = vsub.s32 %v6923_v61, %v10872_v10  ;;  %5802 = vadd.xlane.f32.xlu1 %v5801_v17  ;;  %v6349_v30 = vadd.f32 %v10882_v24, %v10968_v7 }
 0x24b   : > { %v2848_v4 = vmax.f32 %v2378_v54, 0.0  ;;  %v4186_v59 = vpop.f32.mrf.mxu1  ;;  %v2389_v31 = vadd.f32 %v10751_v45, %v9337_v63  ;;  %v5804_v32 = vsel %vm2931_vm3, %v5388_v62, 0.0  ;;  %v5128_v39 = vmax.f32 %v4182_v11, 0.0 }
 0x24c   : > { %v2380_v14 = vpop.f32.mrf.mxu0  ;;  %v11017_v15 = vpop.xlane.xlu0 %5601  ;;  %13351 = vst [vmem:[#allocation9_spill] sm:$0xff] %v11025_v23  ;;  %v4187_v26 = vadd.f32 %v10737_v34, %v4186_v59  ;;  %v2850_v40 = vmax.f32 %v2386_v13, 0.0  ;;  %v4192_v41 = vadd.f32 %v10737_v34, %v9542_v55  ;;  %5805 = vadd.xlane.f32.xlu0 %v5804_v32  ;;  %v5389_v43 = vmul.f32 %v10760_v25, %v5126_v9 }
 0x24d   : > { %v2381_v20 = vadd.f32 %v10751_v45, %v2380_v14  ;;  %v9545_v21 = vpop.f32.mrf.mxu1  ;;  %9688 = vmatmul.mubr.msk.f32.gmra.mxu1 %vm2931_vm3, %v2847_v2  ;;  %v6901_v46 = vsel %vm6900_vm9, %v6899_v8, %v6894_v22  ;;  %v6930_v7 = vadd.s32 4294967208, %v10860_v56  ;;  %v6937_v47 = vadd.s32 4294967200, %v10860_v56 }
 0x24e   : > { %v9340_v27 = vpop.f32.mrf.mxu0  ;;  %9690 = vmatprep.mubr.msk.f32.mxu1 %vm2931_vm3, %v2848_v4  ;;  %v11029_v28 = vpop.xlane.xlu1 %5604  ;;  %v5390_v49 = vmul.f32 %v10760_v25, %v5127_v16  ;;  %v6350_v53 = vadd.f32 %v10882_v24, %v10979_v19  ;;  %v5129_v54 = vmax.f32 %v4187_v26, 0.0  ;;  %v5807_v55 = vsel %vm2931_vm3, %v5389_v43, 0.0 }
 0x24f   : > { %v2849_v35 = vmax.f32 %v2381_v20, 0.0  ;;  %v4196_v36 = vpop.f32.mrf.mxu1  ;;  %v6906_v63 = vrot.slane %v6349_v30, %v10966_v6  ;;  %v2851_v2 = vmax.f32 %v2389_v31, 0.0  ;;  %5808 = vadd.xlane.f32.xlu1 %v5807_v55  ;;  %v5130_v5 = vmax.f32 %v4192_v41, 0.0 }
 0x250   : > { %v2393_v42 = vpop.f32.mrf.mxu0  ;;  %v11037_v44 = vpop.xlane.xlu0 %5607  ;;  %v4197_v3 = vadd.f32 %v10737_v34, %v4196_v36  ;;  %v5810_v4 = vsel %vm2931_vm3, %v5390_v49, 0.0  ;;  %v4202_v59 = vadd.f32 %v10737_v34, %v9545_v21  ;;  %v5391_v9 = vmul.f32 %v10760_v25, %v5128_v39 }
 0x251   : > { %v9548_v50 = vpop.f32.mrf.mxu1  ;;  %9691 = vmatmul.mubr.msk.f32.gmra.mxu1 %vm2931_vm3, %v2849_v35  ;;  %v2394_v57 = vadd.f32 %v10751_v45, %v2393_v42  ;;  %5811 = vadd.xlane.f32.xlu0 %v5810_v4  ;;  %v11060_v14 = vadd.f32 %v10882_v24, %v10990_v33  ;;  %v11063_v16 = vsub.s32 %v6930_v7, %v10872_v10  ;;  %v6944_v62 = vadd.s32 4294967192, %v10860_v56 }
 0x252   : > { %v9341_v58 = vpop.f32.mrf.mxu0  ;;  %9693 = vmatprep.mubr.msk.f32.mxu1 %vm2931_vm3, %v2850_v40  ;;  %v11049_v61 = vpop.xlane.xlu1 %5610  ;;  %v11066_v17 = vsub.s32 %v6937_v47, %v10872_v10  ;;  %v6913_v21 = vrot.slane %v6350_v53, %v10977_v18  ;;  %v2402_v22 = vadd.f32 %v10751_v45, %v9340_v27  ;;  %v5813_v26 = vsel %vm2931_vm3, %v5391_v9, 0.0 }
 0x253   : > { %v4206_v19 = vpop.f32.mrf.mxu1  ;;  %v2852_v8 = vmax.f32 %v2394_v57, 0.0  ;;  %13352 = vst [vmem:[#allocation10_spill] sm:$0xff] %v11063_v16  ;;  %v5392_v33 = vmul.f32 %v10760_v25, %v5129_v54  ;;  %v6908_v32 = vsel %vm6907_vm10, %v6906_v63, %v6901_v46  ;;  %v5131_v35 = vmax.f32 %v4197_v3, 0.0  ;;  %5814 = vadd.xlane.f32.xlu1 %v5813_v26 }
 0x254   : > { %v2396_v11 = vpop.f32.mrf.mxu0  ;;  %v11056_v13 = vpop.xlane.xlu0 %5613  ;;  %v4207_v36 = vadd.f32 %v10737_v34, %v4206_v19  ;;  %v5132_v41 = vmax.f32 %v4202_v59, 0.0  ;;  %v6951_v27 = vadd.s32 4294967184, %v10860_v56  ;;  %v5393_v42 = vmul.f32 %v10760_v25, %v5130_v5  ;;  %v11089_v34 = vld [vmem:[%s13307_s4] ss:$0 sm:$0xff] }
 0x255   : > { %v9551_v20 = vpop.f32.mrf.mxu1  ;;  %9694 = vmatmul.mubr.msk.f32.gmra.mxu1 %vm2931_vm3, %v2851_v2  ;;  %v2397_v39 = vadd.f32 %v10751_v45, %v2396_v11  ;;  %v5816_v43 = vsel %vm2931_vm3, %v5392_v33, 0.0  ;;  %v11084_v46 = vsub.s32 %v6944_v62, %v10872_v10  ;;  %v4212_v49 = vadd.f32 %v11089_v34, %v9548_v50 }
 0x256   : > { %v9344_v30 = vpop.f32.mrf.mxu0  ;;  %9696 = vmatprep.mubr.msk.f32.mxu1 %vm2931_vm3, %v2852_v8  ;;  %v5617_v31 = vpop.xlane.xlu1 %5616  ;;  %v2405_v53 = vadd.f32 %v10751_v45, %v9341_v58  ;;  %5817 = vadd.xlane.f32.xlu0 %v5816_v43  ;;  %v6915_v57 = vsel %vm6914_vm11, %v6913_v21, %v6908_v32  ;;  %v6920_v63 = vrot.slane %v11060_v14, %v11006_v60  ;;  %v2854_v2 = vmax.f32 %v2402_v22, 0.0  ;;  %v11104_v58 = vld [vmem:[%s13305_s2] ss:$0 sm:$0xff] }
 0x257   : > { %v4216_v40 = vpop.f32.mrf.mxu1  ;;  %13353 = vst [vmem:[#allocation11_spill] sm:$0xff] %v11084_v46  ;;  %v2853_v54 = vmax.f32 %v2397_v39, 0.0  ;;  %v5819_v3 = vsel %vm2931_vm3, %v5393_v42, 0.0  ;;  %v5133_v5 = vmax.f32 %v4207_v36, 0.0  ;;  %v5394_v45 = vmul.f32 %v10760_v25, %v5131_v35  ;;  %v11120_v14 = vld [vmem:[%s13308_s5] ss:$0 sm:$0xff] }
 0x258   : > { %v2409_v7 = vpop.f32.mrf.mxu0  ;;  %v11081_v47 = vpop.xlane.xlu0 %5619  ;;  %5820 = vadd.xlane.f32.xlu1 %v5819_v3  ;;  %v4217_v50 = vadd.f32 %v11089_v34, %v4216_v40  ;;  %v6352_v9 = vadd.f32 %v10882_v24, %v10997_v48  ;;  %v11112_v11 = vadd.f32 %v10882_v24, %v11010_v0  ;;  %v11115_v25 = vsub.s32 %v6951_v27, %v10872_v10 }
 0x259   : > { %v9554_v55 = vpop.f32.mrf.mxu1  ;;  %v2410_v59 = vadd.f32 %v11104_v58, %v2409_v7  ;;  %9697 = vmatmul.mubr.msk.f32.gmra.mxu1 %vm2931_vm3, %v2853_v54  ;;  %v5395_v62 = vmul.f32 %v11120_v14, %v5132_v41  ;;  %v5134_v48 = vmax.f32 %v4212_v49, 0.0  ;;  %v2855_v26 = vmax.f32 %v2405_v53, 0.0 }
 0x25a   : > { %v9345_v4 = vpop.f32.mrf.mxu0  ;;  %v11097_v19 = vpop.xlane.xlu1 %5622  ;;  %13354 = vst [vmem:[#allocation12_spill] sm:$0xff] %v11115_v25  ;;  %9699 = vmatprep.mubr.msk.f32.mxu1 %vm2931_vm3, %v2854_v2  ;;  %v5822_v0 = vsel %vm2931_vm3, %v5394_v45, 0.0  ;;  %v6922_v35 = vsel %vm6921_vm12, %v6920_v63, %v6915_v57  ;;  %v4222_v36 = vadd.f32 %v11089_v34, %v9551_v20  ;;  %v2418_v39 = vadd.f32 %v11104_v58, %v9344_v30 }
 0x25b   : > { %v4226_v8 = vpop.f32.mrf.mxu1  ;;  %v2856_v33 = vmax.f32 %v2410_v59, 0.0  ;;  %5823 = vadd.xlane.f32.xlu0 %v5822_v0  ;;  %v5825_v40 = vsel %vm2931_vm3, %v5395_v62, 0.0  ;;  %v6359_v43 = vadd.f32 %v10882_v24, %v5617_v31  ;;  %v5135_v42 = vmax.f32 %v4217_v50, 0.0 }
 0x25c   : > { %v2412_v21 = vpop.f32.mrf.mxu0  ;;  %v11124_v22 = vpop.xlane.xlu0 %5625  ;;  %5826 = vadd.xlane.f32.xlu1 %v5825_v40  ;;  %v5396_v7 = vmul.f32 %v11120_v14, %v5133_v5  ;;  %v6927_v30 = vrot.slane %v6352_v9, %v11025_v23  ;;  %v6934_v53 = vrot.slane %v11112_v11, %v11063_v16  ;;  %v6358_v54 = vadd.f32 %v10882_v24, %v11056_v13 }
 0x25d   : > { %v11127_v32 = vpop.f32.mrf.mxu1  ;;  %v2413_v49 = vadd.f32 %v11104_v58, %v2412_v21  ;;  %9700 = vmatmul.mubr.msk.f32.gmra.mxu1 %vm2931_vm3, %v2855_v26  ;;  %v4227_v57 = vadd.f32 %v11089_v34, %v4226_v8  ;;  %v2421_v2 = vadd.f32 %v11104_v58, %v9345_v4  ;;  %v5397_v50 = vmul.f32 %v11120_v14, %v5134_v48 }
 0x25e   : > { %v11133_v41 = vpop.f32.mrf.mxu0  ;;  %v11135_v27 = vpop.xlane.xlu1 %5628  ;;  %9702 = vmatprep.mubr.msk.f32.mxu1 %vm2931_vm3, %v2856_v33  ;;  %v5828_v3 = vsel %vm2931_vm3, %v5396_v7, 0.0  ;;  %v5136_v59 = vmax.f32 %v4222_v36, 0.0  ;;  %v2858_v9 = vmax.f32 %v2418_v39, 0.0  ;;  %v6360_v13 = vadd.f32 %v10882_v24, %v11081_v47 }
 0x25f   : > { %v4236_v20 = vpop.f32.mrf.mxu1  ;;  %v2857_v5 = vmax.f32 %v2413_v49, 0.0  ;;  %v4232_v8 = vadd.f32 %v11089_v34, %v9554_v55  ;;  %5829 = vadd.xlane.f32.xlu0 %v5828_v3  ;;  %v11160_v4 = vadd.f32 %v10882_v24, %v11017_v15  ;;  %v6972_v21 = vrot.slane %v6359_v43, %v10888_v29 }
 0x260   : > { %v2425_v31 = vpop.f32.mrf.mxu0  ;;  %v11148_v63 = vpop.xlane.xlu0 %5631  ;;  %v5831_v48 = vsel %vm2931_vm3, %v5397_v50, 0.0  ;;  %v5398_v26 = vmul.f32 %v11120_v14, %v5135_v42  ;;  %v6929_v55 = vsel %vm6928_vm13, %v6927_v30, %v6922_v35  ;;  %v11168_v0 = vadd.s32 4294967176, %v10860_v56 }
 0x261   : > { %v9560_v45 = vpop.f32.mrf.mxu1  ;;  %9703 = vmatmul.mubr.msk.f32.gmra.mxu1 %vm2931_vm3, %v2857_v5  ;;  %v5137_v33 = vmax.f32 %v4227_v57, 0.0  ;;  %5832 = vadd.xlane.f32.xlu1 %v5831_v48  ;;  %v2426_v36 = vadd.f32 %v11104_v58, %v2425_v31  ;;  %v6968_v40 = vrot.slane %v6358_v54, %v10907_v52  ;;  %v2859_v43 = vmax.f32 %v2421_v2, 0.0 }
 0x262   : > { %v9349_v11 = vpop.f32.mrf.mxu0  ;;  %v11156_v62 = vpop.xlane.xlu1 %5634  ;;  %9705 = vmatprep.mubr.msk.f32.mxu1 %vm2931_vm3, %v2858_v9  ;;  %v4237_v42 = vadd.f32 %v11089_v34, %v4236_v20  ;;  %v5834_v7 = vsel %vm2931_vm3, %v5398_v26, 0.0  ;;  %v6977_v56 = vrot.slane %v6360_v13, %v10917_v1  ;;  %v5138_v49 = vmax.f32 %v4232_v8, 0.0 }
 0x263   : > { %v4246_v47 = vpop.f32.mrf.mxu1  ;;  %5835 = vadd.xlane.f32.xlu0 %v5834_v7  ;;  %v2860_v30 = vmax.f32 %v2426_v36, 0.0  ;;  %v5399_v57 = vmul.f32 %v11120_v14, %v5136_v59  ;;  %v6936_v5 = vsel %vm6935_vm14, %v6934_v53, %v6929_v55  ;;  %v6941_v54 = vrot.slane %v11160_v4, %v11066_v17 }
 0x264   : > { %v2428_v15 = vpop.f32.mrf.mxu0  ;;  %v11172_v39 = vpop.xlane.xlu0 %5637  ;;  %v6973_v20 = vsel %vm6865_vm4, %v6972_v21, %v6968_v40  ;;  %v6361_v2 = vadd.f32 %v10882_v24, %v11097_v19  ;;  %v4242_v59 = vadd.f32 %v11089_v34, %v11127_v32  ;;  %v2434_v9 = vadd.f32 %v11104_v58, %v11133_v41 }
 0x265   : > { %v9563_v35 = vpop.f32.mrf.mxu1  ;;  %9706 = vmatmul.mubr.msk.f32.gmra.mxu1 %vm2931_vm3, %v2859_v43  ;;  %v5837_v53 = vsel %vm2931_vm3, %v5399_v57, 0.0  ;;  %v5400_v13 = vmul.f32 %v11120_v14, %v5137_v33  ;;  %v11199_v19 = vadd.f32 %v10882_v24, %v11029_v28  ;;  %v5139_v21 = vmax.f32 %v4237_v42, 0.0 }
 0x266   : > { %v9352_v31 = vpop.f32.mrf.mxu0  ;;  %v11179_v3 = vpop.xlane.xlu1 %5640  ;;  %9708 = vmatprep.mubr.msk.f32.mxu1 %vm2931_vm3, %v2860_v30  ;;  %5838 = vadd.xlane.f32.xlu1 %v5837_v53  ;;  %v4247_v32 = vadd.f32 %v11089_v34, %v4246_v47  ;;  %v2429_v48 = vadd.f32 %v11104_v58, %v2428_v15  ;;  %v6978_v26 = vsel %vm6872_vm5, %v6977_v56, %v6973_v20  ;;  %v5140_v56 = vmax.f32 %v4242_v59, 0.0 }
 0x267   : > { %v4256_v50 = vpop.f32.mrf.mxu1  ;;  %v4252_v55 = vadd.f32 %v11089_v34, %v9560_v45  ;;  %v5840_v33 = vsel %vm2931_vm3, %v5400_v13, 0.0  ;;  %v5401_v36 = vmul.f32 %v11120_v14, %v5138_v49  ;;  %v6982_v28 = vrot.slane %v6361_v2, %v10903_v51 }
 0x268   : > { %v2441_v8 = vpop.f32.mrf.mxu0  ;;  %v11195_v4 = vpop.xlane.xlu0 %5643  ;;  %v6362_v42 = vadd.f32 %v10882_v24, %v11124_v22  ;;  %v2437_v47 = vadd.f32 %v11104_v58, %v9349_v11  ;;  %5841 = vadd.xlane.f32.xlu0 %v5840_v33  ;;  %v2861_v15 = vmax.f32 %v2429_v48, 0.0  ;;  %v2862_v30 = vmax.f32 %v2434_v9, 0.0 }
 0x269   : > { %v9566_v41 = vpop.f32.mrf.mxu1  ;;  %v4262_v45 = vadd.f32 %v11089_v34, %v9563_v35  ;;  %v5843_v57 = vsel %vm2931_vm3, %v5401_v36, 0.0  ;;  %v5141_v53 = vmax.f32 %v4247_v32, 0.0  ;;  %v4257_v2 = vadd.f32 %v11089_v34, %v4256_v50 }
 0x26a   : > { %v9353_v40 = vpop.f32.mrf.mxu0  ;;  %v11207_v43 = vpop.xlane.xlu1 %5646  ;;  %5844 = vadd.xlane.f32.xlu1 %v5843_v57  ;;  %v5402_v22 = vmul.f32 %v11120_v14, %v5139_v21  ;;  %v2442_v11 = vadd.f32 %v11104_v58, %v2441_v8  ;;  %9709 = vmatmul.mubr.msk.f32.gmra.mxu1 %vm2931_vm3, %v2861_v15  ;;  %v6943_v59 = vsel %vm13343_vm15, %v6941_v54, %v6936_v5  ;;  %v5142_v32 = vmax.f32 %v4252_v55, 0.0 }
 0x26b   : > { %v4266_v7 = vpop.f32.mrf.mxu1  ;;  %v6948_v35 = vrot.slane %v11199_v19, %v11084_v46  ;;  %v11226_v9 = vadd.f32 %v10882_v24, %v11037_v44  ;;  %9711 = vmatprep.mubr.msk.f32.mxu1 %vm2931_vm3, %v2862_v30  ;;  %v6983_v8 = vsel %vm6879_vm6, %v6982_v28, %v6978_v26  ;;  %v2863_v48 = vmax.f32 %v2437_v47, 0.0 }
 0x26c   : > { %v2444_v49 = vpop.f32.mrf.mxu0  ;;  %v11215_v20 = vpop.xlane.xlu0 %5649  ;;  %v5846_v5 = vsel %vm2931_vm3, %v5402_v22, 0.0  ;;  %v2864_v54 = vmax.f32 %v2442_v11, 0.0  ;;  %v6987_v19 = vrot.slane %v6362_v42, %v10926_v12  ;;  %v6363_v44 = vadd.f32 %v10882_v24, %v11135_v27 }
 0x26d   : > { %v9569_v13 = vpop.f32.mrf.mxu1  ;;  %v2450_v55 = vadd.f32 %v11104_v58, %v9352_v31  ;;  %5847 = vadd.xlane.f32.xlu0 %v5846_v5  ;;  %v5403_v36 = vmul.f32 %v11120_v14, %v5140_v56  ;;  %v5144_v57 = vmax.f32 %v4262_v45, 0.0  ;;  %v5143_v26 = vmax.f32 %v4257_v2, 0.0 }
 0x26e   : > { %v11229_v50 = vpop.f32.mrf.mxu0  ;;  %v11231_v21 = vpop.xlane.xlu1 %5652  ;;  %v5404_v28 = vmul.f32 %v11120_v14, %v5141_v53  ;;  %v2445_v47 = vadd.f32 %v11104_v58, %v2444_v49  ;;  %9712 = vmatmul.mubr.msk.f32.gmra.mxu1 %vm2931_vm3, %v2863_v48  ;;  %v5405_v22 = vmul.f32 %v11120_v14, %v5142_v32  ;;  %v4272_v27 = vadd.f32 %v11089_v34, %v9566_v41 }
 0x26f   : > { %v4276_v33 = vpop.f32.mrf.mxu1  ;;  %v5849_v31 = vsel %vm2931_vm3, %v5403_v36, 0.0  ;;  %v4267_v56 = vadd.f32 %v11089_v34, %v4266_v7  ;;  %9714 = vmatprep.mubr.msk.f32.mxu1 %vm2931_vm3, %v2864_v54  ;;  %v6950_v53 = vsel %vm13339_vm0, %v6948_v35, %v6943_v59  ;;  %v2453_v49 = vadd.f32 %v11104_v58, %v9353_v40 }
 0x270   : > { %v2457_v15 = vpop.f32.mrf.mxu0  ;;  %v11240_v30 = vpop.xlane.xlu0 %5655  ;;  %5850 = vadd.xlane.f32.xlu1 %v5849_v31  ;;  %v5852_v2 = vsel %vm2931_vm3, %v5404_v28, 0.0  ;;  %v2865_v32 = vmax.f32 %v2445_v47, 0.0  ;;  %v6955_v41 = vrot.slane %v11226_v9, %v11115_v25  ;;  %v6988_v7 = vsel %vm6886_vm7, %v6987_v19, %v6983_v8 }
 0x271   : > { %v9572_v42 = vpop.f32.mrf.mxu1  ;;  %v6364_v5 = vadd.f32 %v10882_v24, %v11148_v63  ;;  %v2866_v54 = vmax.f32 %v2450_v55, 0.0  ;;  %5853 = vadd.xlane.f32.xlu0 %v5852_v2  ;;  %v6992_v59 = vrot.slane %v6363_v44, %v10943_v37  ;;  %v5407_v40 = vmul.f32 %v11120_v14, %v5144_v57 }
 0x272   : > { %v11250_v11 = vpop.f32.mrf.mxu0  ;;  %v11252_v45 = vpop.xlane.xlu1 %5658  ;;  %v4282_v35 = vadd.f32 %v11089_v34, %v9569_v13  ;;  %v5406_v28 = vmul.f32 %v11120_v14, %v5143_v26  ;;  %9715 = vmatmul.mubr.msk.f32.gmra.mxu1 %vm2931_vm3, %v2865_v32  ;;  %v5146_v47 = vmax.f32 %v4272_v27, 0.0  ;;  %v5145_v8 = vmax.f32 %v4267_v56, 0.0 }
 0x273   : > { %13355 = vst [vmem:[#allocation13_spill] sm:$0xff] %v11252_v45  ;;  %v4286_v48 = vpop.f32.mrf.mxu1  ;;  %v5855_v19 = vsel %vm2931_vm3, %v5405_v22, 0.0  ;;  %v2458_v63 = vadd.f32 %v11104_v58, %v2457_v15  ;;  %9717 = vmatprep.mubr.msk.f32.mxu1 %vm2931_vm3, %v2866_v54  ;;  %v2867_v31 = vmax.f32 %v2453_v49, 0.0  ;;  %v4277_v13 = vadd.f32 %v11089_v34, %v4276_v33 }
 0x274   : > { %v2460_v36 = vpop.f32.mrf.mxu0  ;;  %v5662_v45 = vpop.xlane.xlu0 %5661  ;;  %5856 = vadd.xlane.f32.xlu1 %v5855_v19  ;;  %v5858_v57 = vsel %vm2931_vm3, %v5406_v28, 0.0  ;;  %v11276_v27 = vsub.s32 %v11168_v0, %v10872_v10  ;;  %v6997_v22 = vrot.slane %v6364_v5, %v10946_v38  ;;  %v6365_v15 = vadd.f32 %v10882_v24, %v11156_v62 }
 0x275   : > { %v9575_v9 = vpop.f32.mrf.mxu1  ;;  %5859 = vadd.xlane.f32.xlu0 %v5858_v57  ;;  %v2868_v56 = vmax.f32 %v2458_v63, 0.0  ;;  %v11282_v49 = vsel %vm13333_vm1, %v6955_v41, %v6950_v53  ;;  %v11286_v33 = vadd.f32 %v10882_v24, %v11049_v61  ;;  %v6993_v54 = vsel %vm6893_vm8, %v6992_v59, %v6988_v7 }
 0x276   : > { %v11270_v55 = vpop.f32.mrf.mxu0  ;;  %v5665_v44 = vpop.xlane.xlu1 %5664  ;;  %13356 = vst [vmem:[#allocation14_spill] sm:$0xff] %v11276_v27  ;;  %13357 = vst [vmem:[#allocation15_spill] sm:$0xff] %v11282_v49  ;;  %v5148_v10 = vmax.f32 %v4282_v35, 0.0  ;;  %9718 = vmatmul.mubr.msk.f32.gmra.mxu1 %vm2931_vm3, %v2867_v31  ;;  %v5409_v5 = vmul.f32 %v11120_v14, %v5146_v47  ;;  %v4292_v62 = vadd.f32 %v11089_v34, %v9572_v42  ;;  %v5861_v28 = vsel %vm2931_vm3, %v5407_v40, 0.0 }
 0x277   : > { %v4296_v26 = vpop.f32.mrf.mxu1  ;;  %13358 = vst [vmem:[#allocation16_spill] sm:$0xff] %v11286_v33  ;;  %v5408_v19 = vmul.f32 %v11120_v14, %v5145_v8  ;;  %9720 = vmatprep.mubr.msk.f32.mxu1 %vm2931_vm3, %v2868_v56  ;;  %v2466_v41 = vadd.f32 %v11104_v58, %v11229_v50  ;;  %v5147_v7 = vmax.f32 %v4277_v13, 0.0  ;;  %v4287_v59 = vadd.f32 %v11089_v34, %v4286_v48 }
 0x278   : > { %v2473_v2 = vpop.f32.mrf.mxu0  ;;  %v5668_v32 = vpop.xlane.xlu0 %5667  ;;  %5862 = vadd.xlane.f32.xlu1 %v5861_v28  ;;  %v2461_v35 = vadd.f32 %v11104_v58, %v2460_v36  ;;  %v6998_v42 = vsel %vm6900_vm9, %v6997_v22, %v6993_v54  ;;  %v7002_v40 = vrot.slane %v6365_v15, %v10966_v6  ;;  %v11305_v8 = vadd.f32 %v10882_v24, %v11172_v39 }
 0x279   : > { %v9578_v0 = vpop.f32.mrf.mxu1  ;;  %v5864_v63 = vsel %vm2931_vm3, %v5408_v19, 0.0  ;;  %v5411_v50 = vmul.f32 %v11120_v14, %v5148_v10  ;;  %v2469_v48 = vadd.f32 %v11104_v58, %v11250_v11  ;;  %v4302_v13 = vadd.f32 %v11089_v34, %v9575_v9 }
 0x27a   : > { %v11295_v53 = vpop.f32.mrf.mxu0  ;;  %v5671_v61 = vpop.xlane.xlu1 %5670  ;;  %5865 = vadd.xlane.f32.xlu0 %v5864_v63  ;;  %v2869_v36 = vmax.f32 %v2461_v35, 0.0  ;;  %v5150_v15 = vmax.f32 %v4292_v62, 0.0  ;;  %v6374_v56 = vadd.f32 %v10882_v24, %v5662_v45  ;;  %v5867_v39 = vsel %vm2931_vm3, %v5409_v5, 0.0 }
 0x27b   : > { %v4306_v47 = vpop.f32.mrf.mxu1  ;;  %v6375_v54 = vadd.f32 %v10882_v24, %v5665_v44  ;;  %v2870_v10 = vmax.f32 %v2466_v41, 0.0  ;;  %v5149_v49 = vmax.f32 %v4287_v59, 0.0  ;;  %v5410_v11 = vmul.f32 %v11120_v14, %v5147_v7 }
 0x27c   : > { %v2476_v31 = vpop.f32.mrf.mxu0  ;;  %v5674_v57 = vpop.xlane.xlu0 %5673  ;;  %5868 = vadd.xlane.f32.xlu1 %v5867_v39  ;;  %v2474_v9 = vadd.f32 %v11104_v58, %v2473_v2  ;;  %v7003_v62 = vsel %vm6907_vm10, %v7002_v40, %v6998_v42  ;;  %v4297_v5 = vadd.f32 %v11089_v34, %v4296_v26  ;;  %v6376_v44 = vadd.f32 %v10882_v24, %v5668_v32 }
 0x27d   : > { %v11312_v22 = vpop.f32.mrf.mxu1  ;;  %v7051_v45 = vrot.slane %v6375_v54, %v10888_v29  ;;  %9721 = vmatmul.mubr.msk.f32.gmra.mxu1 %vm2931_vm3, %v2869_v36  ;;  %v2871_v59 = vmax.f32 %v2469_v48, 0.0  ;;  %v5152_v39 = vmax.f32 %v4302_v13, 0.0  ;;  %v5870_v7 = vsel %vm2931_vm3, %v5410_v11, 0.0 }
 0x27e   : > { %v11317_v28 = vpop.f32.mrf.mxu0  ;;  %v11319_v19 = vpop.xlane.xlu1 %5676  ;;  %v2872_v2 = vmax.f32 %v2474_v9, 0.0  ;;  %9723 = vmatprep.mubr.msk.f32.mxu1 %vm2931_vm3, %v2870_v10  ;;  %v5413_v42 = vmul.f32 %v11120_v14, %v5150_v15  ;;  %v7047_v26 = vrot.slane %v6374_v56, %v10907_v52  ;;  %v2482_v32 = vadd.f32 %v11104_v58, %v11270_v55  ;;  %5871 = vadd.xlane.f32.xlu0 %v5870_v7 }
 0x27f   : > { %v11323_v35 = vpop.f32.mrf.mxu1  ;;  %v5873_v40 = vsel %vm2931_vm3, %v5411_v50, 0.0  ;;  %v7056_v13 = vrot.slane %v6376_v44, %v10917_v1  ;;  %v4312_v54 = vadd.f32 %v11089_v34, %v9578_v0  ;;  %v6377_v10 = vadd.f32 %v10882_v24, %v5671_v61 }
 0x280   : > { %v2489_v63 = vpop.f32.mrf.mxu0  ;;  %v11330_v41 = vpop.xlane.xlu0 %5679  ;;  %5874 = vadd.xlane.f32.xlu1 %v5873_v40  ;;  %v5412_v15 = vmul.f32 %v11120_v14, %v5149_v49  ;;  %v7052_v11 = vsel %vm6865_vm4, %v7051_v45, %v7047_v26  ;;  %v5151_v55 = vmax.f32 %v4297_v5, 0.0  ;;  %v4307_v9 = vadd.f32 %v11089_v34, %v4306_v47 }
 0x281   : > { %v11334_v25 = vpop.f32.mrf.mxu1  ;;  %v2477_v50 = vadd.f32 %v11104_v58, %v2476_v31  ;;  %9724 = vmatmul.mubr.msk.f32.gmra.mxu1 %vm2931_vm3, %v2871_v59  ;;  %v7007_v0 = vrot.slane %v11305_v8, %v10977_v18  ;;  %v6367_v61 = vadd.f32 %v10882_v24, %v11179_v3  ;;  %v5415_v49 = vmul.f32 %v11120_v14, %v5152_v39 }
 0x282   : > { %v11341_v36 = vpop.f32.mrf.mxu0  ;;  %v11343_v48 = vpop.xlane.xlu1 %5682  ;;  %v5876_v45 = vsel %vm2931_vm3, %v5412_v15, 0.0  ;;  %9726 = vmatprep.mubr.msk.f32.mxu1 %vm2931_vm3, %v2872_v2  ;;  %v2485_v31 = vadd.f32 %v11104_v58, %v11295_v53  ;;  %v6378_v44 = vadd.f32 %v10882_v24, %v5674_v57  ;;  %v5879_v8 = vsel %vm2931_vm3, %v5413_v42, 0.0 }
 0x283   : > { %v4326_v56 = vpop.f32.mrf.mxu1  ;;  %5877 = vadd.xlane.f32.xlu0 %v5876_v45  ;;  %v2873_v5 = vmax.f32 %v2477_v50, 0.0  ;;  %v2874_v39 = vmax.f32 %v2482_v32, 0.0  ;;  %v7057_v26 = vsel %vm6872_vm5, %v7056_v13, %v7052_v11  ;;  %v5154_v40 = vmax.f32 %v4312_v54, 0.0 }
 0x284   : > { %v2492_v7 = vpop.f32.mrf.mxu0  ;;  %v11353_v52 = vpop.xlane.xlu0 %5685  ;;  %v7061_v2 = vrot.slane %v6377_v10, %v10903_v51  ;;  %5880 = vadd.xlane.f32.xlu1 %v5879_v8  ;;  %v5153_v53 = vmax.f32 %v4307_v9, 0.0  ;;  %v4322_v50 = vadd.f32 %v11089_v34, %v11312_v22  ;;  %v5414_v57 = vmul.f32 %v11120_v14, %v5151_v55 }
 0x285   : > { %v11362_v47 = vpop.f32.mrf.mxu1  ;;  %v2490_v42 = vadd.f32 %v11104_v58, %v2489_v63  ;;  %9727 = vmatmul.mubr.msk.f32.gmra.mxu1 %vm2931_vm3, %v2873_v5  ;;  %v7008_v13 = vsel %vm6914_vm11, %v7007_v0, %v7003_v62  ;;  %v7012_v54 = vrot.slane %v6367_v61, %v11006_v60  ;;  %v6368_v10 = vadd.f32 %v10882_v24, %v11195_v4 }
 0x286   : > { %v11368_v59 = vpop.f32.mrf.mxu0  ;;  %v11370_v3 = vpop.xlane.xlu1 %5688  ;;  %v4317_v11 = vadd.f32 %v11089_v34, %v11323_v35  ;;  %9729 = vmatprep.mubr.msk.f32.mxu1 %vm2931_vm3, %v2874_v39  ;;  %v2875_v63 = vmax.f32 %v2485_v31, 0.0  ;;  %v7066_v55 = vrot.slane %v6378_v44, %v10926_v12  ;;  %v5882_v9 = vsel %vm2931_vm3, %v5414_v57, 0.0 }
 0x287   : > { %v11374_v15 = vpop.f32.mrf.mxu1  ;;  %v2876_v5 = vmax.f32 %v2490_v42, 0.0  ;;  %v5417_v0 = vmul.f32 %v11120_v14, %v5154_v40  ;;  %v7062_v4 = vsel %vm6879_vm6, %v7061_v2, %v7057_v26  ;;  %v2498_v35 = vadd.f32 %v11104_v58, %v11317_v28  ;;  %5883 = vadd.xlane.f32.xlu0 %v5882_v9 }
 0x288   : > { %v2505_v45 = vpop.f32.mrf.mxu0  ;;  %v11381_v32 = vpop.xlane.xlu0 %5691  ;;  %v5885_v61 = vsel %vm2931_vm3, %v5415_v49, 0.0  ;;  %v5156_v44 = vmax.f32 %v4322_v50, 0.0  ;;  %v6379_v39 = vadd.f32 %v10882_v24, %v11319_v19  ;;  %v4332_v57 = vadd.f32 %v11089_v34, %v11334_v25 }
 0x289   : > { %v11390_v22 = vpop.f32.mrf.mxu1  ;;  %5886 = vadd.xlane.f32.xlu1 %v5885_v61  ;;  %v5416_v40 = vmul.f32 %v11120_v14, %v5153_v53  ;;  %9730 = vmatmul.mubr.msk.f32.gmra.mxu1 %vm2931_vm3, %v2875_v63  ;;  %v7013_v28 = vsel %vm6921_vm12, %v7012_v54, %v7008_v13  ;;  %v5155_v49 = vmax.f32 %v4317_v11, 0.0  ;;  %v4327_v42 = vadd.f32 %v11089_v34, %v4326_v56 }
 0x28a   : > { %v11394_v8 = vpop.f32.mrf.mxu0  ;;  %v11396_v62 = vpop.xlane.xlu1 %5694  ;;  %v2493_v50 = vadd.f32 %v11104_v58, %v2492_v7  ;;  %9732 = vmatprep.mubr.msk.f32.mxu1 %vm2931_vm3, %v2876_v5  ;;  %v7017_v25 = vrot.slane %v6368_v10, %v11025_v23  ;;  %v6369_v53 = vadd.f32 %v10882_v24, %v11207_v43  ;;  %v7067_v63 = vsel %vm6886_vm7, %v7066_v55, %v7062_v4 }
 0x28b   : > { %v11403_v31 = vpop.f32.mrf.mxu1  ;;  %v5888_v9 = vsel %vm2931_vm3, %v5416_v40, 0.0  ;;  %v6380_v56 = vadd.f32 %v10882_v24, %v11330_v41  ;;  %v2501_v7 = vadd.f32 %v11104_v58, %v11341_v36  ;;  %v5891_v10 = vsel %vm2931_vm3, %v5417_v0, 0.0 }
 0x28c   : > { %v2508_v26 = vpop.f32.mrf.mxu0  ;;  %v11411_v2 = vpop.xlane.xlu0 %5697  ;;  %5889 = vadd.xlane.f32.xlu0 %v5888_v9  ;;  %v2877_v54 = vmax.f32 %v2493_v50, 0.0  ;;  %v5419_v43 = vmul.f32 %v11120_v14, %v5156_v44  ;;  %v2878_v55 = vmax.f32 %v2498_v35, 0.0  ;;  %v7071_v5 = vrot.slane %v6379_v39, %v10943_v37 }
 0x28d   : > { %v11417_v19 = vpop.f32.mrf.mxu1  ;;  %v5158_v4 = vmax.f32 %v4332_v57, 0.0  ;;  %5892 = vadd.xlane.f32.xlu1 %v5891_v10  ;;  %v5157_v41 = vmax.f32 %v4327_v42, 0.0  ;;  %v4342_v36 = vadd.f32 %v11089_v34, %v11362_v47  ;;  %v5418_v50 = vmul.f32 %v11120_v14, %v5155_v49 }
 0x28e   : > { %v11424_v61 = vpop.f32.mrf.mxu0  ;;  %v11426_v13 = vpop.xlane.xlu1 %5700  ;;  %v2506_v0 = vadd.f32 %v11104_v58, %v2505_v45  ;;  %9733 = vmatmul.mubr.msk.f32.gmra.mxu1 %vm2931_vm3, %v2877_v54  ;;  %v7018_v35 = vsel %vm6928_vm13, %v7017_v25, %v7013_v28  ;;  %v7022_v44 = vrot.slane %v6369_v53, %v11063_v16  ;;  %v6370_v39 = vadd.f32 %v10882_v24, %v11215_v20 }
 0x28f   : > { %v11433_v11 = vpop.f32.mrf.mxu1  ;;  %v4337_v57 = vadd.f32 %v11089_v34, %v11374_v15  ;;  %9735 = vmatprep.mubr.msk.f32.mxu1 %vm2931_vm3, %v2878_v55  ;;  %v7076_v45 = vrot.slane %v6380_v56, %v10946_v38  ;;  %v2879_v42 = vmax.f32 %v2501_v7, 0.0  ;;  %v5894_v54 = vsel %vm2931_vm3, %v5418_v50, 0.0 }
 0x290   : > { %v2521_v40 = vpop.f32.mrf.mxu0  ;;  %v11437_v12 = vpop.xlane.xlu0 %5703  ;;  %v2880_v28 = vmax.f32 %v2506_v0, 0.0  ;;  %v7072_v53 = vsel %vm6893_vm8, %v7071_v5, %v7067_v63  ;;  %v5421_v20 = vmul.f32 %v11120_v14, %v5158_v4  ;;  %v6381_v15 = vadd.f32 %v10882_v24, %v11343_v48  ;;  %5895 = vadd.xlane.f32.xlu0 %v5894_v54 }
 0x291   : > { %v11444_v9 = vpop.f32.mrf.mxu1  ;;  %v5897_v10 = vsel %vm2931_vm3, %v5419_v43, 0.0  ;;  %v5160_v56 = vmax.f32 %v4342_v36, 0.0  ;;  %v2514_v7 = vadd.f32 %v11104_v58, %v11368_v59  ;;  %v4352_v50 = vadd.f32 %v11089_v34, %v11390_v22 }
 0x292   : > { %v11453_v47 = vpop.f32.mrf.mxu0  ;;  %v11455_v49 = vpop.xlane.xlu1 %5706  ;;  %5898 = vadd.xlane.f32.xlu1 %v5897_v10  ;;  %v5420_v63 = vmul.f32 %v11120_v14, %v5157_v41  ;;  %9736 = vmatmul.mubr.msk.f32.gmra.mxu1 %vm2931_vm3, %v2879_v42  ;;  %v7023_v43 = vsel %vm6935_vm14, %v7022_v44, %v7018_v35  ;;  %v5159_v5 = vmax.f32 %v4337_v57, 0.0  ;;  %v4347_v4 = vadd.f32 %v11089_v34, %v11403_v31 }
 0x293   : > { %13359 = vst [vmem:[#allocation17_spill] sm:$0xff] %v11455_v49  ;;  %v11459_v25 = vpop.f32.mrf.mxu1  ;;  %v2509_v36 = vadd.f32 %v11104_v58, %v2508_v26  ;;  %9738 = vmatprep.mubr.msk.f32.mxu1 %vm2931_vm3, %v2880_v28  ;;  %v7027_v41 = vrot.slane %v6370_v39, %v11066_v17  ;;  %v6371_v0 = vadd.f32 %v10882_v24, %v11231_v21  ;;  %v5903_v54 = vsel %vm2931_vm3, %v5421_v20, 0.0 }
 0x294   : > { %v11466_v55 = vpop.f32.mrf.mxu0  ;;  %v11468_v49 = vpop.xlane.xlu0 %5709  ;;  %v7077_v42 = vsel %vm6900_vm9, %v7076_v45, %v7072_v53  ;;  %v5900_v35 = vsel %vm2931_vm3, %v5420_v63, 0.0  ;;  %v6382_v31 = vadd.f32 %v10882_v24, %v11353_v52  ;;  %v2517_v26 = vadd.f32 %v11104_v58, %v11394_v8 }
 0x295   : > { %v11476_v48 = vpop.f32.mrf.mxu1  ;;  %5901 = vadd.xlane.f32.xlu0 %v5900_v35  ;;  %v2881_v57 = vmax.f32 %v2509_v36, 0.0  ;;  %v7081_v21 = vrot.slane %v6381_v15, %v10966_v6  ;;  %v5423_v45 = vmul.f32 %v11120_v14, %v5160_v56  ;;  %v2882_v53 = vmax.f32 %v2514_v7, 0.0 }
 0x296   : > { %v11483_v59 = vpop.f32.mrf.mxu0  ;;  %v11485_v22 = vpop.xlane.xlu1 %5712  ;;  %v5162_v10 = vmax.f32 %v4352_v50, 0.0  ;;  %5904 = vadd.xlane.f32.xlu1 %v5903_v54  ;;  %v5161_v52 = vmax.f32 %v4347_v4, 0.0  ;;  %v4362_v8 = vadd.f32 %v11089_v34, %v11417_v19  ;;  %v5422_v36 = vmul.f32 %v11120_v14, %v5159_v5 }
 0x297   : > { %v11492_v44 = vpop.f32.mrf.mxu1  ;;  %v2522_v20 = vadd.f32 %v11104_v58, %v2521_v40  ;;  %9739 = vmatmul.mubr.msk.f32.gmra.mxu1 %vm2931_vm3, %v2881_v57  ;;  %v7028_v56 = vsel %vm13343_vm15, %v7027_v41, %v7023_v43  ;;  %v7032_v7 = vrot.slane %v6371_v0, %v11084_v46  ;;  %v6372_v50 = vadd.f32 %v10882_v24, %v11240_v30 }
 0x298   : > { %v11499_v39 = vpop.f32.mrf.mxu0  ;;  %v11501_v28 = vpop.xlane.xlu0 %5715  ;;  %v4357_v19 = vadd.f32 %v11089_v34, %v11433_v11  ;;  %9741 = vmatprep.mubr.msk.f32.mxu1 %vm2931_vm3, %v2882_v53  ;;  %v7086_v40 = vrot.slane %v6382_v31, %v10977_v18  ;;  %v2883_v4 = vmax.f32 %v2517_v26, 0.0  ;;  %v5906_v57 = vsel %vm2931_vm3, %v5422_v36, 0.0 }
 0x299   : > { %v11505_v63 = vpop.f32.mrf.mxu1  ;;  %v2884_v54 = vmax.f32 %v2522_v20, 0.0  ;;  %v7082_v41 = vsel %vm6907_vm10, %v7081_v21, %v7077_v42  ;;  %v6383_v30 = vadd.f32 %v10882_v24, %v11370_v3  ;;  %v5425_v11 = vmul.f32 %v11120_v14, %v5162_v10  ;;  %5907 = vadd.xlane.f32.xlu0 %v5906_v57  ;;  %v13360_v20 = vld [vmem:[#allocation12_spill] sm:$0xff] }
 0x29a   : > { %v11512_v35 = vpop.f32.mrf.mxu0  ;;  %v11514_v15 = vpop.xlane.xlu1 %5718  ;;  %v5909_v0 = vsel %vm2931_vm3, %v5423_v45, 0.0  ;;  %v5164_v31 = vmax.f32 %v4362_v8, 0.0  ;;  %v2530_v26 = vadd.f32 %v11104_v58, %v11424_v61  ;;  %v4372_v36 = vadd.f32 %v11089_v34, %v11444_v9 }
 0x29b   : > { %v11523_v5 = vpop.f32.mrf.mxu1  ;;  %5910 = vadd.xlane.f32.xlu1 %v5909_v0  ;;  %v5424_v42 = vmul.f32 %v11120_v14, %v5161_v52  ;;  %9742 = vmatmul.mubr.msk.f32.gmra.mxu1 %vm2931_vm3, %v2883_v4  ;;  %v5163_v10 = vmax.f32 %v4357_v19, 0.0  ;;  %v4367_v8 = vadd.f32 %v11089_v34, %v11459_v25  ;;  %v2525_v61 = vadd.f32 %v11104_v58, %v11466_v55 }
 0x29c   : > { %v11527_v6 = vpop.f32.mrf.mxu0  ;;  %v11529_v43 = vpop.xlane.xlu0 %5721  ;;  %9744 = vmatprep.mubr.msk.f32.mxu1 %vm2931_vm3, %v2884_v54  ;;  %v7033_v52 = vsel %vm13339_vm0, %v7032_v7, %v7028_v56  ;;  %v7037_v4 = vrot.slane %v6372_v50, %v13360_v20  ;;  %v6384_v57 = vadd.f32 %v10882_v24, %v11381_v32  ;;  %v7087_v25 = vsel %vm6914_vm11, %v7086_v40, %v7082_v41 }
 0x29d   : > { %v11536_v53 = vpop.f32.mrf.mxu1  ;;  %v5912_v0 = vsel %vm2931_vm3, %v5424_v42, 0.0  ;;  %v2533_v55 = vadd.f32 %v11104_v58, %v11453_v47  ;;  %v2885_v54 = vmax.f32 %v2525_v61, 0.0  ;;  %v5915_v56 = vsel %vm2931_vm3, %v5425_v11, 0.0 }
 0x29e   : > { %v11544_v3 = vpop.f32.mrf.mxu0  ;;  %v11546_v21 = vpop.xlane.xlu1 %5724  ;;  %5913 = vadd.xlane.f32.xlu0 %v5912_v0  ;;  %v7091_v50 = vrot.slane %v6383_v30, %v11006_v60  ;;  %v5427_v32 = vmul.f32 %v11120_v14, %v5164_v31  ;;  %v2886_v42 = vmax.f32 %v2530_v26, 0.0  ;;  %v5166_v18 = vmax.f32 %v4372_v36, 0.0  ;;  %v13361_v26 = vld [vmem:[#allocation13_spill] sm:$0xff] }
 0x29f   : > { %v11555_v9 = vpop.f32.mrf.mxu1  ;;  %5916 = vadd.xlane.f32.xlu1 %v5915_v56  ;;  %v5165_v40 = vmax.f32 %v4367_v8, 0.0  ;;  %v4382_v47 = vadd.f32 %v11089_v34, %v11476_v48  ;;  %v5426_v41 = vmul.f32 %v11120_v14, %v5163_v10  ;;  %v2538_v11 = vadd.f32 %v11104_v58, %v11499_v39  ;;  %9745 = vmatmul.mubr.msk.f32.gmra.mxu1 %vm2931_vm3, %v2885_v54 }
 0x2a0   : > { %v11562_v19 = vpop.f32.mrf.mxu0  ;;  %v11564_v45 = vpop.xlane.xlu0 %5727  ;;  %v11587_v31 = vsel %vm13333_vm1, %v7037_v4, %v7033_v52  ;;  %v11591_v36 = vadd.f32 %v10882_v24, %v13361_v26  ;;  %v7096_v8 = vrot.slane %v6384_v57, %v11025_v23  ;;  %v4377_v48 = vadd.f32 %v11089_v34, %v11492_v44  ;;  %9747 = vmatprep.mubr.msk.f32.mxu1 %vm2931_vm3, %v2886_v42 }
 0x2a1   : > { %v11570_v7 = vpop.f32.mrf.mxu1  ;;  %v2887_v61 = vmax.f32 %v2533_v55, 0.0  ;;  %v6391_v52 = vadd.f32 %v10882_v24, %v11485_v22  ;;  %v5918_v4 = vsel %vm2931_vm3, %v5426_v41, 0.0  ;;  %v2888_v0 = vmax.f32 %v2538_v11, 0.0 }
 0x2a2   : > { %v11574_v33 = vpop.f32.mrf.mxu0  ;;  %v11576_v38 = vpop.xlane.xlu1 %5730  ;;  %v7092_v57 = vsel %vm6921_vm12, %v7091_v50, %v7087_v25  ;;  %v5429_v56 = vmul.f32 %v11120_v14, %v5166_v18  ;;  %v6390_v44 = vadd.f32 %v10882_v24, %v11468_v49  ;;  %5919 = vadd.xlane.f32.xlu0 %v5918_v4  ;;  %v5921_v42 = vsel %vm2931_vm3, %v5427_v32, 0.0 }
 0x2a3   : > { %v11584_v30 = vpop.f32.mrf.mxu1  ;;  %v5168_v22 = vmax.f32 %v4382_v47, 0.0  ;;  %v2546_v41 = vadd.f32 %v11104_v58, %v11483_v59  ;;  %v4392_v11 = vadd.f32 %v11089_v34, %v11505_v63  ;;  %5922 = vadd.xlane.f32.xlu1 %v5921_v42  ;;  %v5428_v18 = vmul.f32 %v11120_v14, %v5165_v40  ;;  %9748 = vmatmul.mubr.msk.f32.gmra.mxu1 %vm2931_vm3, %v2887_v61 }
 0x2a4   : > { %v11597_v10 = vpop.f32.mrf.mxu0  ;;  %v11599_v39 = vpop.xlane.xlu0 %5733  ;;  %v5167_v50 = vmax.f32 %v4377_v48, 0.0  ;;  %v4387_v32 = vadd.f32 %v11089_v34, %v11523_v5  ;;  %v2541_v59 = vadd.f32 %v11104_v58, %v11527_v6  ;;  %9750 = vmatprep.mubr.msk.f32.mxu1 %vm2931_vm3, %v2888_v0  ;;  %v7097_v40 = vsel %vm6928_vm13, %v7096_v8, %v7092_v57  ;;  %v13362_v34 = vld [vmem:[#allocation3_spill] sm:$0xff] }
 0x2a5   : > { %v11604_v54 = vpop.f32.mrf.mxu1  ;;  %v6385_v61 = vadd.f32 %v10882_v24, %v11396_v62  ;;  %v7130_v4 = vrot.slane %v6391_v52, %v10888_v29  ;;  %v5924_v48 = vsel %vm2931_vm3, %v5428_v18, 0.0  ;;  %v7126_v5 = vrot.slane %v6390_v44, %v13362_v34 }
 0x2a6   : > { %v11611_v26 = vpop.f32.mrf.mxu0  ;;  %v11613_v55 = vpop.xlane.xlu1 %5736  ;;  %v2549_v6 = vadd.f32 %v11104_v58, %v11512_v35  ;;  %5925 = vadd.xlane.f32.xlu0 %v5924_v48  ;;  %v2889_v0 = vmax.f32 %v2541_v59, 0.0  ;;  %v5927_v25 = vsel %vm2931_vm3, %v5429_v56, 0.0  ;;  %v5431_v62 = vmul.f32 %v11120_v14, %v5168_v22  ;;  %v11657_v58 = vld [vmem:[%s13307_s4] ss:$0 sm:$0xff] }
 0x2a7   : > { %v11621_v49 = vpop.f32.mrf.mxu1  ;;  %v2890_v52 = vmax.f32 %v2546_v41, 0.0  ;;  %v6392_v57 = vadd.f32 %v10882_v24, %v11501_v28  ;;  %v5170_v18 = vmax.f32 %v4392_v11, 0.0  ;;  %5928 = vadd.xlane.f32.xlu1 %v5927_v25  ;;  %v5169_v34 = vmax.f32 %v4387_v32, 0.0  ;;  %v11664_v14 = vld [vmem:[%s13308_s5] ss:$0 sm:$0xff] }
 0x2a8   : > { %v11630_v63 = vpop.f32.mrf.mxu0  ;;  %v11632_v47 = vpop.xlane.xlu0 %5739  ;;  %v4402_v35 = vadd.f32 %v11657_v58, %v11536_v53  ;;  %v5430_v28 = vmul.f32 %v11664_v14, %v5167_v50  ;;  %v11670_v56 = vld [vmem:[%s13305_s2] ss:$0 sm:$0xff]  ;;  %9751 = vmatmul.mubr.msk.f32.gmra.mxu1 %vm2931_vm3, %v2889_v0  ;;  %v7101_v11 = vrot.slane %v6385_v61, %v11063_v16  ;;  %v6386_v25 = vadd.f32 %v10882_v24, %v11411_v2 }
 0x2a9   : > { %v11639_v42 = vpop.f32.mrf.mxu1  ;;  %v2554_v22 = vadd.f32 %v11670_v56, %v11562_v19  ;;  %v7131_v50 = vsel %vm6865_vm4, %v7130_v4, %v7126_v5  ;;  %v4397_v32 = vadd.f32 %v11657_v58, %v11555_v9  ;;  %9753 = vmatprep.mubr.msk.f32.mxu1 %vm2931_vm3, %v2890_v52  ;;  %v2891_v19 = vmax.f32 %v2549_v6, 0.0 }
 0x2aa   : > { %v11645_v23 = vpop.f32.mrf.mxu0  ;;  %v11647_v8 = vpop.xlane.xlu1 %5742  ;;  %v6393_v48 = vadd.f32 %v10882_v24, %v11514_v15  ;;  %v5930_v0 = vsel %vm2931_vm3, %v5430_v28, 0.0  ;;  %v7135_v2 = vrot.slane %v6392_v57, %v10917_v1  ;;  %v5433_v4 = vmul.f32 %v11664_v14, %v5170_v18 }
 0x2ab   : > { %v11652_v44 = vpop.f32.mrf.mxu1  ;;  %v11699_v9 = vadd.f32 %v10882_v24, %v11529_v43  ;;  %5931 = vadd.xlane.f32.xlu0 %v5930_v0  ;;  %v5933_v5 = vsel %vm2931_vm3, %v5431_v62, 0.0  ;;  %v5172_v15 = vmax.f32 %v4402_v35, 0.0  ;;  %v2562_v52 = vadd.f32 %v11670_v56, %v11544_v3 }
 0x2ac   : > { %v11675_v41 = vpop.f32.mrf.mxu0  ;;  %v11677_v53 = vpop.xlane.xlu0 %5745  ;;  %v4412_v28 = vadd.f32 %v11657_v58, %v11570_v7  ;;  %5934 = vadd.xlane.f32.xlu1 %v5933_v5  ;;  %v5432_v57 = vmul.f32 %v11664_v14, %v5169_v34  ;;  %9754 = vmatmul.mubr.msk.f32.gmra.mxu1 %vm2931_vm3, %v2891_v19  ;;  %v7106_v62 = vrot.slane %v6386_v25, %v11066_v17 }
 0x2ad   : > { %13363 = vst [vmem:[#allocation13_spill] sm:$0xff] %v11677_v53  ;;  %v11686_v59 = vpop.f32.mrf.mxu1  ;;  %v2892_v53 = vmax.f32 %v2554_v22, 0.0  ;;  %v5171_v22 = vmax.f32 %v4397_v32, 0.0  ;;  %v4407_v35 = vadd.f32 %v11657_v58, %v11584_v30  ;;  %v2557_v3 = vadd.f32 %v11670_v56, %v11597_v10 }
 0x2ae   : > { %v11691_v61 = vpop.f32.mrf.mxu0  ;;  %v11693_v16 = vpop.xlane.xlu1 %5748  ;;  %v7102_v34 = vsel %vm6935_vm14, %v7101_v11, %v7097_v40  ;;  %v11725_v19 = vadd.f32 %v10882_v24, %v11426_v13  ;;  %v7140_v0 = vrot.slane %v6393_v48, %v10903_v51  ;;  %v5936_v25 = vsel %vm2931_vm3, %v5432_v57, 0.0  ;;  %v13367_v13 = vld [vmem:[#allocation4_spill] sm:$0xff] }
 0x2af   : > { %13364 = vst [vmem:[#allocation18_spill] sm:$0xff] %v11693_v16  ;;  %v11702_v6 = vpop.f32.mrf.mxu1  ;;  %9756 = vmatprep.mubr.msk.f32.mxu1 %vm2931_vm3, %v2892_v53  ;;  %v7136_v10 = vsel %vm6872_vm5, %v7135_v2, %v7131_v50  ;;  %v2565_v53 = vadd.f32 %v11670_v56, %v11574_v33  ;;  %5937 = vadd.xlane.f32.xlu0 %v5936_v25  ;;  %v2893_v5 = vmax.f32 %v2557_v3, 0.0  ;;  %v5939_v40 = vsel %vm2931_vm3, %v5433_v4, 0.0 }
 0x2b0   : > { %v11710_v18 = vpop.f32.mrf.mxu0  ;;  %v11712_v43 = vpop.xlane.xlu0 %5751  ;;  %v7145_v48 = vrot.slane %v11699_v9, %v13367_v13  ;;  %v5435_v57 = vmul.f32 %v11664_v14, %v5172_v15  ;;  %v5174_v16 = vmax.f32 %v4412_v28, 0.0  ;;  %5940 = vadd.xlane.f32.xlu1 %v5939_v40  ;;  %v5173_v2 = vmax.f32 %v4407_v35, 0.0 }
 0x2b1   : > { %13365 = vst [vmem:[#allocation19_spill] sm:$0xff] %v11712_v43  ;;  %v11720_v7 = vpop.f32.mrf.mxu1  ;;  %v2894_v43 = vmax.f32 %v2562_v52, 0.0  ;;  %v4422_v33 = vadd.f32 %v11657_v58, %v11604_v54  ;;  %v5434_v4 = vmul.f32 %v11664_v14, %v5171_v22  ;;  %v2570_v3 = vadd.f32 %v11670_v56, %v11630_v63  ;;  %9757 = vmatmul.mubr.msk.f32.gmra.mxu1 %vm2931_vm3, %v2893_v5 }
 0x2b2   : > { %v11729_v32 = vpop.f32.mrf.mxu0  ;;  %v11731_v30 = vpop.xlane.xlu1 %5754  ;;  %v7107_v15 = vsel %vm13343_vm15, %v7106_v62, %v7102_v34  ;;  %v7141_v52 = vsel %vm6879_vm6, %v7140_v0, %v7136_v10  ;;  %v6395_v28 = vadd.f32 %v10882_v24, %v11546_v21  ;;  %v4417_v35 = vadd.f32 %v11657_v58, %v11621_v49 }
 0x2b3   : > { %13366 = vst [vmem:[#allocation20_spill] sm:$0xff] %v11731_v30  ;;  %v11737_v11 = vpop.f32.mrf.mxu1  ;;  %9759 = vmatprep.mubr.msk.f32.mxu1 %vm2931_vm3, %v2894_v43  ;;  %v2895_v63 = vmax.f32 %v2565_v53, 0.0  ;;  %v2578_v25 = vadd.f32 %v11670_v56, %v11611_v26  ;;  %v5942_v62 = vsel %vm2931_vm3, %v5434_v4, 0.0  ;;  %v2896_v34 = vmax.f32 %v2570_v3, 0.0 }
 0x2b4   : > { %v11742_v30 = vpop.f32.mrf.mxu0  ;;  %v11744_v50 = vpop.xlane.xlu0 %5757  ;;  %v7111_v21 = vrot.slane %v11725_v19, %v11084_v46  ;;  %v6388_v49 = vadd.f32 %v10882_v24, %v11437_v12  ;;  %v5437_v43 = vmul.f32 %v11664_v14, %v5174_v16  ;;  %5943 = vadd.xlane.f32.xlu0 %v5942_v62  ;;  %v5945_v10 = vsel %vm2931_vm3, %v5435_v57, 0.0 }
 0x2b5   : > { %v11752_v9 = vpop.f32.mrf.mxu1  ;;  %v7146_v26 = vsel %vm6886_vm7, %v7145_v48, %v7141_v52  ;;  %v5176_v40 = vmax.f32 %v4422_v33, 0.0  ;;  %v4432_v4 = vadd.f32 %v11657_v58, %v11639_v42  ;;  %5946 = vadd.xlane.f32.xlu1 %v5945_v10  ;;  %v5436_v19 = vmul.f32 %v11664_v14, %v5173_v2  ;;  %9760 = vmatmul.mubr.msk.f32.gmra.mxu1 %vm2931_vm3, %v2895_v63 }
 0x2b6   : > { %v11761_v54 = vpop.f32.mrf.mxu0  ;;  %v11763_v22 = vpop.xlane.xlu1 %5760  ;;  %v7150_v16 = vrot.slane %v6395_v28, %v10943_v37  ;;  %v6396_v57 = vadd.f32 %v10882_v24, %v11564_v45  ;;  %v5175_v3 = vmax.f32 %v4417_v35, 0.0  ;;  %v2573_v48 = vadd.f32 %v11670_v56, %v11675_v41  ;;  %9762 = vmatprep.mubr.msk.f32.mxu1 %vm2931_vm3, %v2896_v34 }
 0x2b7   : > { %v11768_v0 = vpop.f32.mrf.mxu1  ;;  %v2898_v2 = vmax.f32 %v2578_v25, 0.0  ;;  %v2581_v52 = vadd.f32 %v11670_v56, %v11645_v23  ;;  %v4427_v28 = vadd.f32 %v11657_v58, %v11652_v44  ;;  %v5948_v63 = vsel %vm2931_vm3, %v5436_v19, 0.0  ;;  %v13368_v44 = vld [vmem:[#allocation17_spill] sm:$0xff] }
 0x2b8   : > { %v11776_v53 = vpop.f32.mrf.mxu0  ;;  %v11778_v5 = vpop.xlane.xlu0 %5763  ;;  %v7112_v35 = vsel %vm13339_vm0, %v7111_v21, %v7107_v15  ;;  %5949 = vadd.xlane.f32.xlu0 %v5948_v63  ;;  %v2897_v41 = vmax.f32 %v2573_v48, 0.0  ;;  %v4442_v62 = vadd.f32 %v11657_v58, %v11686_v59  ;;  %v5951_v34 = vsel %vm2931_vm3, %v5437_v43, 0.0  ;;  %v13369_v48 = vld [vmem:[#allocation6_spill] sm:$0xff] }
 0x2b9   : > { %v11785_v12 = vpop.f32.mrf.mxu1  ;;  %v7116_v23 = vrot.slane %v6388_v49, %v13360_v20  ;;  %v11815_v19 = vadd.f32 %v10882_v24, %v13368_v44  ;;  %v5439_v46 = vmul.f32 %v11664_v14, %v5176_v40  ;;  %v5178_v15 = vmax.f32 %v4432_v4, 0.0  ;;  %5952 = vadd.xlane.f32.xlu1 %v5951_v34 }
 0x2ba   : > { %v11793_v33 = vpop.f32.mrf.mxu0  ;;  %v11795_v42 = vpop.xlane.xlu1 %5766  ;;  %v7151_v59 = vsel %vm6893_vm8, %v7150_v16, %v7146_v26  ;;  %v7155_v43 = vrot.slane %v6396_v57, %v13369_v48  ;;  %v5438_v63 = vmul.f32 %v11664_v14, %v5175_v3  ;;  %v2586_v37 = vadd.f32 %v11670_v56, %v11710_v18  ;;  %9763 = vmatmul.mubr.msk.f32.gmra.mxu1 %vm2931_vm3, %v2897_v41 }
 0x2bb   : > { %v11802_v45 = vpop.f32.mrf.mxu1  ;;  %v6397_v40 = vadd.f32 %v10882_v24, %v11576_v38  ;;  %v2899_v4 = vmax.f32 %v2581_v52, 0.0  ;;  %v5177_v34 = vmax.f32 %v4427_v28, 0.0  ;;  %v2594_v26 = vadd.f32 %v11670_v56, %v11691_v61  ;;  %9765 = vmatprep.mubr.msk.f32.mxu1 %vm2931_vm3, %v2898_v2 }
 0x2bc   : > { %v11808_v25 = vpop.f32.mrf.mxu0  ;;  %v11810_v10 = vpop.xlane.xlu0 %5769  ;;  %v5180_v57 = vmax.f32 %v4442_v62, 0.0  ;;  %v4437_v18 = vadd.f32 %v11657_v58, %v11702_v6  ;;  %v5954_v3 = vsel %vm2931_vm3, %v5438_v63, 0.0  ;;  %v2900_v41 = vmax.f32 %v2586_v37, 0.0 }
 0x2bd   : > { %v11818_v21 = vpop.f32.mrf.mxu1  ;;  %v7117_v38 = vsel %vm13333_vm1, %v7116_v23, %v7112_v35  ;;  %v7121_v61 = vrot.slane %v11815_v19, %v11276_v27  ;;  %v5441_v2 = vmul.f32 %v11664_v14, %v5178_v15  ;;  %5955 = vadd.xlane.f32.xlu0 %v5954_v3  ;;  %v5957_v52 = vsel %vm2931_vm3, %v5439_v46, 0.0  ;;  %v13372_v19 = vld [vmem:[#allocation7_spill] sm:$0xff] }
 0x2be   : > { %v11826_v49 = vpop.f32.mrf.mxu0  ;;  %v11828_v44 = vpop.xlane.xlu1 %5772  ;;  %v7156_v6 = vsel %vm6900_vm9, %v7155_v43, %v7151_v59  ;;  %v6398_v37 = vadd.f32 %v10882_v24, %v11599_v39  ;;  %v4452_v62 = vadd.f32 %v11657_v58, %v11720_v7  ;;  %5958 = vadd.xlane.f32.xlu1 %v5957_v52  ;;  %9766 = vmatmul.mubr.msk.f32.gmra.mxu1 %vm2931_vm3, %v2899_v4  ;;  %v2902_v15 = vmax.f32 %v2594_v26, 0.0 }
 0x2bf   : > { %v11835_v16 = vpop.f32.mrf.mxu1  ;;  %v7160_v46 = vrot.slane %v6397_v40, %v13372_v19  ;;  %v5440_v63 = vmul.f32 %v11664_v14, %v5177_v34  ;;  %v2589_v59 = vadd.f32 %v11670_v56, %v11742_v30  ;;  %9768 = vmatprep.mubr.msk.f32.mxu1 %vm2931_vm3, %v2900_v41  ;;  %v5443_v7 = vmul.f32 %v11664_v14, %v5180_v57  ;;  %v13375_v19 = vld [vmem:[#allocation16_spill] sm:$0xff] }
 0x2c0   : > { %v11840_v20 = vpop.f32.mrf.mxu0  ;;  %v11842_v48 = vpop.xlane.xlu0 %5775  ;;  %v5179_v43 = vmax.f32 %v4437_v18, 0.0  ;;  %v2597_v4 = vadd.f32 %v11670_v56, %v11729_v32  ;;  %v4447_v3 = vadd.f32 %v11657_v58, %v11737_v11  ;;  %v4462_v41 = vadd.f32 %v11657_v58, %v11752_v9  ;;  %v13374_v18 = vld [vmem:[#allocation15_spill] sm:$0xff] }
 0x2c1   : > { %13370 = vst [vmem:[#allocation4_spill] sm:$0xff] %v11842_v48  ;;  %v11849_v28 = vpop.f32.mrf.mxu1  ;;  %v5960_v34 = vsel %vm2931_vm3, %v5440_v63, 0.0  ;;  %v2901_v30 = vmax.f32 %v2589_v59, 0.0  ;;  %v5963_v52 = vsel %vm2931_vm3, %v5441_v2, 0.0  ;;  %v13376_v32 = vrot.slane %v13375_v19, %v11276_v27 }
 0x2c2   : > { %v11857_v35 = vpop.f32.mrf.mxu0  ;;  %v11859_v23 = vpop.xlane.xlu1 %5778  ;;  %vm13338_vm1 = vcmask 1041409   ;;  %5961 = vadd.xlane.f32.xlu0 %v5960_v34  ;;  %5964 = vadd.xlane.f32.xlu1 %v5963_v52  ;;  %v13378_v9 = vrot.slane %v11591_v36, %v11276_v27  ;;  %v7122_v59 = vsel %vm13334_vm2, %v7121_v61, %v7117_v38  ;;  %v7161_v19 = vsel %vm6907_vm10, %v7160_v46, %v7156_v6 }
 0x2c3   : > { %13371 = vst [vmem:[#allocation17_spill] sm:$0xff] %v11859_v23  ;;  %v11866_v39 = vpop.f32.mrf.mxu1  ;;  %v6964_v11 = vsel %vm13334_vm2, %v13376_v32, %v13374_v18  ;;  %v13377_v23 = vld [vmem:[#allocation8_spill] sm:$0xff]  ;;  %v6399_v18 = vadd.f32 %v10882_v24, %v11613_v55  ;;  %9769 = vmatmul.mubr.msk.f32.gmra.mxu1 %vm2931_vm3, %v2901_v30  ;;  %v4457_v34 = vadd.f32 %v11657_v58, %v11768_v0  ;;  %v2903_v38 = vmax.f32 %v2597_v4, 0.0 }
 0x2c4   : > { %v11873_v40 = vpop.f32.mrf.mxu0  ;;  %v11875_v26 = vpop.xlane.xlu0 %5781  ;;  %v7165_v48 = vrot.slane %v6398_v37, %v13377_v23  ;;  %v7043_v2 = vsel %vm13334_vm2, %v13378_v9, %v11587_v31  ;;  %v5442_v52 = vmul.f32 %v11664_v14, %v5179_v43  ;;  %v2602_v31 = vadd.f32 %v11670_v56, %v11776_v53  ;;  %9771 = vmatprep.mubr.msk.f32.mxu1 %vm2931_vm3, %v2902_v15 }
 0x2c5   : > { %13373 = vst [vmem:[#allocation21_spill] sm:$0xff] %v11875_v26  ;;  %v11881_v57 = vpop.f32.mrf.mxu1  ;;  %v5182_v26 = vmax.f32 %v4452_v62, 0.0  ;;  %v5181_v62 = vmax.f32 %v4447_v3, 0.0  ;;  %v5184_v61 = vmax.f32 %v4462_v41, 0.0  ;;  %v2610_v55 = vadd.f32 %v11670_v56, %v11761_v54 }
 0x2c6   : > { %v11889_v63 = vpop.xlane.xlu1 %5784  ;;  %v11909_v36 = vpop.f32.mrf.mxu0  ;;  %v5969_v6 = vsel %vm2931_vm3, %v5443_v7, 0.0  ;;  %v7166_v0 = vsel %vm6914_vm11, %v7165_v48, %v7161_v19  ;;  %v5966_v53 = vsel %vm2931_vm3, %v5442_v52, 0.0  ;;  %v2904_v15 = vmax.f32 %v2602_v31, 0.0 }
 0x2c7   : > { %v11901_v37 = vpop.f32.mrf.mxu1  ;;  %v5445_v43 = vmul.f32 %v11664_v14, %v5182_v26  ;;  %5970 = vadd.xlane.f32.xlu1 %v5969_v6  ;;  %vm13337_vm2 = vcmask 1042434   ;;  %v7170_v4 = vrot.slane %v6399_v18, %v11006_v60  ;;  %v11924_v54 = vadd.f32 %v10882_v24, %v11632_v47  ;;  %5967 = vadd.xlane.f32.xlu0 %v5966_v53 }
 0x2c8   : > { %v11914_v46 = vpop.xlane.xlu0 %5787  ;;  %v4472_v7 = vadd.f32 %v11657_v58, %v11785_v12  ;;  %9772 = vmatmul.mubr.msk.f32.gmra.mxu1 %vm2931_vm3, %v2903_v38  ;;  %v5183_v26 = vmax.f32 %v4457_v34, 0.0  ;;  %v4467_v30 = vadd.f32 %v11657_v58, %v11802_v45  ;;  %v5444_v41 = vmul.f32 %v11664_v14, %v5181_v62  ;;  %v11937_v47 = vpop.f32.mrf.mxu0 }
 0x2c9   : > { %v11916_v3 = vpop.f32.mrf.mxu1  ;;  %v2605_v32 = vadd.f32 %v11670_v56, %v11808_v25  ;;  %9774 = vmatprep.mubr.msk.f32.mxu1 %vm2931_vm3, %v2904_v15  ;;  %v8151_v12 = vsel %vm13338_vm1, %v7043_v2, %v6964_v11  ;;  %v5447_v19 = vmul.f32 %v11664_v14, %v5184_v61  ;;  %v2906_v18 = vmax.f32 %v2610_v55, 0.0 }
 0x2ca   : > { %v11939_v9 = vpop.xlane.xlu1 %5790  ;;  %v2613_v45 = vadd.f32 %v11670_v56, %v11793_v33  ;;  %v5972_v62 = vsel %vm2931_vm3, %v5444_v41, 0.0  ;;  %v5975_v25 = vsel %vm2931_vm3, %v5445_v43, 0.0  ;;  %v11950_v31 = vsel %vm13337_vm2, %v7122_v59, %v8151_v12  ;;  %v13380_v33 = vld [vmem:[#allocation9_spill] sm:$0xff] }
 0x2cb   : > { %v11929_v48 = vpop.f32.mrf.mxu1  ;;  %v2905_v52 = vmax.f32 %v2605_v32, 0.0  ;;  %13379 = vst [vmem:[#allocation15_spill] sm:$0xff] %v11950_v31  ;;  %v7171_v38 = vsel %vm6921_vm12, %v7170_v4, %v7166_v0  ;;  %v6407_v11 = vadd.f32 %v10882_v24, %v11763_v22  ;;  %v5186_v2 = vmax.f32 %v4472_v7, 0.0  ;;  %5973 = vadd.xlane.f32.xlu0 %v5972_v62  ;;  %5976 = vadd.xlane.f32.xlu1 %v5975_v25  ;;  %v11965_v0 = vpop.f32.mrf.mxu0 }
 0x2cc   : > { %v11955_v61 = vpop.xlane.xlu0 %5793  ;;  %v7175_v6 = vrot.slane %v11924_v54, %v13380_v33  ;;  %v5185_v53 = vmax.f32 %v4467_v30, 0.0  ;;  %v4482_v59 = vadd.f32 %v11657_v58, %v11818_v21  ;;  %v5446_v43 = vmul.f32 %v11664_v14, %v5183_v26 }
 0x2cd   : > { %v11943_v34 = vpop.f32.mrf.mxu1  ;;  %9775 = vmatmul.mubr.msk.f32.gmra.mxu1 %vm2931_vm3, %v2905_v52  ;;  %v11969_v22 = vadd.f32 %v10882_v24, %v11647_v8  ;;  %v6406_v15 = vadd.f32 %v10882_v24, %v11744_v50  ;;  %v4477_v4 = vadd.f32 %v11657_v58, %v11835_v16  ;;  %v2618_v54 = vadd.f32 %v11670_v56, %v11840_v20  ;;  %v11998_v62 = vpop.f32.mrf.mxu0 }
 0x2ce   : > { %9777 = vmatprep.mubr.msk.f32.mxu1 %vm2931_vm3, %v2906_v18  ;;  %v2907_v7 = vmax.f32 %v2613_v45, 0.0  ;;  %v2626_v26 = vadd.f32 %v11670_v56, %v11826_v49  ;;  %v5978_v8 = vsel %vm2931_vm3, %v5446_v43, 0.0  ;;  %v5981_v30 = vsel %vm2931_vm3, %v5447_v19, 0.0 }
 0x2cf   : > { %v11957_v55 = vpop.f32.mrf.mxu1  ;;  %v11984_v41 = vpop.xlane.xlu1 %5796  ;;  %v7209_v50 = vrot.slane %v6407_v11, %v10888_v29  ;;  %v6408_v16 = vadd.f32 %v10882_v24, %v11778_v5  ;;  %v5449_v20 = vmul.f32 %v11664_v14, %v5186_v2  ;;  %5979 = vadd.xlane.f32.xlu0 %v5978_v8  ;;  %v2908_v32 = vmax.f32 %v2618_v54, 0.0  ;;  %5982 = vadd.xlane.f32.xlu1 %v5981_v30  ;;  %v13381_v5 = vld [vmem:[#allocation3_spill] sm:$0xff] }
 0x2d0   : > { %v5188_v18 = vmax.f32 %v4482_v59, 0.0  ;;  %v4492_v49 = vadd.f32 %v11657_v58, %v11849_v28  ;;  %v4487_v19 = vadd.f32 %v11657_v58, %v11866_v39  ;;  %v5448_v45 = vmul.f32 %v11664_v14, %v5185_v53 }
 0x2d1   : > { %v11978_v21 = vpop.f32.mrf.mxu1  ;;  %9778 = vmatmul.mubr.msk.f32.gmra.mxu1 %vm2931_vm3, %v2907_v7  ;;  %v7205_v52 = vrot.slane %v6406_v15, %v13381_v5  ;;  %v6409_v25 = vadd.f32 %v10882_v24, %v11795_v42  ;;  %v5187_v11 = vmax.f32 %v4477_v4, 0.0  ;;  %v2621_v2 = vadd.f32 %v11670_v56, %v11873_v40  ;;  %v12006_v28 = vpop.xlane.xlu0 %5799 }
 0x2d2   : > { %9780 = vmatprep.mubr.msk.f32.mxu1 %vm2931_vm3, %v2908_v32  ;;  %v2910_v53 = vmax.f32 %v2626_v26, 0.0  ;;  %v2629_v59 = vadd.f32 %v11670_v56, %v11857_v35  ;;  %v5189_v43 = vmax.f32 %v4487_v19, 0.0  ;;  %v5984_v15 = vsel %vm2931_vm3, %v5448_v45, 0.0  ;;  %v13383_v26 = vld [vmem:[#allocation13_spill] sm:$0xff] }
 0x2d3   : > { %v11990_v12 = vpop.f32.mrf.mxu1  ;;  %v12014_v54 = vsel %vm6928_vm13, %v7175_v6, %v7171_v38  ;;  %v7214_v42 = vrot.slane %v6408_v16, %v10917_v1  ;;  %5985 = vadd.xlane.f32.xlu0 %v5984_v15  ;;  %v2909_v40 = vmax.f32 %v2621_v2, 0.0  ;;  %v5987_v4 = vsel %vm2931_vm3, %v5449_v20, 0.0  ;;  %v12018_v7 = vpop.xlane.xlu1 %5802 }
 0x2d4   : > { %13382 = vst [vmem:[#allocation16_spill] sm:$0xff] %v12018_v7  ;;  %v12024_v30 = vadd.f32 %v10882_v24, %v13383_v26  ;;  %v7210_v35 = vsel %vm6865_vm4, %v7209_v50, %v7205_v52  ;;  %v5451_v32 = vmul.f32 %v11664_v14, %v5188_v18  ;;  %v5190_v38 = vmax.f32 %v4492_v49, 0.0  ;;  %5988 = vadd.xlane.f32.xlu1 %v5987_v4  ;;  %v12028_v6 = vpop.f32.mrf.mxu0 }
 0x2d5   : > { %v12008_v39 = vpop.f32.mrf.mxu1  ;;  %v6410_v16 = vadd.f32 %v10882_v24, %v11810_v10  ;;  %v4502_v20 = vadd.f32 %v11657_v58, %v11881_v57  ;;  %v4497_v19 = vadd.f32 %v11657_v58, %v11901_v37  ;;  %v5450_v45 = vmul.f32 %v11664_v14, %v5187_v11  ;;  %9781 = vmatmul.mubr.msk.f32.gmra.mxu1 %vm2931_vm3, %v2909_v40  ;;  %v12038_v50 = vpop.xlane.xlu0 %5805 }
 0x2d6   : > { %v7219_v49 = vrot.slane %v6409_v25, %v10903_v51  ;;  %v2911_v52 = vmax.f32 %v2629_v59, 0.0  ;;  %v5452_v2 = vmul.f32 %v11664_v14, %v5189_v43  ;;  %v2634_v10 = vadd.f32 %v11670_v56, %v11937_v47  ;;  %9783 = vmatprep.mubr.msk.f32.mxu1 %vm2931_vm3, %v2910_v53  ;;  %v2649_v53 = vpop.f32.mrf.mxu0 }
 0x2d7   : > { %v12020_v8 = vpop.f32.mrf.mxu1  ;;  %v7215_v57 = vsel %vm6872_vm5, %v7214_v42, %v7210_v35  ;;  %v6411_v37 = vadd.f32 %v10882_v24, %v11828_v44  ;;  %v5191_v11 = vmax.f32 %v4497_v19, 0.0  ;;  %v5990_v15 = vsel %vm2931_vm3, %v5450_v45, 0.0  ;;  %v13384_v42 = vld [vmem:[#allocation10_spill] sm:$0xff] }
 0x2d8   : > { %v5453_v25 = vmul.f32 %v11664_v14, %v5190_v38  ;;  %v2642_v59 = vadd.f32 %v11670_v56, %v11909_v36  ;;  %5991 = vadd.xlane.f32.xlu0 %v5990_v15  ;;  %v2912_v43 = vmax.f32 %v2634_v10, 0.0  ;;  %v5993_v47 = vsel %vm2931_vm3, %v5451_v32, 0.0  ;;  %v12057_v4 = vpop.xlane.xlu1 %5808 }
 0x2d9   : > { %v12040_v18 = vpop.f32.mrf.mxu1  ;;  %v7180_v44 = vrot.slane %v11969_v22, %v13384_v42  ;;  %v7185_v26 = vrot.slane %v12024_v30, %v11066_v17  ;;  %v7224_v35 = vrot.slane %v6410_v16, %v13367_v13  ;;  %v5192_v19 = vmax.f32 %v4502_v20, 0.0  ;;  %5994 = vadd.xlane.f32.xlu1 %v5993_v47  ;;  %9784 = vmatmul.mubr.msk.f32.gmra.mxu1 %vm2931_vm3, %v2911_v52  ;;  %v13385_v30 = vld [vmem:[#allocation4_spill] sm:$0xff] }
 0x2da   : > { %v12064_v38 = vpop.xlane.xlu0 %5811  ;;  %v7220_v45 = vsel %vm6879_vm6, %v7219_v49, %v7215_v57  ;;  %v4512_v32 = vadd.f32 %v11657_v58, %v11916_v3  ;;  %v4507_v10 = vadd.f32 %v11657_v58, %v11929_v48  ;;  %v5996_v22 = vsel %vm2931_vm3, %v5452_v2, 0.0  ;;  %9786 = vmatprep.mubr.msk.f32.mxu1 %vm2931_vm3, %v2912_v43  ;;  %v13386_v48 = vld [vmem:[#allocation5_spill] sm:$0xff]  ;;  %v9405_v43 = vpop.f32.mrf.mxu0 }
 0x2db   : > { %v12051_v40 = vpop.f32.mrf.mxu1  ;;  %v6412_v16 = vadd.f32 %v10882_v24, %v13385_v30  ;;  %v5454_v20 = vmul.f32 %v11664_v14, %v5191_v11  ;;  %v2645_v15 = vadd.f32 %v11670_v56, %v11965_v0  ;;  %v2637_v49 = vadd.f32 %v11670_v56, %v11998_v62 }
 0x2dc   : > { %v7229_v57 = vrot.slane %v6411_v37, %v13386_v48  ;;  %v2914_v2 = vmax.f32 %v2642_v59, 0.0  ;;  %v5193_v47 = vmax.f32 %v4507_v10, 0.0  ;;  %5997 = vadd.xlane.f32.xlu0 %v5996_v22  ;;  %v5999_v52 = vsel %vm2931_vm3, %v5453_v25, 0.0  ;;  %v12087_v30 = vpop.xlane.xlu1 %5814  ;;  %v13387_v59 = vld [vmem:[#allocation18_spill] sm:$0xff]  ;;  %v2652_v27 = vpop.f32.mrf.mxu0 }
 0x2dd   : > { %v12066_v36 = vpop.f32.mrf.mxu1  ;;  %v7225_v11 = vsel %vm6886_vm7, %v7224_v35, %v7220_v45  ;;  %v5455_v0 = vmul.f32 %v11664_v14, %v5192_v19  ;;  %v2913_v31 = vmax.f32 %v2637_v49, 0.0  ;;  %v4522_v62 = vadd.f32 %v11657_v58, %v11943_v34  ;;  %6000 = vadd.xlane.f32.xlu1 %v5999_v52  ;;  %v13388_v45 = vld [vmem:[#allocation6_spill] sm:$0xff] }
 0x2de   : > { %v7181_v37 = vsel %vm6935_vm14, %v7180_v44, %v12014_v54  ;;  %v12099_v25 = vadd.f32 %v10882_v24, %v13387_v59  ;;  %v5194_v10 = vmax.f32 %v4512_v32, 0.0  ;;  %v4517_v35 = vadd.f32 %v11657_v58, %v11957_v55 }
 0x2df   : > { %v12083_v3 = vpop.f32.mrf.mxu1  ;;  %v12103_v19 = vpop.xlane.xlu0 %5817  ;;  %v7234_v22 = vrot.slane %v6412_v16, %v13388_v45  ;;  %v2915_v34 = vmax.f32 %v2645_v15, 0.0  ;;  %v6002_v49 = vsel %vm2931_vm3, %v5454_v20, 0.0  ;;  %v2650_v52 = vadd.f32 %v11670_v56, %v2649_v53  ;;  %9787 = vmatmul.mubr.msk.f32.gmra.mxu1 %vm2931_vm3, %v2913_v31 }
 0x2e0   : > { %v7230_v44 = vsel %vm6893_vm8, %v7229_v57, %v7225_v11  ;;  %v5456_v32 = vmul.f32 %v11664_v14, %v5193_v47  ;;  %v2658_v55 = vadd.f32 %v11670_v56, %v12028_v6  ;;  %v5195_v59 = vmax.f32 %v4517_v35, 0.0  ;;  %6003 = vadd.xlane.f32.xlu0 %v6002_v49  ;;  %9789 = vmatprep.mubr.msk.f32.mxu1 %vm2931_vm3, %v2914_v2  ;;  %v13389_v6 = vld [vmem:[#allocation11_spill] sm:$0xff] }
 0x2e1   : > { %v12093_v7 = vpop.f32.mrf.mxu1  ;;  %v12116_v16 = vpop.xlane.xlu1 %5820  ;;  %v5196_v20 = vmax.f32 %v4522_v62, 0.0  ;;  %v2916_v15 = vmax.f32 %v2650_v52, 0.0  ;;  %v4532_v31 = vadd.f32 %v11657_v58, %v11978_v21  ;;  %v6005_v53 = vsel %vm2931_vm3, %v5455_v0, 0.0  ;;  %v13390_v21 = vld [vmem:[#allocation17_spill] sm:$0xff] }
 0x2e2   : > { %v12124_v47 = vsel %vm13343_vm15, %v7185_v26, %v7181_v37  ;;  %v5457_v2 = vmul.f32 %v11664_v14, %v5194_v10  ;;  %6006 = vadd.xlane.f32.xlu1 %v6005_v53  ;;  %v2661_v62 = vadd.f32 %v11670_v56, %v9405_v43  ;;  %v12131_v35 = vsel %vm6900_vm9, %v7234_v22, %v7230_v44 }
 0x2e3   : > { %v12109_v54 = vpop.f32.mrf.mxu1  ;;  %v12135_v0 = vadd.f32 %v10882_v24, %v13390_v21  ;;  %v5198_v49 = vmax.f32 %v4532_v31, 0.0  ;;  %v4527_v26 = vadd.f32 %v11657_v58, %v11990_v12  ;;  %9790 = vmatmul.mubr.msk.f32.gmra.mxu1 %vm2931_vm3, %v2915_v34  ;;  %v5458_v10 = vmul.f32 %v11664_v14, %v5195_v59 }
 0x2e4   : > { %v12140_v37 = vpop.xlane.xlu0 %5823  ;;  %v6008_v43 = vsel %vm2931_vm3, %v5456_v32, 0.0  ;;  %v2653_v22 = vadd.f32 %v11670_v56, %v2652_v27  ;;  %v6422_v44 = vadd.f32 %v10882_v24, %v12038_v50  ;;  %9792 = vmatprep.mubr.msk.f32.mxu1 %vm2931_vm3, %v2916_v15  ;;  %v5459_v12 = vmul.f32 %v11664_v14, %v5196_v20 }
 0x2e5   : > { %v12121_v57 = vpop.f32.mrf.mxu1  ;;  %v12150_v31 = vpop.xlane.xlu1 %5826  ;;  %v2918_v34 = vmax.f32 %v2658_v55, 0.0  ;;  %v5197_v53 = vmax.f32 %v4527_v26, 0.0  ;;  %6009 = vadd.xlane.f32.xlu0 %v6008_v43  ;;  %v4542_v21 = vadd.f32 %v11657_v58, %v12008_v39  ;;  %v2919_v32 = vmax.f32 %v2661_v62, 0.0 }
 0x2e6   : > { %v2917_v11 = vmax.f32 %v2653_v22, 0.0  ;;  %v6011_v27 = vsel %vm2931_vm3, %v5457_v2, 0.0  ;;  %v6423_v56 = vadd.f32 %v10882_v24, %v12057_v4  ;;  %v5461_v50 = vmul.f32 %v11664_v14, %v5198_v49 }
 0x2e7   : > { %v12142_v52 = vpop.f32.mrf.mxu1  ;;  %v5460_v15 = vmul.f32 %v11664_v14, %v5197_v53  ;;  %v5200_v20 = vmax.f32 %v4542_v21, 0.0  ;;  %6012 = vadd.xlane.f32.xlu1 %v6011_v27  ;;  %v4537_v55 = vadd.f32 %v11657_v58, %v12020_v8  ;;  %v7284_v62 = vrot.slane %v6422_v44, %v13381_v5 }
 0x2e8   : > { %v5830_v26 = vpop.xlane.xlu0 %5829  ;;  %v7288_v43 = vrot.slane %v6423_v56, %v10888_v29  ;;  %v6014_v2 = vsel %vm2931_vm3, %v5458_v10, 0.0  ;;  %v6424_v4 = vadd.f32 %v10882_v24, %v12064_v38  ;;  %9793 = vmatmul.mubr.msk.f32.gmra.mxu1 %vm2931_vm3, %v2917_v11  ;;  %v4552_v8 = vadd.f32 %v11657_v58, %v12040_v18 }
 0x2e9   : > { %v12155_v59 = vpop.f32.mrf.mxu1  ;;  %v5463_v49 = vmul.f32 %v11664_v14, %v5200_v20  ;;  %v5199_v22 = vmax.f32 %v4537_v55, 0.0  ;;  %6015 = vadd.xlane.f32.xlu0 %v6014_v2  ;;  %v6017_v53 = vsel %vm2931_vm3, %v5459_v12, 0.0  ;;  %9795 = vmatprep.mubr.msk.f32.mxu1 %vm2931_vm3, %v2918_v34  ;;  %v6425_v11 = vadd.f32 %v10882_v24, %v12087_v30  ;;  %v13391_v2 = vld [vmem:[#allocation7_spill] sm:$0xff] }
 0x2ea   : > { %v5833_v44 = vpop.xlane.xlu1 %5832  ;;  %v7289_v10 = vsel %vm6865_vm4, %v7288_v43, %v7284_v62  ;;  %v7293_v38 = vrot.slane %v6424_v4, %v10917_v1  ;;  %v4547_v27 = vadd.f32 %v11657_v58, %v12051_v40  ;;  %v5202_v18 = vmax.f32 %v4552_v8, 0.0 }
 0x2eb   : > { %v12164_v39 = vpop.f32.mrf.mxu1  ;;  %v5462_v56 = vmul.f32 %v11664_v14, %v5199_v22  ;;  %6018 = vadd.xlane.f32.xlu1 %v6017_v53  ;;  %v6020_v12 = vsel %vm2931_vm3, %v5460_v15, 0.0  ;;  %v6426_v34 = vadd.f32 %v10882_v24, %v12103_v19  ;;  %v7298_v43 = vrot.slane %v6425_v11, %v10903_v51 }
 0x2ec   : > { %v5836_v20 = vpop.xlane.xlu0 %5835  ;;  %v7294_v62 = vsel %vm6872_vm5, %v7293_v38, %v7289_v10  ;;  %v5201_v30 = vmax.f32 %v4547_v27, 0.0  ;;  %v4562_v40 = vadd.f32 %v11657_v58, %v12066_v36  ;;  %9796 = vmatmul.mubr.msk.f32.gmra.mxu1 %vm2931_vm3, %v2919_v32  ;;  %v7239_v4 = vrot.slane %v12135_v0, %v13391_v2 }
 0x2ed   : > { %v12177_v21 = vpop.f32.mrf.mxu1  ;;  %v5465_v15 = vmul.f32 %v11664_v14, %v5202_v18  ;;  %6021 = vadd.xlane.f32.xlu0 %v6020_v12  ;;  %v7303_v19 = vrot.slane %v6426_v34, %v13367_v13  ;;  %v6427_v22 = vadd.f32 %v10882_v24, %v12116_v16  ;;  %v7299_v53 = vsel %vm6879_vm6, %v7298_v43, %v7294_v62 }
 0x2ee   : > { %v5464_v10 = vmul.f32 %v11664_v14, %v5201_v30  ;;  %v6023_v36 = vsel %vm2931_vm3, %v5461_v50, 0.0  ;;  %v4557_v32 = vadd.f32 %v11657_v58, %v12083_v3  ;;  %v6026_v27 = vsel %vm2931_vm3, %v5462_v56, 0.0 }
 0x2ef   : > { %v12189_v55 = vpop.f32.mrf.mxu1  ;;  %v5839_v0 = vpop.xlane.xlu1 %5838  ;;  %v7304_v38 = vsel %vm6886_vm7, %v7303_v19, %v7299_v53  ;;  %6024 = vadd.xlane.f32.xlu1 %v6023_v36  ;;  %v7308_v11 = vrot.slane %v6427_v22, %v13386_v48  ;;  %v6428_v16 = vadd.f32 %v10882_v24, %v12140_v37  ;;  %v5204_v12 = vmax.f32 %v4562_v40, 0.0 }
 0x2f0   : > { %v5203_v34 = vmax.f32 %v4557_v32, 0.0  ;;  %v4572_v50 = vadd.f32 %v11657_v58, %v12093_v7  ;;  %v6029_v3 = vsel %vm2931_vm3, %v5463_v49, 0.0  ;;  %v6429_v56 = vadd.f32 %v10882_v24, %v12150_v31 }
 0x2f1   : > { %v12202_v8 = vpop.f32.mrf.mxu1  ;;  %v5842_v62 = vpop.xlane.xlu0 %5841  ;;  %v7309_v43 = vsel %vm6893_vm8, %v7308_v11, %v7304_v38  ;;  %6027 = vadd.xlane.f32.xlu0 %v6026_v27  ;;  %v7313_v30 = vrot.slane %v6428_v16, %v13388_v45  ;;  %v4567_v37 = vadd.f32 %v11657_v58, %v12109_v54  ;;  %v6032_v7 = vsel %vm2931_vm3, %v5464_v10, 0.0  ;;  %v13392_v11 = vld [vmem:[#allocation21_spill] sm:$0xff] }
 0x2f2   : > { %v5466_v40 = vmul.f32 %v11664_v14, %v5203_v34  ;;  %v5206_v22 = vmax.f32 %v4572_v50, 0.0  ;;  %v6430_v49 = vadd.f32 %v10882_v24, %v5830_v26  ;;  %v7318_v32 = vrot.slane %v6429_v56, %v13391_v2 }
 0x2f3   : > { %v12214_v18 = vpop.f32.mrf.mxu1  ;;  %v5845_v53 = vpop.xlane.xlu1 %5844  ;;  %v7314_v36 = vsel %vm6900_vm9, %v7313_v30, %v7309_v43  ;;  %6030 = vadd.xlane.f32.xlu1 %v6029_v3  ;;  %v5205_v38 = vmax.f32 %v4567_v37, 0.0  ;;  %v4582_v31 = vadd.f32 %v11657_v58, %v12121_v57  ;;  %v12238_v27 = vadd.f32 %v10882_v24, %v13392_v11 }
 0x2f4   : > { %v5467_v10 = vmul.f32 %v11664_v14, %v5204_v12  ;;  %v7323_v26 = vrot.slane %v6430_v49, %v13377_v23  ;;  %v6431_v16 = vadd.f32 %v10882_v24, %v5833_v44  ;;  %v7319_v34 = vsel %vm6907_vm10, %v7318_v32, %v7314_v36 }
 0x2f5   : > { %v12225_v19 = vpop.f32.mrf.mxu1  ;;  %v5468_v50 = vmul.f32 %v11664_v14, %v5205_v38  ;;  %6033 = vadd.xlane.f32.xlu0 %v6032_v7  ;;  %v6035_v3 = vsel %vm2931_vm3, %v5465_v15, 0.0  ;;  %v4577_v57 = vadd.f32 %v11657_v58, %v12142_v52  ;;  %v6038_v44 = vsel %vm2931_vm3, %v5466_v40, 0.0 }
 0x2f6   : > { %v12248_v43 = vpop.xlane.xlu0 %5847  ;;  %v7324_v12 = vsel %vm6914_vm11, %v7323_v26, %v7319_v34  ;;  %v7328_v56 = vrot.slane %v6431_v16, %v11006_v60  ;;  %v6432_v37 = vadd.f32 %v10882_v24, %v5836_v20  ;;  %v7240_v7 = vsel %vm6907_vm10, %v7239_v4, %v12131_v35 }
 0x2f7   : > { %v12234_v54 = vpop.f32.mrf.mxu1  ;;  %v5469_v15 = vmul.f32 %v11664_v14, %v5206_v22  ;;  %v5208_v49 = vmax.f32 %v4582_v31, 0.0  ;;  %6036 = vadd.xlane.f32.xlu1 %v6035_v3  ;;  %v5207_v52 = vmax.f32 %v4577_v57, 0.0  ;;  %v6433_v11 = vadd.f32 %v10882_v24, %v5839_v0 }
 0x2f8   : > { %v7329_v32 = vsel %vm6921_vm12, %v7328_v56, %v7324_v12  ;;  %v7333_v38 = vrot.slane %v6432_v37, %v13380_v33  ;;  %v4587_v40 = vadd.f32 %v11657_v58, %v12164_v39  ;;  %v4592_v4 = vadd.f32 %v11657_v58, %v12155_v59 }
 0x2f9   : > { %v12250_v30 = vpop.f32.mrf.mxu1  ;;  %v12266_v20 = vpop.xlane.xlu1 %5850  ;;  %v5470_v35 = vmul.f32 %v11664_v14, %v5207_v52  ;;  %6039 = vadd.xlane.f32.xlu0 %v6038_v44  ;;  %v6041_v22 = vsel %vm2931_vm3, %v5467_v10, 0.0  ;;  %v6434_v31 = vadd.f32 %v10882_v24, %v5842_v62  ;;  %v7338_v34 = vrot.slane %v6433_v11, %v13384_v42 }
 0x2fa   : > { %v5854_v26 = vpop.xlane.xlu0 %5853  ;;  %v7334_v0 = vsel %vm6928_vm13, %v7333_v38, %v7329_v32  ;;  %v5209_v39 = vmax.f32 %v4587_v40, 0.0  ;;  %v6044_v3 = vsel %vm2931_vm3, %v5468_v50, 0.0  ;;  %v6415_v57 = vadd.f32 %v10882_v24, %v11889_v63 }
 0x2fb   : > { %v12259_v36 = vpop.f32.mrf.mxu1  ;;  %6042 = vadd.xlane.f32.xlu1 %v6041_v22  ;;  %v7343_v59 = vrot.slane %v6434_v31, %v11066_v17  ;;  %v4602_v10 = vadd.f32 %v11657_v58, %v12177_v21  ;;  %v6435_v62 = vadd.f32 %v10882_v24, %v5845_v53  ;;  %v7244_v56 = vrot.slane %v12238_v27, %v13377_v23 }
 0x2fc   : > { %v6416_v44 = vadd.f32 %v10882_v24, %v11914_v46  ;;  %v7339_v50 = vsel %vm6935_vm14, %v7338_v34, %v7334_v0  ;;  %v4597_v63 = vadd.f32 %v11657_v58, %v12189_v55  ;;  %v5471_v52 = vmul.f32 %v11664_v14, %v5208_v49  ;;  %v12301_v46 = vld [vmem:[%s13308_s5] ss:$0 sm:$0xff]  ;;  %v13393_v49 = vld [vmem:[#allocation19_spill] sm:$0xff] }
 0x2fd   : > { %v12273_v16 = vpop.f32.mrf.mxu1  ;;  %v5857_v37 = vpop.xlane.xlu1 %5856  ;;  %v5210_v32 = vmax.f32 %v4592_v4, 0.0  ;;  %6045 = vadd.xlane.f32.xlu0 %v6044_v3  ;;  %v7344_v21 = vsel %vm13343_vm15, %v7343_v59, %v7339_v50  ;;  %v7348_v53 = vrot.slane %v6435_v62, %v13389_v6  ;;  %v5472_v27 = vmul.f32 %v12301_v46, %v5209_v39  ;;  %v12327_v39 = vld [vmem:[%s13307_s4] ss:$0 sm:$0xff] }
 0x2fe   : > { %v5860_v38 = vpop.xlane.xlu0 %5859  ;;  %v6047_v58 = vsel %vm2931_vm3, %v5469_v15, 0.0  ;;  %v5211_v55 = vmax.f32 %v4597_v63, 0.0  ;;  %v6050_v14 = vsel %vm2931_vm3, %v5470_v35, 0.0  ;;  %v12308_v40 = vadd.f32 %v10882_v24, %v13393_v49 }
 0x2ff   : > { %v12284_v12 = vpop.f32.mrf.mxu1  ;;  %v7249_v4 = vrot.slane %v6415_v57, %v11006_v60  ;;  %v5212_v22 = vmax.f32 %v4602_v10, 0.0  ;;  %6048 = vadd.xlane.f32.xlu1 %v6047_v58  ;;  %v12312_v31 = vsel %vm13339_vm0, %v7348_v53, %v7344_v21  ;;  %v13394_v15 = vrot.slane %v12099_v25, %v13389_v6 }
 0x300   : > { %v7245_v35 = vsel %vm6914_vm11, %v7244_v56, %v7240_v7  ;;  %v4612_v3 = vadd.f32 %v12327_v39, %v12202_v8  ;;  %v4607_v57 = vadd.f32 %v12327_v39, %v12214_v18  ;;  %v7254_v10 = vrot.slane %v6416_v44, %v13380_v33 }
 0x301   : > { %v12296_v11 = vpop.f32.mrf.mxu1  ;;  %v12321_v34 = vsel %vm13339_vm0, %v13394_v15, %v12124_v47  ;;  %v5863_v59 = vpop.xlane.xlu1 %5862  ;;  %v5473_v25 = vmul.f32 %v12301_v46, %v5210_v32  ;;  %v5474_v47 = vmul.f32 %v12301_v46, %v5211_v55  ;;  %6051 = vadd.xlane.f32.xlu0 %v6050_v14  ;;  %v6438_v7 = vadd.f32 %v10882_v24, %v5854_v26 }
 0x302   : > { %v6053_v56 = vsel %vm2931_vm3, %v5471_v52, 0.0  ;;  %v5213_v50 = vmax.f32 %v4607_v57, 0.0  ;;  %v6056_v8 = vsel %vm2931_vm3, %v5472_v27, 0.0  ;;  %v6439_v63 = vadd.f32 %v10882_v24, %v5857_v37 }
 0x303   : > { %v12314_v0 = vpop.f32.mrf.mxu1  ;;  %v5866_v18 = vpop.xlane.xlu0 %5865  ;;  %v7250_v21 = vsel %vm6921_vm12, %v7249_v4, %v7245_v35  ;;  %v6417_v44 = vadd.f32 %v10882_v24, %v11939_v9  ;;  %v5475_v32 = vmul.f32 %v12301_v46, %v5212_v22  ;;  %6054 = vadd.xlane.f32.xlu1 %v6053_v56  ;;  %v4617_v26 = vadd.f32 %v12327_v39, %v12234_v54 }
 0x304   : > { %v5214_v52 = vmax.f32 %v4612_v3, 0.0  ;;  %v7363_v58 = vrot.slane %v6438_v7, %v13381_v5  ;;  %v4622_v37 = vadd.f32 %v12327_v39, %v12225_v19  ;;  %v7367_v27 = vrot.slane %v6439_v63, %v10888_v29 }
 0x305   : > { %v12337_v62 = vpop.f32.mrf.mxu1  ;;  %v5869_v55 = vpop.xlane.xlu1 %5868  ;;  %v5476_v14 = vmul.f32 %v12301_v46, %v5213_v50  ;;  %6057 = vadd.xlane.f32.xlu0 %v6056_v8  ;;  %v6059_v9 = vsel %vm2931_vm3, %v5473_v25, 0.0  ;;  %v6062_v49 = vsel %vm2931_vm3, %v5474_v47, 0.0  ;;  %v6440_v54 = vadd.f32 %v10882_v24, %v5860_v38 }
 0x306   : > { %v7368_v22 = vsel %vm6865_vm4, %v7367_v27, %v7363_v58  ;;  %v5215_v15 = vmax.f32 %v4617_v26, 0.0  ;;  %v6441_v35 = vadd.f32 %v10882_v24, %v5863_v59  ;;  %v4627_v19 = vadd.f32 %v12327_v39, %v12259_v36 }
 0x307   : > { %v12348_v53 = vpop.f32.mrf.mxu1  ;;  %v7255_v3 = vsel %vm6928_vm13, %v7254_v10, %v7250_v21  ;;  %v7259_v57 = vrot.slane %v6417_v44, %v13384_v42  ;;  %v6418_v25 = vadd.f32 %v10882_v24, %v11955_v61  ;;  %6060 = vadd.xlane.f32.xlu1 %v6059_v9  ;;  %v7372_v38 = vrot.slane %v6440_v54, %v10917_v1  ;;  %v5872_v47 = vpop.xlane.xlu0 %5871 }
 0x308   : > { %v5216_v56 = vmax.f32 %v4622_v37, 0.0  ;;  %v4632_v59 = vadd.f32 %v12327_v39, %v12250_v30  ;;  %v7377_v50 = vrot.slane %v6441_v35, %v10903_v51  ;;  %v6442_v36 = vadd.f32 %v10882_v24, %v5866_v18 }
 0x309   : > { %v12358_v4 = vpop.f32.mrf.mxu1  ;;  %v5875_v10 = vpop.xlane.xlu1 %5874  ;;  %v5477_v8 = vmul.f32 %v12301_v46, %v5214_v52  ;;  %6063 = vadd.xlane.f32.xlu0 %v6062_v49  ;;  %v7373_v61 = vsel %vm6872_vm5, %v7372_v38, %v7368_v22  ;;  %v5217_v63 = vmax.f32 %v4627_v19, 0.0  ;;  %v6443_v21 = vadd.f32 %v10882_v24, %v5869_v55 }
 0x30a   : > { %v5478_v26 = vmul.f32 %v12301_v46, %v5215_v15  ;;  %v6065_v58 = vsel %vm2931_vm3, %v5475_v32, 0.0  ;;  %v6068_v30 = vsel %vm2931_vm3, %v5476_v14, 0.0  ;;  %v7382_v37 = vrot.slane %v6442_v36, %v13367_v13 }
 0x30b   : > { %v12369_v7 = vpop.f32.mrf.mxu1  ;;  %v7260_v18 = vsel %vm6935_vm14, %v7259_v57, %v7255_v3  ;;  %v7264_v52 = vrot.slane %v6418_v25, %v11066_v17  ;;  %6066 = vadd.xlane.f32.xlu1 %v6065_v58  ;;  %v7378_v27 = vsel %vm6879_vm6, %v7377_v50, %v7373_v61  ;;  %v4637_v55 = vadd.f32 %v12327_v39, %v12284_v12  ;;  %v13396_v50 = vld [vmem:[#allocation20_spill] sm:$0xff] }
 0x30c   : > { %v5878_v9 = vpop.xlane.xlu0 %5877  ;;  %v6419_v32 = vadd.f32 %v10882_v24, %v11984_v41  ;;  %v5479_v14 = vmul.f32 %v12301_v46, %v5216_v56  ;;  %v5218_v54 = vmax.f32 %v4632_v59, 0.0  ;;  %v4642_v22 = vadd.f32 %v12327_v39, %v12273_v16  ;;  %v13395_v56 = vld [vmem:[#allocation12_spill] sm:$0xff] }
 0x30d   : > { %v12378_v44 = vpop.f32.mrf.mxu1  ;;  %v5881_v15 = vpop.xlane.xlu1 %5880  ;;  %v5480_v35 = vmul.f32 %v12301_v46, %v5217_v63  ;;  %6069 = vadd.xlane.f32.xlu0 %v6068_v30  ;;  %v6071_v19 = vsel %vm2931_vm3, %v5477_v8, 0.0  ;;  %v7387_v12 = vrot.slane %v6443_v21, %v13386_v48  ;;  %v6444_v3 = vadd.f32 %v10882_v24, %v5872_v47 }
 0x30e   : > { %v7383_v41 = vsel %vm6886_vm7, %v7382_v37, %v7378_v27  ;;  %v5219_v25 = vmax.f32 %v4637_v55, 0.0  ;;  %v6074_v38 = vsel %vm2931_vm3, %v5478_v26, 0.0  ;;  %v4647_v16 = vadd.f32 %v12327_v39, %v12314_v0 }
 0x30f   : > { %v12389_v49 = vpop.f32.mrf.mxu1  ;;  %v7195_v59 = vrot.slane %v12308_v40, %v13395_v56  ;;  %v6405_v36 = vadd.f32 %v10882_v24, %v13396_v50  ;;  %v7265_v8 = vsel %vm13343_vm15, %v7264_v52, %v7260_v18  ;;  %v6420_v47 = vadd.f32 %v10882_v24, %v12006_v28  ;;  %6072 = vadd.xlane.f32.xlu1 %v6071_v19 }
 0x310   : > { %v7269_v63 = vrot.slane %v6419_v32, %v13389_v6  ;;  %v5481_v21 = vmul.f32 %v12301_v46, %v5218_v54  ;;  %v5220_v26 = vmax.f32 %v4642_v22, 0.0  ;;  %v4652_v0 = vadd.f32 %v12327_v39, %v12296_v11  ;;  %v5884_v40 = vpop.xlane.xlu0 %5883  ;;  %v13398_v22 = vld [vmem:[#allocation14_spill] sm:$0xff] }
 0x311   : > { %v12400_v57 = vpop.f32.mrf.mxu1  ;;  %v7388_v58 = vsel %vm6893_vm8, %v7387_v12, %v7383_v41  ;;  %6075 = vadd.xlane.f32.xlu0 %v6074_v38  ;;  %v7392_v30 = vrot.slane %v6444_v3, %v13388_v45  ;;  %v6077_v37 = vsel %vm2931_vm3, %v5479_v14, 0.0  ;;  %v6445_v28 = vadd.f32 %v10882_v24, %v5875_v10  ;;  %v13399_v10 = vld [vmem:[#allocation16_spill] sm:$0xff] }
 0x312   : > { %v12423_v18 = vpop.xlane.xlu1 %5886  ;;  %v5482_v27 = vmul.f32 %v12301_v46, %v5219_v25  ;;  %v5221_v55 = vmax.f32 %v4647_v16, 0.0  ;;  %v6080_v32 = vsel %vm2931_vm3, %v5480_v35, 0.0  ;;  %v4657_v11 = vadd.f32 %v12327_v39, %v12348_v53 }
 0x313   : > { %v12413_v61 = vpop.f32.mrf.mxu1  ;;  %vm13397_vm2 = vcmask 982912   ;;  %v7200_v19 = vrot.slane %v6405_v36, %v13398_v22  ;;  %v7274_v14 = vrot.slane %v6420_v47, %v13395_v56  ;;  %v6421_v12 = vadd.f32 %v10882_v24, %v13399_v10  ;;  %6078 = vadd.xlane.f32.xlu1 %v6077_v37  ;;  %v13402_v10 = vld [vmem:[#allocation15_spill] sm:$0xff] }
 0x314   : > { %v7196_v54 = vsel %vm13397_vm2, %v7195_v59, %v12321_v34  ;;  %v7270_v41 = vsel %vm13339_vm0, %v7269_v63, %v7265_v8  ;;  %v5483_v35 = vmul.f32 %v12301_v46, %v5220_v26  ;;  %v5222_v25 = vmax.f32 %v4652_v0, 0.0 }
 0x315   : > { %v12425_v52 = vpop.f32.mrf.mxu1  ;;  %v6446_v53 = vadd.f32 %v10882_v24, %v5878_v9  ;;  %v12442_v38 = vpop.xlane.xlu0 %5889  ;;  %v7393_v34 = vsel %vm6900_vm9, %v7392_v30, %v7388_v58  ;;  %v7397_v16 = vrot.slane %v6445_v28, %v13391_v2  ;;  %6081 = vadd.xlane.f32.xlu0 %v6080_v32  ;;  %v4662_v59 = vadd.f32 %v12327_v39, %v12337_v62 }
 0x316   : > { %v6083_v50 = vsel %vm2931_vm3, %v5481_v21, 0.0  ;;  %v12449_v36 = vpop.xlane.xlu1 %5892  ;;  %v5484_v8 = vmul.f32 %v12301_v46, %v5221_v55  ;;  %v5223_v47 = vmax.f32 %v4657_v11, 0.0  ;;  %v6086_v63 = vsel %vm2931_vm3, %v5482_v27, 0.0 }
 0x317   : > { %v12437_v3 = vpop.f32.mrf.mxu1  ;;  %v4667_v9 = vadd.f32 %v12327_v39, %v12369_v7  ;;  %vm13341_vm2 = vcmask 1043459   ;;  %vm13400_vm1 = vcmask 1048512   ;;  %vm13401_vm0 = vcmask 982912   ;;  %6084 = vadd.xlane.f32.xlu1 %v6083_v50 }
 0x318   : > { %v7201_v26 = vsel %vm13400_vm1, %v7200_v19, %v7196_v54  ;;  %v7275_v0 = vsel %vm13401_vm0, %v7274_v14, %v7270_v41  ;;  %v7279_v58 = vrot.slane %v6421_v12, %v13398_v22  ;;  %v6436_v21 = vadd.f32 %v10882_v24, %v12248_v43 }
 0x319   : > { %v12458_v62 = vpop.f32.mrf.mxu1  ;;  %v5485_v30 = vmul.f32 %v12301_v46, %v5222_v25  ;;  %v6447_v37 = vadd.f32 %v10882_v24, %v5881_v15  ;;  %v4672_v7 = vadd.f32 %v12327_v39, %v12358_v4  ;;  %v7398_v28 = vsel %vm6907_vm10, %v7397_v16, %v7393_v34  ;;  %6087 = vadd.xlane.f32.xlu0 %v6086_v63  ;;  %v12470_v11 = vpop.xlane.xlu0 %5895 }
 0x31a   : > { %v7402_v27 = vrot.slane %v6446_v53, %v13377_v23  ;;  %v5224_v55 = vmax.f32 %v4662_v59, 0.0  ;;  %v4677_v32 = vadd.f32 %v12327_v39, %v12389_v49  ;;  %v5486_v43 = vmul.f32 %v12301_v46, %v5223_v47 }
 0x31b   : > { %v12472_v54 = vpop.f32.mrf.mxu1  ;;  %v6089_v15 = vsel %vm2931_vm3, %v5483_v35, 0.0  ;;  %v5225_v19 = vmax.f32 %v4667_v9, 0.0  ;;  %v6092_v4 = vsel %vm2931_vm3, %v5484_v8, 0.0  ;;  %v12477_v14 = vpop.xlane.xlu1 %5898  ;;  %v8155_v12 = vsel %vm13341_vm2, %v7201_v26, %v13402_v10 }
 0x31c   : > { %vm13340_vm0 = vcmask 1044484   ;;  %v7280_v41 = vsel %vm13400_vm1, %v7279_v58, %v7275_v0  ;;  %v6448_v49 = vadd.f32 %v10882_v24, %v5884_v40  ;;  %6090 = vadd.xlane.f32.xlu1 %v6089_v15  ;;  %v7353_v53 = vrot.slane %v6436_v21, %v13395_v56 }
 0x31d   : > { %v12483_v25 = vpop.f32.mrf.mxu1  ;;  %v7407_v35 = vrot.slane %v6447_v37, %v11006_v60  ;;  %v5226_v34 = vmax.f32 %v4672_v7, 0.0  ;;  %v4682_v16 = vadd.f32 %v12327_v39, %v12378_v44  ;;  %v7403_v59 = vsel %vm6914_vm11, %v7402_v27, %v7398_v28  ;;  %6093 = vadd.xlane.f32.xlu0 %v6092_v4 }
 0x31e   : > { %v5487_v50 = vmul.f32 %v12301_v46, %v5224_v55  ;;  %v6095_v8 = vsel %vm2931_vm3, %v5485_v30, 0.0  ;;  %v5227_v47 = vmax.f32 %v4677_v32, 0.0  ;;  %v5902_v40 = vpop.xlane.xlu0 %5901  ;;  %v5488_v9 = vmul.f32 %v12301_v46, %v5225_v19 }
 0x31f   : > { %v12492_v63 = vpop.f32.mrf.mxu1  ;;  %v6098_v26 = vsel %vm2931_vm3, %v5486_v43, 0.0  ;;  %v4687_v0 = vadd.f32 %v12327_v39, %v12413_v61  ;;  %v6454_v44 = vadd.f32 %v10882_v24, %v5902_v40  ;;  %v5905_v58 = vpop.xlane.xlu1 %5904  ;;  %v12500_v21 = vsel %vm13340_vm0, %v7280_v41, %v8155_v12 }
 0x320   : > { %v12504_v30 = vadd.f32 %v10882_v24, %v12266_v20  ;;  %v7412_v37 = vrot.slane %v6448_v49, %v13380_v33  ;;  %6096 = vadd.xlane.f32.xlu1 %v6095_v8  ;;  %v6455_v7 = vadd.f32 %v10882_v24, %v5905_v58  ;;  %vm13403_vm1 = vcmask 982912  }
 0x321   : > { %v12508_v28 = vpop.f32.mrf.mxu1  ;;  %v12512_v61 = vsel %vm13403_vm1, %v7353_v53, %v12312_v31  ;;  %v7408_v27 = vsel %vm6921_vm12, %v7407_v35, %v7403_v59  ;;  %v5489_v55 = vmul.f32 %v12301_v46, %v5226_v34  ;;  %v5228_v32 = vmax.f32 %v4682_v16, 0.0  ;;  %6099 = vadd.xlane.f32.xlu0 %v6098_v26 }
 0x322   : > { %v5490_v43 = vmul.f32 %v12301_v46, %v5227_v47  ;;  %v4692_v20 = vadd.f32 %v12327_v39, %v12400_v57  ;;  %v6101_v15 = vsel %vm2931_vm3, %v5487_v50, 0.0  ;;  %v7446_v19 = vrot.slane %v6455_v7, %v10888_v29  ;;  %v5908_v49 = vpop.xlane.xlu0 %5907 }
 0x323   : > { %v12521_v4 = vpop.f32.mrf.mxu1  ;;  %v5229_v10 = vmax.f32 %v4687_v0, 0.0  ;;  %v6104_v31 = vsel %vm2931_vm3, %v5488_v9, 0.0  ;;  %v7442_v12 = vrot.slane %v6454_v44, %v13381_v5  ;;  %v4697_v41 = vadd.f32 %v12327_v39, %v12437_v3 }
 0x324   : > { %v7358_v53 = vrot.slane %v12504_v30, %v13398_v22  ;;  %v7413_v57 = vsel %vm6928_vm13, %v7412_v37, %v7408_v27  ;;  %v6449_v35 = vadd.f32 %v10882_v24, %v12423_v18  ;;  %6102 = vadd.xlane.f32.xlu1 %v6101_v15  ;;  %v6456_v34 = vadd.f32 %v10882_v24, %v5908_v49  ;;  %v5911_v16 = vpop.xlane.xlu1 %5910 }
 0x325   : > { %v12533_v59 = vpop.f32.mrf.mxu1  ;;  %v5491_v50 = vmul.f32 %v12301_v46, %v5228_v32  ;;  %v4702_v3 = vadd.f32 %v12327_v39, %v12425_v52  ;;  %v7447_v8 = vsel %vm6865_vm4, %v7446_v19, %v7442_v12  ;;  %v6457_v47 = vadd.f32 %v10882_v24, %v5911_v16  ;;  %6105 = vadd.xlane.f32.xlu0 %v6104_v31 }
 0x326   : > { %v5230_v40 = vmax.f32 %v4692_v20, 0.0  ;;  %v6107_v9 = vsel %vm2931_vm3, %v5489_v55, 0.0  ;;  %v6110_v18 = vsel %vm2931_vm3, %v5490_v43, 0.0  ;;  %v7451_v26 = vrot.slane %v6456_v34, %v10917_v1 }
 0x327   : > { %v12543_v0 = vpop.f32.mrf.mxu1  ;;  %v5492_v44 = vmul.f32 %v12301_v46, %v5229_v10  ;;  %v5231_v58 = vmax.f32 %v4697_v41, 0.0  ;;  %v7456_v37 = vrot.slane %v6457_v47, %v10903_v51  ;;  %v4707_v52 = vadd.f32 %v12327_v39, %v12472_v54  ;;  %v5914_v7 = vpop.xlane.xlu0 %5913 }
 0x328   : > { %v6450_v27 = vadd.f32 %v10882_v24, %v12442_v38  ;;  %6108 = vadd.xlane.f32.xlu1 %v6107_v9  ;;  %v7452_v55 = vsel %vm6872_vm5, %v7451_v26, %v7447_v8  ;;  %v4712_v32 = vadd.f32 %v12327_v39, %v12458_v62  ;;  %v6458_v43 = vadd.f32 %v10882_v24, %v5914_v7  ;;  %v5917_v20 = vpop.xlane.xlu1 %5916 }
 0x329   : > { %v7417_v15 = vrot.slane %v6449_v35, %v13384_v42  ;;  %v5232_v19 = vmax.f32 %v4702_v3, 0.0  ;;  %v7457_v10 = vsel %vm6879_vm6, %v7456_v37, %v7452_v55  ;;  %v6459_v54 = vadd.f32 %v10882_v24, %v5917_v20  ;;  %6111 = vadd.xlane.f32.xlu0 %v6110_v18 }
 0x32a   : > { %v5493_v31 = vmul.f32 %v12301_v46, %v5230_v40  ;;  %v6113_v38 = vsel %vm2931_vm3, %v5491_v50, 0.0  ;;  %v7461_v12 = vrot.slane %v6458_v43, %v13367_v13  ;;  %v4717_v62 = vadd.f32 %v12327_v39, %v12492_v63  ;;  %v12563_v41 = vpop.f32.mrf.mxu1 }
 0x32b   : > { %v5494_v49 = vmul.f32 %v12301_v46, %v5231_v58  ;;  %v5233_v35 = vmax.f32 %v4707_v52, 0.0  ;;  %v6116_v34 = vsel %vm2931_vm3, %v5492_v44, 0.0  ;;  %v7466_v16 = vrot.slane %v6459_v54, %v13386_v48  ;;  %v5920_v40 = vpop.xlane.xlu0 %5919 }
 0x32c   : > { %v7422_v3 = vrot.slane %v6450_v27, %v11066_v17  ;;  %v6451_v8 = vadd.f32 %v10882_v24, %v12449_v36  ;;  %v5234_v50 = vmax.f32 %v4712_v32, 0.0  ;;  %6114 = vadd.xlane.f32.xlu1 %v6113_v38  ;;  %v7462_v47 = vsel %vm6886_vm7, %v7461_v12, %v7457_v10  ;;  %v4746_v63 = vpop.f32.mrf.mxu1  ;;  %v5923_v58 = vpop.xlane.xlu1 %5922 }
 0x32d   : > { %v7418_v9 = vsel %vm6935_vm14, %v7417_v15, %v7413_v57  ;;  %v5495_v18 = vmul.f32 %v12301_v46, %v5232_v19  ;;  %v4722_v26 = vadd.f32 %v12327_v39, %v12483_v25  ;;  %v6460_v44 = vadd.f32 %v10882_v24, %v5920_v40  ;;  %6117 = vadd.xlane.f32.xlu0 %v6116_v34 }
 0x32e   : > { %v7467_v37 = vsel %vm6893_vm8, %v7466_v16, %v7462_v47  ;;  %v5235_v36 = vmax.f32 %v4717_v62, 0.0  ;;  %v6461_v52 = vadd.f32 %v10882_v24, %v5923_v58  ;;  %v4727_v7 = vadd.f32 %v12327_v39, %v12521_v4  ;;  %v12581_v27 = vpop.f32.mrf.mxu1 }
 0x32f   : > { %v5496_v57 = vmul.f32 %v12301_v46, %v5233_v35  ;;  %v6119_v55 = vsel %vm2931_vm3, %v5493_v31, 0.0  ;;  %v6122_v25 = vsel %vm2931_vm3, %v5494_v49, 0.0  ;;  %v7471_v32 = vrot.slane %v6460_v44, %v13388_v45  ;;  %v5926_v4 = vpop.xlane.xlu0 %5925 }
 0x330   : > { %v7423_v43 = vsel %vm13343_vm15, %v7422_v3, %v7418_v9  ;;  %v7427_v20 = vrot.slane %v6451_v8, %v13389_v6  ;;  %v5497_v15 = vmul.f32 %v12301_v46, %v5234_v50  ;;  %6120 = vadd.xlane.f32.xlu1 %v6119_v55  ;;  %v7476_v19 = vrot.slane %v6461_v52, %v13391_v2  ;;  %v4756_v10 = vpop.f32.mrf.mxu1  ;;  %v5929_v62 = vpop.xlane.xlu1 %5928 }
 0x331   : > { %vm13342_vm1 = vcmask 1045509   ;;  %v5236_v54 = vmax.f32 %v4722_v26, 0.0  ;;  %v7472_v38 = vsel %vm6900_vm9, %v7471_v32, %v7467_v37  ;;  %v4732_v31 = vadd.f32 %v12327_v39, %v12508_v28  ;;  %6123 = vadd.xlane.f32.xlu0 %v6122_v25 }
 0x332   : > { %v6462_v12 = vadd.f32 %v10882_v24, %v5926_v4  ;;  %v5498_v49 = vmul.f32 %v12301_v46, %v5235_v36  ;;  %v7477_v35 = vsel %vm6907_vm10, %v7476_v19, %v7472_v38  ;;  %v5237_v34 = vmax.f32 %v4727_v7, 0.0  ;;  %v12598_v3 = vpop.f32.mrf.mxu1 }
 0x333   : > { %v6463_v16 = vadd.f32 %v10882_v24, %v5929_v62  ;;  %v6125_v8 = vsel %vm2931_vm3, %v5495_v18, 0.0  ;;  %v6128_v50 = vsel %vm2931_vm3, %v5496_v57, 0.0  ;;  %v4737_v47 = vadd.f32 %v12327_v39, %v12543_v0 }
 0x334   : > { %v7481_v28 = vrot.slane %v6462_v12, %v13377_v23  ;;  %vm13404_vm0 = vcmask 1048512   ;;  %vm13405_vm2 = vcmask 917312   ;;  %v6452_v26 = vadd.f32 %v10882_v24, %v12470_v11  ;;  %6126 = vadd.xlane.f32.xlu1 %v6125_v8  ;;  %v4766_v44 = vpop.f32.mrf.mxu1  ;;  %v5932_v30 = vpop.xlane.xlu0 %5931 }
 0x335   : > { %v7359_v40 = vsel %vm13404_vm0, %v7358_v53, %v12512_v61  ;;  %v7428_v9 = vsel %vm13405_vm2, %v7427_v20, %v7423_v43  ;;  %v7486_v18 = vrot.slane %v6463_v16, %v11006_v60  ;;  %v5499_v58 = vmul.f32 %v12301_v46, %v5236_v54  ;;  %6129 = vadd.xlane.f32.xlu0 %v6128_v50  ;;  %v5935_v7 = vpop.xlane.xlu1 %5934 }
 0x336   : > { %v5238_v37 = vmax.f32 %v4732_v31, 0.0  ;;  %v7482_v0 = vsel %vm6914_vm11, %v7481_v28, %v7477_v35  ;;  %v4742_v36 = vadd.f32 %v12327_v39, %v12533_v59  ;;  %v5500_v61 = vmul.f32 %v12301_v46, %v5237_v34  ;;  %v12626_v57 = vpop.f32.mrf.mxu1 }
 0x337   : > { %v6131_v11 = vsel %vm2931_vm3, %v5497_v15, 0.0  ;;  %v6134_v53 = vsel %vm2931_vm3, %v5498_v49, 0.0  ;;  %v6464_v52 = vadd.f32 %v10882_v24, %v5932_v30  ;;  %v7487_v55 = vsel %vm6921_vm12, %v7486_v18, %v7482_v0 }
 0x338   : > { %v5239_v59 = vmax.f32 %v4737_v47, 0.0  ;;  %v6465_v25 = vadd.f32 %v10882_v24, %v5935_v7  ;;  %v4747_v32 = vadd.f32 %v12327_v39, %v4746_v63  ;;  %v7432_v43 = vrot.slane %v6452_v26, %v13395_v56  ;;  %6132 = vadd.xlane.f32.xlu1 %v6131_v11  ;;  %v5938_v63 = vpop.xlane.xlu0 %5937  ;;  %v4776_v12 = vpop.f32.mrf.mxu1 }
 0x339   : > { %v6453_v20 = vadd.f32 %v10882_v24, %v12477_v14  ;;  %v7491_v15 = vrot.slane %v6464_v52, %v13380_v33  ;;  %v4752_v19 = vadd.f32 %v12327_v39, %v12563_v41  ;;  %v5501_v4 = vmul.f32 %v12301_v46, %v5238_v37  ;;  %6135 = vadd.xlane.f32.xlu0 %v6134_v53  ;;  %v5941_v41 = vpop.xlane.xlu1 %5940 }
 0x33a   : > { %v5240_v54 = vmax.f32 %v4742_v36, 0.0  ;;  %v6137_v38 = vsel %vm2931_vm3, %v5499_v58, 0.0  ;;  %v7496_v31 = vrot.slane %v6465_v25, %v13384_v42  ;;  %v6140_v62 = vsel %vm2931_vm3, %v5500_v61, 0.0 }
 0x33b   : > { %v7492_v14 = vsel %vm6928_vm13, %v7491_v15, %v7487_v55  ;;  %v6466_v49 = vadd.f32 %v10882_v24, %v5938_v63  ;;  %v4757_v35 = vadd.f32 %v12327_v39, %v4756_v10  ;;  %v5502_v34 = vmul.f32 %v12301_v46, %v5239_v59 }
 0x33c   : > { %v7497_v16 = vsel %vm6935_vm14, %v7496_v31, %v7492_v14  ;;  %v5241_v8 = vmax.f32 %v4747_v32, 0.0  ;;  %v6467_v50 = vadd.f32 %v10882_v24, %v5941_v41  ;;  %v8159_v28 = vsel %vm13342_vm1, %v7359_v40, %v12500_v21  ;;  %6138 = vadd.xlane.f32.xlu1 %v6137_v38 }
 0x33d   : > { %v7437_v47 = vrot.slane %v6453_v20, %v13398_v22  ;;  %v5242_v26 = vmax.f32 %v4752_v19, 0.0  ;;  %v7501_v18 = vrot.slane %v6466_v49, %v11066_v17  ;;  %vm13406_vm2 = vcmask 982912   ;;  %v9722_v36 = vpop.f32.mrf.mxu1  ;;  %6141 = vadd.xlane.f32.xlu0 %v6140_v62  ;;  %v5944_v61 = vpop.xlane.xlu0 %5943 }
 0x33e   : > { %v7433_v10 = vsel %vm13406_vm2, %v7432_v43, %v7428_v9  ;;  %v5503_v58 = vmul.f32 %v12301_v46, %v5240_v54  ;;  %v4762_v37 = vadd.f32 %v12327_v39, %v12581_v27  ;;  %v7506_v0 = vrot.slane %v6467_v50, %v13389_v6  ;;  %v5947_v52 = vpop.xlane.xlu1 %5946 }
 0x33f   : > { %vm8160_vm0 = vcmask 1046534   ;;  %v7502_v21 = vsel %vm13343_vm15, %v7501_v18, %v7497_v16  ;;  %v6143_v40 = vsel %vm2931_vm3, %v5501_v4, 0.0  ;;  %v5243_v30 = vmax.f32 %v4757_v35, 0.0  ;;  %v4786_v7 = vpop.f32.mrf.mxu1 }
 0x340   : > { %v5504_v11 = vmul.f32 %v12301_v46, %v5241_v8  ;;  %v6146_v9 = vsel %vm2931_vm3, %v5502_v34, 0.0  ;;  %v6468_v53 = vadd.f32 %v10882_v24, %v5944_v61  ;;  %v4767_v27 = vadd.f32 %v12327_v39, %v4766_v44  ;;  %6144 = vadd.xlane.f32.xlu1 %v6143_v40 }
 0x341   : > { %vm13407_vm2 = vcmask 1048512   ;;  %v5505_v59 = vmul.f32 %v12301_v46, %v5242_v26  ;;  %vm13408_vm1 = vcmask 917312   ;;  %v6469_v32 = vadd.f32 %v10882_v24, %v5947_v52  ;;  %v12677_v44 = vpop.f32.mrf.mxu1  ;;  %6147 = vadd.xlane.f32.xlu0 %v6146_v9  ;;  %v5950_v38 = vpop.xlane.xlu0 %5949 }
 0x342   : > { %v7438_v55 = vsel %vm13407_vm2, %v7437_v47, %v7433_v10  ;;  %v7507_v25 = vsel %vm13408_vm1, %v7506_v0, %v7502_v21  ;;  %v5244_v43 = vmax.f32 %v4762_v37, 0.0  ;;  %v7511_v20 = vrot.slane %v6468_v53, %v13395_v56  ;;  %v5953_v49 = vpop.xlane.xlu1 %5952 }
 0x343   : > { %v4772_v15 = vadd.f32 %v12327_v39, %v12598_v3  ;;  %v6149_v19 = vsel %vm2931_vm3, %v5503_v58, 0.0  ;;  %v5506_v4 = vmul.f32 %v12301_v46, %v5243_v30  ;;  %vm13344_vm2 = vcmask 1047559   ;;  %v4796_v41 = vpop.f32.mrf.mxu1 }
 0x344   : > { %v7516_v54 = vrot.slane %v6469_v32, %v13398_v22  ;;  %v4777_v31 = vadd.f32 %v12327_v39, %v4776_v12  ;;  %vm13409_vm1 = vcmask 982912   ;;  %v5245_v3 = vmax.f32 %v4767_v27, 0.0  ;;  %6150 = vadd.xlane.f32.xlu1 %v6149_v19 }
 0x345   : > { %v7512_v63 = vsel %vm13409_vm1, %v7511_v20, %v7507_v25  ;;  %v6152_v14 = vsel %vm2931_vm3, %v5504_v11, 0.0  ;;  %v6470_v62 = vadd.f32 %v10882_v24, %v5950_v38  ;;  %v8161_v35 = vsel %vm8160_vm0, %v7438_v55, %v8159_v28  ;;  %v9728_v47 = vpop.f32.mrf.mxu1 }
 0x346   : > { %vm13410_vm15 = vcmask 1048512   ;;  %v6471_v34 = vadd.f32 %v10882_v24, %v5953_v49  ;;  %v5246_v16 = vmax.f32 %v4772_v15, 0.0  ;;  %v4782_v50 = vadd.f32 %v12327_v39, %v12626_v57  ;;  %6153 = vadd.xlane.f32.xlu0 %v6152_v14  ;;  %v5956_v40 = vpop.xlane.xlu0 %5955 }
 0x347   : > { %v7517_v12 = vsel %vm13410_vm15, %v7516_v54, %v7512_v63  ;;  %v7521_v26 = vrot.slane %v6470_v62, %v13381_v5  ;;  %v5247_v10 = vmax.f32 %v4777_v31, 0.0  ;;  %v4787_v28 = vadd.f32 %v12327_v39, %v4786_v7  ;;  %v4806_v57 = vpop.f32.mrf.mxu1  ;;  %v5959_v9 = vpop.xlane.xlu1 %5958 }
 0x348   : > { %v8163_v8 = vsel %vm13344_vm2, %v7517_v12, %v8161_v35  ;;  %v7525_v18 = vrot.slane %v6471_v34, %v10888_v29  ;;  %v5507_v58 = vmul.f32 %v12301_v46, %v5244_v43  ;;  %v5508_v37 = vmul.f32 %v12301_v46, %v5245_v3 }
 0x349   : > { %8173 = vst [vmem:[%s12686_s8] sm:$0xff] %v8163_v8  ;;  %v6155_v0 = vsel %vm2931_vm3, %v5505_v59, 0.0  ;;  %v6158_v21 = vsel %vm2931_vm3, %v5506_v4, 0.0  ;;  %v6472_v61 = vadd.f32 %v10882_v24, %v5956_v40  ;;  %v4792_v11 = vadd.f32 %v12327_v39, %v9722_v36  ;;  %v9731_v27 = vpop.f32.mrf.mxu1 }
 0x34a   : > { %6156 = vadd.xlane.f32.xlu1 %v6155_v0  ;;  %v7526_v30 = vsel %vm6865_vm4, %v7525_v18, %v7521_v26  ;;  %v5509_v53 = vmul.f32 %v12301_v46, %v5246_v16  ;;  %v6473_v52 = vadd.f32 %v10882_v24, %v5959_v9  ;;  %v5248_v7 = vmax.f32 %v4782_v50, 0.0  ;;  %6159 = vadd.xlane.f32.xlu0 %v6158_v21 }
 0x34b   : > { %v5510_v55 = vmul.f32 %v12301_v46, %v5247_v10  ;;  %v7530_v59 = vrot.slane %v6472_v61, %v10917_v1  ;;  %v5249_v25 = vmax.f32 %v4787_v28, 0.0  ;;  %v6161_v32 = vsel %vm2931_vm3, %v5507_v58, 0.0  ;;  %v4816_v15 = vpop.f32.mrf.mxu1  ;;  %v5962_v54 = vpop.xlane.xlu0 %5961 }
 0x34c   : > { %v7535_v43 = vrot.slane %v6473_v52, %v10903_v51  ;;  %v6164_v20 = vsel %vm2931_vm3, %v5508_v37, 0.0  ;;  %v4797_v36 = vadd.f32 %v12327_v39, %v4796_v41  ;;  %v5250_v4 = vmax.f32 %v4792_v11, 0.0  ;;  %v5965_v38 = vpop.xlane.xlu1 %5964 }
 0x34d   : > { %v7531_v19 = vsel %vm6872_vm5, %v7530_v59, %v7526_v30  ;;  %v6474_v63 = vadd.f32 %v10882_v24, %v5962_v54  ;;  %v6167_v3 = vsel %vm2931_vm3, %v5509_v53, 0.0  ;;  %v6475_v14 = vadd.f32 %v10882_v24, %v5965_v38 }
 0x34e   : > { %6162 = vadd.xlane.f32.xlu1 %v6161_v32  ;;  %v7536_v31 = vsel %vm6879_vm6, %v7535_v43, %v7531_v19  ;;  %v5511_v62 = vmul.f32 %v12301_v46, %v5248_v7  ;;  %v5512_v49 = vmul.f32 %v12301_v46, %v5249_v25  ;;  %6165 = vadd.xlane.f32.xlu0 %v6164_v20  ;;  %v6170_v35 = vsel %vm2931_vm3, %v5510_v55, 0.0  ;;  %v9734_v12 = vpop.f32.mrf.mxu1 }
 0x34f   : > { %v4802_v41 = vadd.f32 %v12327_v39, %v12677_v44  ;;  %v7540_v34 = vrot.slane %v6474_v63, %v13367_v13  ;;  %v7545_v16 = vrot.slane %v6475_v14, %v13386_v48  ;;  %v5251_v8 = vmax.f32 %v4797_v36, 0.0 }
 0x350   : > { %v4807_v50 = vadd.f32 %v12327_v39, %v4806_v57  ;;  %v5513_v26 = vmul.f32 %v12301_v46, %v5250_v4  ;;  %v5971_v18 = vpop.xlane.xlu1 %5970  ;;  %v4826_v10 = vpop.f32.mrf.mxu1  ;;  %v4812_v44 = vadd.f32 %v12327_v39, %v9728_v47  ;;  %v4817_v0 = vadd.f32 %v12327_v39, %v4816_v15 }
 0x351   : > { %v7541_v28 = vsel %vm6886_vm7, %v7540_v34, %v7536_v31  ;;  %v5968_v58 = vpop.xlane.xlu0 %5967  ;;  %v6477_v37 = vadd.f32 %v10882_v24, %v5971_v18  ;;  %v5252_v21 = vmax.f32 %v4802_v41, 0.0  ;;  %v6173_v30 = vsel %vm2931_vm3, %v5511_v62, 0.0 }
 0x352   : > { %6168 = vadd.xlane.f32.xlu1 %v6167_v3  ;;  %v7546_v40 = vsel %vm6893_vm8, %v7545_v16, %v7541_v28  ;;  %6171 = vadd.xlane.f32.xlu0 %v6170_v35  ;;  %v6476_v57 = vadd.f32 %v10882_v24, %v5968_v58  ;;  %v9737_v61 = vpop.f32.mrf.mxu1  ;;  %v5514_v11 = vmul.f32 %v12301_v46, %v5251_v8  ;;  %v5253_v53 = vmax.f32 %v4807_v50, 0.0 }
 0x353   : > { %v7555_v9 = vrot.slane %v6477_v37, %v13391_v2  ;;  %v6176_v47 = vsel %vm2931_vm3, %v5512_v49, 0.0  ;;  %v5254_v55 = vmax.f32 %v4812_v44, 0.0  ;;  %v4822_v25 = vadd.f32 %v12327_v39, %v9731_v27 }
 0x354   : > { %v7550_v52 = vrot.slane %v6476_v57, %v13388_v45  ;;  %v4836_v7 = vpop.f32.mrf.mxu1  ;;  %v6179_v32 = vsel %vm2931_vm3, %v5513_v26, 0.0  ;;  %v5977_v43 = vpop.xlane.xlu1 %5976  ;;  %v5255_v20 = vmax.f32 %v4817_v0, 0.0  ;;  %v4827_v4 = vadd.f32 %v12327_v39, %v4826_v10 }
 0x355   : > { %v5974_v59 = vpop.xlane.xlu0 %5973  ;;  %v6479_v19 = vadd.f32 %v10882_v24, %v5977_v43  ;;  %v5515_v54 = vmul.f32 %v12301_v46, %v5252_v21  ;;  %v5516_v31 = vmul.f32 %v12301_v46, %v5253_v53  ;;  %v6182_v27 = vsel %vm2931_vm3, %v5514_v11, 0.0 }
 0x356   : > { %6174 = vadd.xlane.f32.xlu1 %v6173_v30  ;;  %v7551_v36 = vsel %vm6900_vm9, %v7550_v52, %v7546_v40  ;;  %6177 = vadd.xlane.f32.xlu0 %v6176_v47  ;;  %v6478_v15 = vadd.f32 %v10882_v24, %v5974_v59  ;;  %v5517_v62 = vmul.f32 %v12301_v46, %v5254_v55  ;;  %v5256_v49 = vmax.f32 %v4822_v25, 0.0 }
 0x357   : > { %v7556_v38 = vsel %vm6907_vm10, %v7555_v9, %v7551_v36  ;;  %v9740_v63 = vpop.f32.mrf.mxu1  ;;  %v7565_v14 = vrot.slane %v6479_v19, %v11006_v60  ;;  %v5518_v41 = vmul.f32 %v12301_v46, %v5255_v20  ;;  %v4832_v34 = vadd.f32 %v12327_v39, %v9734_v12 }
 0x358   : > { %v7560_v3 = vrot.slane %v6478_v15, %v13377_v23  ;;  %v5983_v16 = vpop.xlane.xlu1 %5982  ;;  %v5257_v18 = vmax.f32 %v4827_v4, 0.0  ;;  %v6185_v58 = vsel %vm2931_vm3, %v5515_v54, 0.0  ;;  %v6188_v44 = vsel %vm2931_vm3, %v5516_v31, 0.0 }
 0x359   : > { %v5980_v35 = vpop.xlane.xlu0 %5979  ;;  %v6481_v26 = vadd.f32 %v10882_v24, %v5983_v16  ;;  %v4846_v10 = vpop.f32.mrf.mxu1  ;;  %v4837_v37 = vadd.f32 %v12327_v39, %v4836_v7  ;;  %v5519_v40 = vmul.f32 %v12301_v46, %v5256_v49  ;;  %v5258_v57 = vmax.f32 %v4832_v34, 0.0 }
 0x35a   : > { %6180 = vadd.xlane.f32.xlu1 %v6179_v32  ;;  %v7561_v8 = vsel %vm6914_vm11, %v7560_v3, %v7556_v38  ;;  %6183 = vadd.xlane.f32.xlu0 %v6182_v27  ;;  %v6480_v50 = vadd.f32 %v10882_v24, %v5980_v35  ;;  %v6191_v11 = vsel %vm2931_vm3, %v5517_v62, 0.0  ;;  %v6194_v9 = vsel %vm2931_vm3, %v5518_v41, 0.0 }
 0x35b   : > { %v7566_v28 = vsel %vm6921_vm12, %v7565_v14, %v7561_v8  ;;  %v7575_v0 = vrot.slane %v6481_v26, %v13384_v42  ;;  %v9743_v21 = vpop.f32.mrf.mxu1  ;;  %v5520_v47 = vmul.f32 %v12301_v46, %v5257_v18  ;;  %v4842_v7 = vadd.f32 %v12327_v39, %v9737_v61  ;;  %v12781_v61 = vld [vmem:[%s13308_s5] ss:$0 sm:$0xff] }
 0x35c   : > { %v7570_v12 = vrot.slane %v6480_v50, %v13380_v33  ;;  %v5259_v43 = vmax.f32 %v4837_v37, 0.0  ;;  %v4847_v20 = vadd.f32 %v12327_v39, %v4846_v10  ;;  %v4852_v19 = vadd.f32 %v12327_v39, %v9740_v63 }
 0x35d   : > { %v5986_v30 = vpop.xlane.xlu0 %5985  ;;  %v5989_v55 = vpop.xlane.xlu1 %5988  ;;  %v6197_v4 = vsel %vm2931_vm3, %v5519_v40, 0.0  ;;  %v5521_v54 = vmul.f32 %v12781_v61, %v5258_v57  ;;  %vm13411_vm15 = vcmask 851712   ;;  %v5260_v31 = vmax.f32 %v4842_v7, 0.0 }
 0x35e   : > { %6186 = vadd.xlane.f32.xlu1 %v6185_v58  ;;  %v7571_v53 = vsel %vm6928_vm13, %v7570_v12, %v7566_v28  ;;  %6189 = vadd.xlane.f32.xlu0 %v6188_v44  ;;  %v6482_v52 = vadd.f32 %v10882_v24, %v5986_v30  ;;  %v4856_v59 = vpop.f32.mrf.mxu1  ;;  %v6483_v32 = vadd.f32 %v10882_v24, %v5989_v55  ;;  %v5261_v41 = vmax.f32 %v4847_v20, 0.0 }
 0x35f   : > { %v7576_v25 = vsel %vm6935_vm14, %v7575_v0, %v7571_v53  ;;  %v4857_v3 = vadd.f32 %v12327_v39, %v4856_v59  ;;  %v5522_v62 = vmul.f32 %v12781_v61, %v5259_v43  ;;  %v6200_v35 = vsel %vm2931_vm3, %v5520_v47, 0.0  ;;  %v12796_v39 = vld [vmem:[%s13307_s4] ss:$0 sm:$0xff] }
 0x360   : > { %v7580_v36 = vrot.slane %v6482_v52, %v11066_v17  ;;  %v9746_v15 = vpop.f32.mrf.mxu1  ;;  %v7585_v46 = vrot.slane %v6483_v32, %v13389_v6  ;;  %vm13412_vm1 = vcmask 917312   ;;  %v5262_v50 = vmax.f32 %v4852_v19, 0.0 }
 0x361   : > { %v5992_v27 = vpop.xlane.xlu0 %5991  ;;  %v4862_v26 = vadd.f32 %v12796_v39, %v9743_v21  ;;  %v5523_v18 = vmul.f32 %v12781_v61, %v5260_v31  ;;  %v6203_v28 = vsel %vm2931_vm3, %v5521_v54, 0.0  ;;  %v5263_v58 = vmax.f32 %v4857_v3, 0.0 }
 0x362   : > { %6192 = vadd.xlane.f32.xlu1 %v6191_v11  ;;  %v7581_v38 = vsel %vm13411_vm15, %v7580_v36, %v7576_v25  ;;  %6195 = vadd.xlane.f32.xlu0 %v6194_v9  ;;  %v4866_v14 = vpop.f32.mrf.mxu1  ;;  %v6484_v63 = vadd.f32 %v10882_v24, %v5992_v27  ;;  %v12788_v49 = vpop.xlane.xlu1 %5994  ;;  %vm13413_vm15 = vcmask 982912   ;;  %v5524_v0 = vmul.f32 %v12781_v61, %v5261_v41 }
 0x363   : > { %v7586_v34 = vsel %vm13412_vm1, %v7585_v46, %v7581_v38  ;;  %v4867_v44 = vadd.f32 %v12796_v39, %v4866_v14  ;;  %v6206_v21 = vsel %vm2931_vm3, %v5522_v62, 0.0  ;;  %v5525_v11 = vmul.f32 %v12781_v61, %v5262_v50 }
 0x364   : > { %v9749_v16 = vpop.f32.mrf.mxu1  ;;  %v7590_v8 = vrot.slane %v6484_v63, %v13395_v56  ;;  %v5264_v9 = vmax.f32 %v4862_v26, 0.0  ;;  %v4872_v53 = vadd.f32 %v12796_v39, %v9746_v15  ;;  %v5526_v55 = vmul.f32 %v12781_v61, %v5263_v58 }
 0x365   : > { %v5998_v10 = vpop.xlane.xlu0 %5997  ;;  %v5265_v25 = vmax.f32 %v4867_v44, 0.0  ;;  %v6209_v43 = vsel %vm2931_vm3, %v5523_v18, 0.0  ;;  %v6212_v20 = vsel %vm2931_vm3, %v5524_v0, 0.0  ;;  %v4882_v54 = vadd.f32 %v12796_v39, %v9749_v16 }
 0x366   : > { %6198 = vadd.xlane.f32.xlu1 %v6197_v4  ;;  %6201 = vadd.xlane.f32.xlu0 %v6200_v35  ;;  %v4876_v37 = vpop.f32.mrf.mxu1  ;;  %v12803_v12 = vsel %vm13413_vm15, %v7590_v8, %v7586_v34  ;;  %v6486_v40 = vadd.f32 %v10882_v24, %v5998_v10  ;;  %v6001_v57 = vpop.xlane.xlu1 %6000  ;;  %v6215_v38 = vsel %vm2931_vm3, %v5525_v11, 0.0  ;;  %v5527_v27 = vmul.f32 %v12781_v61, %v5264_v9 }
 0x367   : > { %v6487_v30 = vadd.f32 %v10882_v24, %v6001_v57  ;;  %v5266_v3 = vmax.f32 %v4872_v53, 0.0  ;;  %v5528_v14 = vmul.f32 %v12781_v61, %v5265_v25  ;;  %v6218_v62 = vsel %vm2931_vm3, %v5526_v55, 0.0 }
 0x368   : > { %v9752_v47 = vpop.f32.mrf.mxu1  ;;  %v7600_v52 = vrot.slane %v6486_v40, %v13381_v5  ;;  %v4877_v34 = vadd.f32 %v12796_v39, %v4876_v37  ;;  %v5268_v18 = vmax.f32 %v4882_v54, 0.0  ;;  %v6221_v0 = vsel %vm2931_vm3, %v5527_v27, 0.0 }
 0x369   : > { %v7604_v7 = vrot.slane %v6487_v30, %v10888_v29  ;;  %v6004_v59 = vpop.xlane.xlu0 %6003  ;;  %v6224_v11 = vsel %vm2931_vm3, %v5528_v14, 0.0  ;;  %vm13414_vm1 = vcmask 851712   ;;  %vm13415_vm15 = vcmask 917312  }
 0x36a   : > { %6204 = vadd.xlane.f32.xlu1 %v6203_v28  ;;  %6207 = vadd.xlane.f32.xlu0 %v6206_v21  ;;  %v6488_v32 = vadd.f32 %v10882_v24, %v6004_v59  ;;  %v4886_v36 = vpop.f32.mrf.mxu1  ;;  %v5529_v28 = vmul.f32 %v12781_v61, %v5266_v3  ;;  %v5267_v40 = vmax.f32 %v4877_v34, 0.0  ;;  %v4892_v21 = vadd.f32 %v12796_v39, %v9752_v47 }
 0x36b   : > { %v7605_v46 = vsel %vm6865_vm4, %v7604_v7, %v7600_v52  ;;  %v6007_v15 = vpop.xlane.xlu1 %6006  ;;  %v4887_v16 = vadd.f32 %v12796_v39, %v4886_v36  ;;  %v5531_v55 = vmul.f32 %v12781_v61, %v5268_v18 }
 0x36c   : > { %v7609_v19 = vrot.slane %v6488_v32, %v10917_v1  ;;  %v6489_v4 = vadd.f32 %v10882_v24, %v6007_v15  ;;  %v9755_v31 = vpop.f32.mrf.mxu1  ;;  %v5270_v15 = vmax.f32 %v4892_v21, 0.0  ;;  %v6227_v54 = vsel %vm2931_vm3, %v5529_v28, 0.0 }
 0x36d   : > { %v5269_v30 = vmax.f32 %v4887_v16, 0.0  ;;  %v4902_v25 = vadd.f32 %v12796_v39, %v9755_v31 }
 0x36e   : > { %6210 = vadd.xlane.f32.xlu1 %v6209_v43  ;;  %6213 = vadd.xlane.f32.xlu0 %v6212_v20  ;;  %v7610_v63 = vsel %vm6872_vm5, %v7609_v19, %v7605_v46  ;;  %v7614_v41 = vrot.slane %v6489_v4, %v10903_v51  ;;  %v6010_v35 = vpop.xlane.xlu0 %6009  ;;  %v4896_v8 = vpop.f32.mrf.mxu1  ;;  %v5530_v46 = vmul.f32 %v12781_v61, %v5267_v40 }
 0x36f   : > { %v6490_v50 = vadd.f32 %v10882_v24, %v6010_v35  ;;  %v5532_v19 = vmul.f32 %v12781_v61, %v5269_v30  ;;  %v4897_v3 = vadd.f32 %v12796_v39, %v4896_v8 }
 0x370   : > { %v7615_v26 = vsel %vm6879_vm6, %v7614_v41, %v7610_v63  ;;  %v6013_v10 = vpop.xlane.xlu1 %6012  ;;  %v6233_v41 = vsel %vm2931_vm3, %v5531_v55, 0.0  ;;  %v6485_v55 = vadd.f32 %v10882_v24, %v12788_v49 }
 0x371   : > { %v7619_v58 = vrot.slane %v6490_v50, %v13367_v13  ;;  %v6491_v44 = vadd.f32 %v10882_v24, %v6013_v10  ;;  %v9758_v37 = vpop.f32.mrf.mxu1  ;;  %v6230_v10 = vsel %vm2931_vm3, %v5530_v46, 0.0  ;;  %v6236_v8 = vsel %vm2931_vm3, %v5532_v19, 0.0 }
 0x372   : > { %6216 = vadd.xlane.f32.xlu1 %v6215_v38  ;;  %6219 = vadd.xlane.f32.xlu0 %v6218_v62  ;;  %v6016_v57 = vpop.xlane.xlu0 %6015  ;;  %v4912_v32 = vadd.f32 %v12796_v39, %v9758_v37  ;;  %v5272_v62 = vmax.f32 %v4902_v25, 0.0 }
 0x373   : > { %v7620_v9 = vsel %vm6886_vm7, %v7619_v58, %v7615_v26  ;;  %v7624_v53 = vrot.slane %v6491_v44, %v13386_v48  ;;  %v6492_v52 = vadd.f32 %v10882_v24, %v6016_v57  ;;  %v4906_v7 = vpop.f32.mrf.mxu1  ;;  %v5533_v26 = vmul.f32 %v12781_v61, %v5270_v15 }
 0x374   : > { %v6019_v59 = vpop.xlane.xlu1 %6018  ;;  %v5274_v35 = vmax.f32 %v4912_v32, 0.0  ;;  %v5535_v40 = vmul.f32 %v12781_v61, %v5272_v62  ;;  %v4907_v30 = vadd.f32 %v12796_v39, %v4906_v7 }
 0x375   : > { %v7625_v47 = vsel %vm6893_vm8, %v7624_v53, %v7620_v9  ;;  %v7629_v43 = vrot.slane %v6492_v52, %v13388_v45  ;;  %v6493_v20 = vadd.f32 %v10882_v24, %v6019_v59  ;;  %v9761_v36 = vpop.f32.mrf.mxu1  ;;  %v6239_v32 = vsel %vm2931_vm3, %v5533_v26, 0.0 }
 0x376   : > { %6222 = vadd.xlane.f32.xlu1 %v6221_v0  ;;  %6225 = vadd.xlane.f32.xlu0 %v6224_v11  ;;  %v6022_v4 = vpop.xlane.xlu0 %6021  ;;  %v5271_v0 = vmax.f32 %v4897_v3, 0.0  ;;  %v5537_v57 = vmul.f32 %v12781_v61, %v5274_v35  ;;  %v4922_v25 = vadd.f32 %v12796_v39, %v9761_v36  ;;  %v5273_v15 = vmax.f32 %v4907_v30, 0.0 }
 0x377   : > { %v7630_v38 = vsel %vm6900_vm9, %v7629_v43, %v7625_v47  ;;  %v7634_v31 = vrot.slane %v6493_v20, %v13391_v2  ;;  %v6494_v27 = vadd.f32 %v10882_v24, %v6022_v4  ;;  %v4916_v14 = vpop.f32.mrf.mxu1  ;;  %v6245_v4 = vsel %vm2931_vm3, %v5535_v40, 0.0 }
 0x378   : > { %v6025_v63 = vpop.xlane.xlu1 %6024  ;;  %v5534_v7 = vmul.f32 %v12781_v61, %v5271_v0  ;;  %v6251_v49 = vsel %vm2931_vm3, %v5537_v57, 0.0  ;;  %v5276_v62 = vmax.f32 %v4922_v25, 0.0  ;;  %v7595_v0 = vrot.slane %v6485_v55, %v13398_v22 }
 0x379   : > { %v7635_v34 = vsel %vm6907_vm10, %v7634_v31, %v7630_v38  ;;  %v7639_v16 = vrot.slane %v6494_v27, %v13377_v23  ;;  %v6495_v50 = vadd.f32 %v10882_v24, %v6025_v63 }
 0x37a   : > { %6228 = vadd.xlane.f32.xlu1 %v6227_v54  ;;  %6234 = vadd.xlane.f32.xlu0 %v6233_v41  ;;  %v6028_v18 = vpop.xlane.xlu0 %6027  ;;  %v12860_v28 = vpop.f32.mrf.mxu1 }
 0x37b   : > { %v7640_v58 = vsel %vm6914_vm11, %v7639_v16, %v7635_v34  ;;  %v7644_v44 = vrot.slane %v6495_v50, %v11006_v60  ;;  %v6496_v37 = vadd.f32 %v10882_v24, %v6028_v18  ;;  %v5536_v18 = vmul.f32 %v12781_v61, %v5273_v15 }
 0x37c   : > { %v6031_v21 = vpop.xlane.xlu1 %6030  ;;  %v12868_v11 = vpop.f32.mrf.mxu1 }
 0x37d   : > { %v7645_v9 = vsel %vm6921_vm12, %v7644_v44, %v7640_v58  ;;  %v7649_v53 = vrot.slane %v6496_v37, %v13380_v33  ;;  %v6497_v52 = vadd.f32 %v10882_v24, %v6031_v21  ;;  %v6242_v58 = vsel %vm2931_vm3, %v5534_v7, 0.0 }
 0x37e   : > { %6231 = vadd.xlane.f32.xlu1 %v6230_v10  ;;  %6237 = vadd.xlane.f32.xlu0 %v6236_v8  ;;  %v6034_v59 = vpop.xlane.xlu0 %6033  ;;  %v9767_v47 = vpop.f32.mrf.mxu1  ;;  %v4917_v10 = vadd.f32 %v12796_v39, %v4916_v14  ;;  %v4932_v7 = vadd.f32 %v12796_v39, %v12860_v28 }
 0x37f   : > { %v7650_v43 = vsel %vm6928_vm13, %v7649_v53, %v7645_v9  ;;  %v7654_v20 = vrot.slane %v6497_v52, %v13384_v42  ;;  %v6498_v46 = vadd.f32 %v10882_v24, %v6034_v59  ;;  %v4942_v36 = vadd.f32 %v12796_v39, %v9767_v47 }
 0x380   : > { %v6037_v19 = vpop.xlane.xlu1 %6036  ;;  %v4936_v54 = vpop.f32.mrf.mxu1  ;;  %v5539_v52 = vmul.f32 %v12781_v61, %v5276_v62  ;;  %v5275_v47 = vmax.f32 %v4917_v10, 0.0 }
 0x381   : > { %v7655_v38 = vsel %vm6935_vm14, %v7654_v20, %v7650_v43  ;;  %v7659_v31 = vrot.slane %v6498_v46, %v11066_v17  ;;  %v6499_v27 = vadd.f32 %v10882_v24, %v6037_v19  ;;  %v4937_v3 = vadd.f32 %v12796_v39, %v4936_v54 }
 0x382   : > { %6240 = vadd.xlane.f32.xlu1 %v6239_v32  ;;  %6246 = vadd.xlane.f32.xlu0 %v6245_v4  ;;  %v6040_v63 = vpop.xlane.xlu0 %6039  ;;  %v5280_v41 = vmax.f32 %v4942_v36, 0.0  ;;  %v6248_v20 = vsel %vm2931_vm3, %v5536_v18, 0.0  ;;  %v5538_v62 = vmul.f32 %v12781_v61, %v5275_v47 }
 0x383   : > { %v7660_v35 = vsel %vm13414_vm1, %v7659_v31, %v7655_v38  ;;  %v7664_v34 = vrot.slane %v6499_v27, %v13389_v6  ;;  %v6500_v16 = vadd.f32 %v10882_v24, %v6040_v63  ;;  %v5279_v50 = vmax.f32 %v4937_v3, 0.0  ;;  %v9770_v26 = vpop.f32.mrf.mxu1 }
 0x384   : > { %v6043_v8 = vpop.xlane.xlu1 %6042  ;;  %v5543_v44 = vmul.f32 %v12781_v61, %v5280_v41  ;;  %vm13416_vm1 = vcmask 982912   ;;  %v4927_v31 = vadd.f32 %v12796_v39, %v12868_v11  ;;  %v5278_v63 = vmax.f32 %v4932_v7, 0.0 }
 0x385   : > { %v7665_v37 = vsel %vm13415_vm15, %v7664_v34, %v7660_v35  ;;  %v7669_v40 = vrot.slane %v6500_v16, %v13395_v56  ;;  %v6501_v57 = vadd.f32 %v10882_v24, %v6043_v8  ;;  %v4946_v21 = vpop.f32.mrf.mxu1  ;;  %v5542_v9 = vmul.f32 %v12781_v61, %v5279_v50 }
 0x386   : > { %6252 = vadd.xlane.f32.xlu1 %v6251_v49  ;;  %6243 = vadd.xlane.f32.xlu0 %v6242_v58  ;;  %v6046_v30 = vpop.xlane.xlu0 %6045  ;;  %v4947_v14 = vadd.f32 %v12796_v39, %v4946_v21  ;;  %v6269_v53 = vsel %vm2931_vm3, %v5543_v44, 0.0  ;;  %vm13417_vm15 = vcmask 1048512   ;;  %v6257_v35 = vsel %vm2931_vm3, %v5539_v52, 0.0 }
 0x387   : > { %v7670_v59 = vsel %vm13416_vm1, %v7669_v40, %v7665_v37  ;;  %v7674_v55 = vrot.slane %v6501_v57, %v13398_v22  ;;  %v6502_v25 = vadd.f32 %v10882_v24, %v6046_v30  ;;  %v7596_v15 = vsel %vm13417_vm15, %v7595_v0, %v12803_v12  ;;  %vm13418_vm2 = vmmov %vm13417_vm15 }
 0x388   : > { %v9773_v32 = vpop.f32.mrf.mxu1  ;;  %v6049_v43 = vpop.xlane.xlu1 %6048  ;;  %v5281_v46 = vmax.f32 %v4947_v14, 0.0  ;;  %vm13419_vm1 = vcmask 1041409   ;;  %v6266_v28 = vsel %vm2931_vm3, %v5542_v9, 0.0  ;;  %v5277_v44 = vmax.f32 %v4927_v31, 0.0 }
 0x389   : > { %v7675_v19 = vsel %vm13418_vm2, %v7674_v55, %v7670_v59  ;;  %v6503_v4 = vadd.f32 %v10882_v24, %v6049_v43  ;;  %v7679_v27 = vrot.slane %v6502_v25, %v13381_v5  ;;  %v5541_v57 = vmul.f32 %v12781_v61, %v5278_v63 }
 0x38a   : > { %6270 = vadd.xlane.f32.xlu1 %v6269_v53  ;;  %6249 = vadd.xlane.f32.xlu0 %v6248_v20  ;;  %v4956_v49 = vpop.f32.mrf.mxu1  ;;  %v12914_v36 = vsel %vm13419_vm1, %v7675_v19, %v7596_v15  ;;  %v6052_v54 = vpop.xlane.xlu0 %6051  ;;  %v5544_v38 = vmul.f32 %v12781_v61, %v5281_v46  ;;  %v4952_v21 = vadd.f32 %v12796_v39, %v9770_v26  ;;  %v6254_v9 = vsel %vm2931_vm3, %v5538_v62, 0.0 }
 0x38b   : > { %v7683_v12 = vrot.slane %v6503_v4, %v10888_v29  ;;  %v6504_v3 = vadd.f32 %v10882_v24, %v6052_v54  ;;  %v4957_v10 = vadd.f32 %v12796_v39, %v4956_v49  ;;  %v4962_v25 = vadd.f32 %v12796_v39, %v9773_v32 }
 0x38c   : > { %v6055_v41 = vpop.xlane.xlu1 %6054  ;;  %v6272_v58 = vsel %vm2931_vm3, %v5544_v38, 0.0  ;;  %v5540_v26 = vmul.f32 %v12781_v61, %v5277_v44  ;;  %v5282_v4 = vmax.f32 %v4952_v21, 0.0  ;;  %v6263_v32 = vsel %vm2931_vm3, %v5541_v57, 0.0 }
 0x38d   : > { %v9776_v34 = vpop.f32.mrf.mxu1  ;;  %v7684_v16 = vsel %vm6865_vm4, %v7683_v12, %v7679_v27  ;;  %v7688_v50 = vrot.slane %v6504_v3, %v10917_v1  ;;  %v6505_v11 = vadd.f32 %v10882_v24, %v6055_v41  ;;  %v5283_v47 = vmax.f32 %v4957_v10, 0.0 }
 0x38e   : > { %6267 = vadd.xlane.f32.xlu1 %v6266_v28  ;;  %6258 = vadd.xlane.f32.xlu0 %v6257_v35  ;;  %v6058_v18 = vpop.xlane.xlu0 %6057  ;;  %v4972_v49 = vadd.f32 %v12796_v39, %v9776_v34  ;;  %v5284_v3 = vmax.f32 %v4962_v25, 0.0  ;;  %vm13420_vm2 = vcmask 851712   ;;  %vm13421_vm15 = vcmask 917312  }
 0x38f   : > { %v4966_v8 = vpop.f32.mrf.mxu1  ;;  %v7689_v0 = vsel %vm6872_vm5, %v7688_v50, %v7684_v16  ;;  %v7693_v37 = vrot.slane %v6505_v11, %v10903_v51  ;;  %v6506_v40 = vadd.f32 %v10882_v24, %v6058_v18  ;;  %v5546_v62 = vmul.f32 %v12781_v61, %v5283_v47 }
 0x390   : > { %v6061_v30 = vpop.xlane.xlu1 %6060  ;;  %v4967_v14 = vadd.f32 %v12796_v39, %v4966_v8  ;;  %v5545_v11 = vmul.f32 %v12781_v61, %v5282_v4  ;;  %v5286_v18 = vmax.f32 %v4972_v49, 0.0  ;;  %vm13422_vm1 = vcmask 982912  }
 0x391   : > { %v9779_v53 = vpop.f32.mrf.mxu1  ;;  %v7694_v52 = vsel %vm6879_vm6, %v7693_v37, %v7689_v0  ;;  %v7698_v59 = vrot.slane %v6506_v40, %v13367_v13  ;;  %v6507_v55 = vadd.f32 %v10882_v24, %v6061_v30  ;;  %v5547_v40 = vmul.f32 %v12781_v61, %v5284_v3 }
 0x392   : > { %6273 = vadd.xlane.f32.xlu1 %v6272_v58  ;;  %6255 = vadd.xlane.f32.xlu0 %v6254_v9  ;;  %v6064_v7 = vpop.xlane.xlu0 %6063  ;;  %v5285_v43 = vmax.f32 %v4967_v14, 0.0  ;;  %v4982_v10 = vadd.f32 %v12796_v39, %v9779_v53  ;;  %v6260_v58 = vsel %vm2931_vm3, %v5540_v26, 0.0  ;;  %v6278_v30 = vsel %vm2931_vm3, %v5546_v62, 0.0 }
 0x393   : > { %v4976_v20 = vpop.f32.mrf.mxu1  ;;  %v7699_v46 = vsel %vm6886_vm7, %v7698_v59, %v7694_v52  ;;  %v7703_v15 = vrot.slane %v6507_v55, %v13386_v48  ;;  %v6508_v19 = vadd.f32 %v10882_v24, %v6064_v7  ;;  %v5549_v52 = vmul.f32 %v12781_v61, %v5286_v18 }
 0x394   : > { %v6067_v54 = vpop.xlane.xlu1 %6066  ;;  %v5548_v38 = vmul.f32 %v12781_v61, %v5285_v43  ;;  %v5288_v59 = vmax.f32 %v4982_v10, 0.0  ;;  %v4977_v55 = vadd.f32 %v12796_v39, %v4976_v20  ;;  %v6275_v47 = vsel %vm2931_vm3, %v5545_v11, 0.0 }
 0x395   : > { %v7704_v28 = vsel %vm6893_vm8, %v7703_v15, %v7699_v46  ;;  %v7708_v31 = vrot.slane %v6508_v19, %v13388_v45  ;;  %v6509_v27 = vadd.f32 %v10882_v24, %v6067_v54  ;;  %v9782_v12 = vpop.f32.mrf.mxu1  ;;  %v6281_v19 = vsel %vm2931_vm3, %v5547_v40, 0.0 }
 0x396   : > { %6264 = vadd.xlane.f32.xlu0 %v6263_v32  ;;  %v6070_v63 = vpop.xlane.xlu0 %6069  ;;  %v6284_v41 = vsel %vm2931_vm3, %v5548_v38, 0.0  ;;  %v5551_v38 = vmul.f32 %v12781_v61, %v5288_v59  ;;  %v5287_v32 = vmax.f32 %v4977_v55, 0.0 }
 0x397   : > { %v7709_v35 = vsel %vm6900_vm9, %v7708_v31, %v7704_v28  ;;  %v7713_v34 = vrot.slane %v6509_v27, %v13391_v2  ;;  %v6510_v16 = vadd.f32 %v10882_v24, %v6070_v63  ;;  %v4986_v50 = vpop.f32.mrf.mxu1  ;;  %6285 = vadd.xlane.f32.xlu1 %v6284_v41  ;;  %v4992_v28 = vadd.f32 %v12796_v39, %v9782_v12 }
 0x398   : > { %v6073_v8 = vpop.xlane.xlu1 %6072  ;;  %v6287_v27 = vsel %vm2931_vm3, %v5549_v52, 0.0  ;;  %v5550_v10 = vmul.f32 %v12781_v61, %v5287_v32 }
 0x399   : > { %v7714_v44 = vsel %vm6907_vm10, %v7713_v34, %v7709_v35  ;;  %v7718_v0 = vrot.slane %v6510_v16, %v13377_v23  ;;  %v6511_v37 = vadd.f32 %v10882_v24, %v6073_v8  ;;  %v9785_v21 = vpop.f32.mrf.mxu1  ;;  %v4987_v35 = vadd.f32 %v12796_v39, %v4986_v50 }
 0x39a   : > { %6261 = vadd.xlane.f32.xlu0 %v6260_v58  ;;  %v6076_v57 = vpop.xlane.xlu0 %6075  ;;  %v5290_v8 = vmax.f32 %v4992_v28, 0.0 }
 0x39b   : > { %v7719_v9 = vsel %vm6914_vm11, %v7718_v0, %v7714_v44  ;;  %v7723_v14 = vrot.slane %v6511_v37, %v11006_v60  ;;  %v6512_v53 = vadd.f32 %v10882_v24, %v6076_v57  ;;  %6279 = vadd.xlane.f32.xlu1 %v6278_v30  ;;  %v4996_v7 = vpop.f32.mrf.mxu1  ;;  %v6293_v44 = vsel %vm2931_vm3, %v5551_v38, 0.0 }
 0x39c   : > { %v6079_v25 = vpop.xlane.xlu1 %6078  ;;  %v5289_v57 = vmax.f32 %v4987_v35, 0.0  ;;  %v5002_v30 = vadd.f32 %v12796_v39, %v9785_v21  ;;  %v5553_v59 = vmul.f32 %v12781_v61, %v5290_v8  ;;  %v4997_v28 = vadd.f32 %v12796_v39, %v4996_v7 }
 0x39d   : > { %v7724_v43 = vsel %vm6921_vm12, %v7723_v14, %v7719_v9  ;;  %v7728_v26 = vrot.slane %v6512_v53, %v13380_v33  ;;  %v6513_v46 = vadd.f32 %v10882_v24, %v6079_v25  ;;  %v6290_v25 = vsel %vm2931_vm3, %v5550_v10, 0.0 }
 0x39e   : > { %6276 = vadd.xlane.f32.xlu0 %v6275_v47  ;;  %v6082_v15 = vpop.xlane.xlu0 %6081  ;;  %v5552_v21 = vmul.f32 %v12781_v61, %v5289_v57 }
 0x39f   : > { %v7729_v4 = vsel %vm6928_vm13, %v7728_v26, %v7724_v43  ;;  %v7733_v49 = vrot.slane %v6513_v46, %v13384_v42  ;;  %v6514_v20 = vadd.f32 %v10882_v24, %v6082_v15  ;;  %v12977_v54 = vpop.f32.mrf.mxu1  ;;  %6282 = vadd.xlane.f32.xlu1 %v6281_v19  ;;  %v5292_v46 = vmax.f32 %v5002_v30, 0.0 }
 0x3a0   : > { %v6085_v31 = vpop.xlane.xlu1 %6084 }
 0x3a1   : > { %v7734_v3 = vsel %vm6935_vm14, %v7733_v49, %v7729_v4  ;;  %v7738_v62 = vrot.slane %v6514_v20, %v11066_v17  ;;  %v6515_v63 = vadd.f32 %v10882_v24, %v6085_v31  ;;  %v12985_v41 = vpop.f32.mrf.mxu1 }
 0x3a2   : > { %6288 = vadd.xlane.f32.xlu0 %v6287_v27  ;;  %v6088_v34 = vpop.xlane.xlu0 %6087  ;;  %v6299_v27 = vsel %vm2931_vm3, %v5553_v59, 0.0 }
 0x3a3   : > { %v7739_v16 = vsel %vm13420_vm2, %v7738_v62, %v7734_v3  ;;  %v7743_v11 = vrot.slane %v6515_v63, %v13389_v6  ;;  %v6516_v12 = vadd.f32 %v10882_v24, %v6088_v34  ;;  %v12991_v18 = vpop.f32.mrf.mxu1  ;;  %vm13423_vm2 = vcmask 1048512  }
 0x3a5   : > { %v6091_v58 = vpop.xlane.xlu1 %6090  ;;  %v7744_v0 = vsel %vm13421_vm15, %v7743_v11, %v7739_v16  ;;  %v7748_v37 = vrot.slane %v6516_v12, %v13395_v56  ;;  %v12998_v40 = vpop.f32.mrf.mxu1  ;;  %vm13424_vm15 = vcmask 1042434   ;;  %v6296_v11 = vsel %vm2931_vm3, %v5552_v21, 0.0 }
 0x3a6   : > { %v6517_v50 = vadd.f32 %v10882_v24, %v6091_v58  ;;  %6294 = vadd.xlane.f32.xlu0 %v6293_v44  ;;  %v6094_v9 = vpop.xlane.xlu0 %6093  ;;  %v5555_v12 = vmul.f32 %v12781_v61, %v5292_v46  ;;  %v5291_v58 = vmax.f32 %v4997_v28, 0.0  ;;  %v5012_v44 = vadd.f32 %v12796_v39, %v12977_v54 }
 0x3a7   : > { %v7749_v14 = vsel %vm13422_vm1, %v7748_v37, %v7744_v0  ;;  %v6518_v52 = vadd.f32 %v10882_v24, %v6094_v9  ;;  %v5007_v21 = vadd.f32 %v12796_v39, %v12985_v41  ;;  %vm13425_vm1 = vcmask 851712  }
 0x3a8   : > { %v7753_v53 = vrot.slane %v6517_v50, %v13398_v22  ;;  %v13006_v47 = vpop.f32.mrf.mxu1 }
 0x3a9   : > { %v6097_v55 = vpop.xlane.xlu1 %6096  ;;  %v7758_v49 = vrot.slane %v6518_v52, %v13381_v5 }
 0x3aa   : > { %v7754_v43 = vsel %vm13423_vm2, %v7753_v53, %v7749_v14  ;;  %v6519_v26 = vadd.f32 %v10882_v24, %v6097_v55  ;;  %6291 = vadd.xlane.f32.xlu0 %v6290_v25  ;;  %v6100_v19 = vpop.xlane.xlu0 %6099  ;;  %v5026_v4 = vpop.f32.mrf.mxu1  ;;  %v6305_v25 = vsel %vm2931_vm3, %v5555_v12, 0.0  ;;  %vm13426_vm2 = vcmask 917312  }
 0x3ab   : > { %v13013_v15 = vsel %vm13424_vm15, %v7754_v43, %v12914_v36  ;;  %v6520_v38 = vadd.f32 %v10882_v24, %v6100_v19  ;;  %v5027_v32 = vadd.f32 %v12796_v39, %v5026_v4  ;;  %v5554_v43 = vmul.f32 %v12781_v61, %v5291_v58 }
 0x3ac   : > { %v7762_v20 = vrot.slane %v6519_v26, %v10888_v29  ;;  %v9797_v3 = vpop.f32.mrf.mxu1  ;;  %v5294_v26 = vmax.f32 %v5012_v44, 0.0  ;;  %vm13427_vm15 = vcmask 982912  }
 0x3ad   : > { %v6103_v31 = vpop.xlane.xlu1 %6102  ;;  %v7767_v36 = vrot.slane %v6520_v38, %v10917_v1  ;;  %v5297_v35 = vmax.f32 %v5027_v32, 0.0  ;;  %v5042_v16 = vadd.f32 %v12796_v39, %v9797_v3  ;;  %v5022_v3 = vadd.f32 %v12796_v39, %v12991_v18 }
 0x3ae   : > { %v7763_v62 = vsel %vm6865_vm4, %v7762_v20, %v7758_v49  ;;  %v6521_v63 = vadd.f32 %v10882_v24, %v6103_v31  ;;  %6300 = vadd.xlane.f32.xlu0 %v6299_v27  ;;  %v6106_v34 = vpop.xlane.xlu0 %6105  ;;  %v5557_v41 = vmul.f32 %v12781_v61, %v5294_v26  ;;  %v5293_v27 = vmax.f32 %v5007_v21, 0.0 }
 0x3af   : > { %v7768_v7 = vsel %vm6872_vm5, %v7767_v36, %v7763_v62  ;;  %v6522_v8 = vadd.f32 %v10882_v24, %v6106_v34  ;;  %v5560_v0 = vmul.f32 %v12781_v61, %v5297_v35  ;;  %v5300_v50 = vmax.f32 %v5042_v16, 0.0 }
 0x3b0   : > { %v7772_v10 = vrot.slane %v6521_v63, %v10903_v51  ;;  %v6302_v36 = vsel %vm2931_vm3, %v5554_v43, 0.0  ;;  %v5296_v18 = vmax.f32 %v5022_v3, 0.0  ;;  %v6311_v44 = vsel %vm2931_vm3, %v5557_v41, 0.0 }
 0x3b1   : > { %v6109_v37 = vpop.xlane.xlu1 %6108  ;;  %v7777_v30 = vrot.slane %v6522_v8, %v13367_v13  ;;  %v5563_v14 = vmul.f32 %v12781_v61, %v5300_v50  ;;  %v6320_v52 = vsel %vm2931_vm3, %v5560_v0, 0.0  ;;  %v5017_v8 = vadd.f32 %v12796_v39, %v12998_v40 }
 0x3b2   : > { %v7773_v57 = vsel %vm6879_vm6, %v7772_v10, %v7768_v7  ;;  %v6523_v9 = vadd.f32 %v10882_v24, %v6109_v37  ;;  %6297 = vadd.xlane.f32.xlu0 %v6296_v11  ;;  %v6112_v53 = vpop.xlane.xlu0 %6111  ;;  %6321 = vadd.xlane.f32.xlu1 %v6320_v52  ;;  %v5556_v10 = vmul.f32 %v12781_v61, %v5293_v27 }
 0x3b3   : > { %v7778_v59 = vsel %vm6886_vm7, %v7777_v30, %v7773_v57  ;;  %v6524_v55 = vadd.f32 %v10882_v24, %v6112_v53  ;;  %v6329_v19 = vsel %vm2931_vm3, %v5563_v14, 0.0  ;;  %v5559_v53 = vmul.f32 %v12781_v61, %v5296_v18 }
 0x3b4   : > { %v7782_v54 = vrot.slane %v6523_v9, %v13386_v48  ;;  %v5295_v40 = vmax.f32 %v5017_v8, 0.0  ;;  %v5032_v52 = vadd.f32 %v12796_v39, %v13006_v47 }
 0x3b5   : > { %v6115_v46 = vpop.xlane.xlu1 %6114  ;;  %v7787_v49 = vrot.slane %v6524_v55, %v13388_v45 }
 0x3b6   : > { %v7783_v4 = vsel %vm6893_vm8, %v7782_v54, %v7778_v59  ;;  %v6525_v20 = vadd.f32 %v10882_v24, %v6115_v46  ;;  %6306 = vadd.xlane.f32.xlu0 %v6305_v25  ;;  %v6118_v38 = vpop.xlane.xlu0 %6117  ;;  %6330 = vadd.xlane.f32.xlu1 %v6329_v19  ;;  %v6308_v54 = vsel %vm2931_vm3, %v5556_v10, 0.0  ;;  %v5036_v25 = vpop.f32.mrf.mxu1  ;;  %v5558_v47 = vmul.f32 %v12781_v61, %v5295_v40 }
 0x3b7   : > { %v7788_v32 = vsel %vm6900_vm9, %v7787_v49, %v7783_v4  ;;  %v6526_v31 = vadd.f32 %v10882_v24, %v6118_v38  ;;  %v5298_v49 = vmax.f32 %v5032_v52, 0.0 }
 0x3b8   : > { %v7792_v28 = vrot.slane %v6525_v20, %v13391_v2  ;;  %v5037_v20 = vadd.f32 %v12796_v39, %v5036_v25 }
 0x3b9   : > { %v6121_v62 = vpop.xlane.xlu1 %6120  ;;  %v7797_v35 = vrot.slane %v6526_v31, %v13377_v23 }
 0x3ba   : > { %v7793_v63 = vsel %vm6907_vm10, %v7792_v28, %v7788_v32  ;;  %v6527_v34 = vadd.f32 %v10882_v24, %v6121_v62  ;;  %6303 = vadd.xlane.f32.xlu0 %v6302_v36  ;;  %v6124_v16 = vpop.xlane.xlu0 %6123  ;;  %v6317_v32 = vsel %vm2931_vm3, %v5559_v53, 0.0  ;;  %v5299_v39 = vmax.f32 %v5037_v20, 0.0 }
 0x3bb   : > { %v7798_v11 = vsel %vm6914_vm11, %v7797_v35, %v7793_v63  ;;  %v6528_v7 = vadd.f32 %v10882_v24, %v6124_v16  ;;  %v5561_v63 = vmul.f32 %v12781_v61, %v5298_v49 }
 0x3bc   : > { %v7802_v12 = vrot.slane %v6527_v34, %v11006_v60  ;;  %v6314_v34 = vsel %vm2931_vm3, %v5558_v47, 0.0 }
 0x3bd   : > { %v6127_v58 = vpop.xlane.xlu1 %6126  ;;  %v7807_v37 = vrot.slane %v6528_v7, %v13380_v33 }
 0x3be   : > { %v7803_v0 = vsel %vm6921_vm12, %v7802_v12, %v7798_v11  ;;  %v6529_v50 = vadd.f32 %v10882_v24, %v6127_v58  ;;  %6312 = vadd.xlane.f32.xlu0 %v6311_v44  ;;  %v6130_v57 = vpop.xlane.xlu0 %6129  ;;  %v5562_v58 = vmul.f32 %v12781_v61, %v5299_v39 }
 0x3bf   : > { %v7808_v30 = vsel %vm6928_vm13, %v7807_v37, %v7803_v0  ;;  %v6530_v14 = vadd.f32 %v10882_v24, %v6130_v57  ;;  %v6323_v0 = vsel %vm2931_vm3, %v5561_v63, 0.0 }
 0x3c0   : > { %v7812_v9 = vrot.slane %v6529_v50, %v13384_v42  ;;  %v6326_v61 = vsel %vm2931_vm3, %v5562_v58, 0.0  ;;  %vm13430_vm3 = vcmask 851712  }
 0x3c1   : > { %v6133_v59 = vpop.xlane.xlu1 %6132  ;;  %v7817_v43 = vrot.slane %v6530_v14, %v11066_v17 }
 0x3c2   : > { %v7813_v55 = vsel %vm6935_vm14, %v7812_v9, %v7808_v30  ;;  %v6531_v26 = vadd.f32 %v10882_v24, %v6133_v59  ;;  %6309 = vadd.xlane.f32.xlu0 %v6308_v54  ;;  %v6136_v21 = vpop.xlane.xlu0 %6135 }
 0x3c3   : > { %v7818_v46 = vsel %vm13425_vm1, %v7817_v43, %v7813_v55  ;;  %v6532_v4 = vadd.f32 %v10882_v24, %v6136_v21  ;;  %vm13428_vm1 = vcmask 1048512  }
 0x3c4   : > { %v7822_v19 = vrot.slane %v6531_v26, %v13389_v6 }
 0x3c5   : > { %v6139_v38 = vpop.xlane.xlu1 %6138  ;;  %v7827_v31 = vrot.slane %v6532_v4, %v13395_v56 }
 0x3c6   : > { %v7823_v28 = vsel %vm13426_vm2, %v7822_v19, %v7818_v46  ;;  %v6533_v41 = vadd.f32 %v10882_v24, %v6139_v38  ;;  %6318 = vadd.xlane.f32.xlu0 %v6317_v32  ;;  %v6142_v27 = vpop.xlane.xlu0 %6141  ;;  %vm13429_vm2 = vcmask 1043459  }
 0x3c7   : > { %v7828_v3 = vsel %vm13427_vm15, %v7827_v31, %v7823_v28  ;;  %v6534_v36 = vadd.f32 %v10882_v24, %v6142_v27  ;;  %vm13431_vm15 = vcmask 917312  }
 0x3c8   : > { %v7832_v62 = vrot.slane %v6533_v41, %v13398_v22 }
 0x3c9   : > { %v6145_v35 = vpop.xlane.xlu1 %6144  ;;  %v7837_v10 = vrot.slane %v6534_v36, %v13381_v5 }
 0x3ca   : > { %v7833_v16 = vsel %vm13428_vm1, %v7832_v62, %v7828_v3  ;;  %v6535_v11 = vadd.f32 %v10882_v24, %v6145_v35  ;;  %6315 = vadd.xlane.f32.xlu0 %v6314_v34  ;;  %v6148_v7 = vpop.xlane.xlu0 %6147  ;;  %vm13432_vm1 = vcmask 982912  }
 0x3cb   : > { %v13097_v12 = vsel %vm13429_vm2, %v7833_v16, %v13013_v15  ;;  %v6536_v8 = vadd.f32 %v10882_v24, %v6148_v7  ;;  %vm13433_vm2 = vcmask 1048512  }
 0x3cc   : > { %v7841_v18 = vrot.slane %v6535_v11, %v10888_v29 }
 0x3cd   : > { %v6151_v44 = vpop.xlane.xlu1 %6150  ;;  %v7846_v50 = vrot.slane %v6536_v8, %v10917_v1 }
 0x3ce   : > { %v7842_v37 = vsel %vm6865_vm4, %v7841_v18, %v7837_v10  ;;  %v6537_v57 = vadd.f32 %v10882_v24, %v6151_v44  ;;  %6324 = vadd.xlane.f32.xlu0 %v6323_v0 }
 0x3cf   : > { %v6154_v15 = vpop.xlane.xlu0 %6153  ;;  %v7847_v30 = vsel %vm6872_vm5, %v7846_v50, %v7842_v37 }
 0x3d0   : > { %v7851_v9 = vrot.slane %v6537_v57, %v10903_v51  ;;  %v6538_v14 = vadd.f32 %v10882_v24, %v6154_v15 }
 0x3d2   : > { %v7852_v40 = vsel %vm6879_vm6, %v7851_v9, %v7847_v30  ;;  %v7856_v52 = vrot.slane %v6538_v14, %v13367_v13  ;;  %6327 = vadd.xlane.f32.xlu0 %v6326_v61 }
 0x3d3   : > { %v6157_v53 = vpop.xlane.xlu1 %6156  ;;  %v6160_v54 = vpop.xlane.xlu0 %6159 }
 0x3d4   : > { %v6539_v59 = vadd.f32 %v10882_v24, %v6157_v53  ;;  %v7857_v55 = vsel %vm6886_vm7, %v7856_v52, %v7852_v40  ;;  %v6540_v43 = vadd.f32 %v10882_v24, %v6160_v54 }
 0x3d6   : > { %v7861_v25 = vrot.slane %v6539_v59, %v13386_v48  ;;  %v7866_v46 = vrot.slane %v6540_v43, %v13388_v45 }
 0x3d7   : > { %v6163_v26 = vpop.xlane.xlu1 %6162  ;;  %v6166_v4 = vpop.xlane.xlu0 %6165 }
 0x3d8   : > { %v7862_v21 = vsel %vm6893_vm8, %v7861_v25, %v7857_v55  ;;  %v6541_v19 = vadd.f32 %v10882_v24, %v6163_v26  ;;  %v6542_v20 = vadd.f32 %v10882_v24, %v6166_v4 }
 0x3d9   : > { %v7867_v47 = vsel %vm6900_vm9, %v7866_v46, %v7862_v21 }
 0x3da   : > { %v7871_v49 = vrot.slane %v6541_v19, %v13391_v2  ;;  %v7876_v28 = vrot.slane %v6542_v20, %v13377_v23 }
 0x3db   : > { %v6169_v38 = vpop.xlane.xlu1 %6168  ;;  %v6172_v41 = vpop.xlane.xlu0 %6171 }
 0x3dc   : > { %v7872_v32 = vsel %vm6907_vm10, %v7871_v49, %v7867_v47  ;;  %v6543_v31 = vadd.f32 %v10882_v24, %v6169_v38  ;;  %v6544_v62 = vadd.f32 %v10882_v24, %v6172_v41 }
 0x3dd   : > { %v7877_v27 = vsel %vm6914_vm11, %v7876_v28, %v7872_v32 }
 0x3de   : > { %v7881_v3 = vrot.slane %v6543_v31, %v11006_v60  ;;  %v7886_v39 = vrot.slane %v6544_v62, %v13380_v33 }
 0x3df   : > { %v6175_v36 = vpop.xlane.xlu1 %6174  ;;  %v6178_v34 = vpop.xlane.xlu0 %6177 }
 0x3e0   : > { %v7882_v63 = vsel %vm6921_vm12, %v7881_v3, %v7877_v27  ;;  %v6545_v35 = vadd.f32 %v10882_v24, %v6175_v36  ;;  %v6546_v7 = vadd.f32 %v10882_v24, %v6178_v34 }
 0x3e1   : > { %v7887_v16 = vsel %vm6928_vm13, %v7886_v39, %v7882_v63 }
 0x3e2   : > { %v7891_v11 = vrot.slane %v6545_v35, %v13384_v42  ;;  %v7896_v8 = vrot.slane %v6546_v7, %v11066_v17 }
 0x3e3   : > { %v6181_v10 = vpop.xlane.xlu1 %6180  ;;  %v6184_v44 = vpop.xlane.xlu0 %6183 }
 0x3e4   : > { %v7892_v18 = vsel %vm6935_vm14, %v7891_v11, %v7887_v16  ;;  %v6547_v58 = vadd.f32 %v10882_v24, %v6181_v10  ;;  %v6548_v50 = vadd.f32 %v10882_v24, %v6184_v44 }
 0x3e5   : > { %v7897_v0 = vsel %vm13430_vm3, %v7896_v8, %v7892_v18  ;;  %vm13434_vm3 = vcmask 1044484  }
 0x3e6   : > { %v7901_v37 = vrot.slane %v6547_v58, %v13389_v6  ;;  %v7906_v30 = vrot.slane %v6548_v50, %v13395_v56 }
 0x3e7   : > { %v6187_v57 = vpop.xlane.xlu1 %6186  ;;  %v6190_v14 = vpop.xlane.xlu0 %6189 }
 0x3e8   : > { %v7902_v15 = vsel %vm13431_vm15, %v7901_v37, %v7897_v0  ;;  %v6549_v9 = vadd.f32 %v10882_v24, %v6187_v57  ;;  %v6550_v40 = vadd.f32 %v10882_v24, %v6190_v14  ;;  %vm13435_vm15 = vcmask 851712  }
 0x3e9   : > { %v7907_v53 = vsel %vm13432_vm1, %v7906_v30, %v7902_v15  ;;  %vm13436_vm1 = vcmask 917312  }
 0x3ea   : > { %v7911_v61 = vrot.slane %v6549_v9, %v13398_v22  ;;  %v7916_v43 = vrot.slane %v6550_v40, %v13381_v5 }
 0x3eb   : > { %v6193_v52 = vpop.xlane.xlu1 %6192  ;;  %v6196_v25 = vpop.xlane.xlu0 %6195 }
 0x3ec   : > { %v7912_v59 = vsel %vm13433_vm2, %v7911_v61, %v7907_v53  ;;  %v6551_v54 = vadd.f32 %v10882_v24, %v6193_v52  ;;  %v6552_v21 = vadd.f32 %v10882_v24, %v6196_v25  ;;  %vm13437_vm2 = vcmask 982912  }
 0x3ed   : > { %v13151_v55 = vsel %vm13434_vm3, %v7912_v59, %v13097_v12  ;;  %vm13438_vm3 = vcmask 1048512  }
 0x3ee   : > { %v7920_v26 = vrot.slane %v6551_v54, %v10888_v29  ;;  %v7925_v4 = vrot.slane %v6552_v21, %v10917_v1 }
 0x3ef   : > { %v6199_v46 = vpop.xlane.xlu1 %6198  ;;  %v6202_v49 = vpop.xlane.xlu0 %6201 }
 0x3f0   : > { %v7921_v19 = vsel %vm6865_vm4, %v7920_v26, %v7916_v43  ;;  %v6553_v47 = vadd.f32 %v10882_v24, %v6199_v46  ;;  %v6554_v38 = vadd.f32 %v10882_v24, %v6202_v49 }
 0x3f1   : > { %v7926_v20 = vsel %vm6872_vm5, %v7925_v4, %v7921_v19 }
 0x3f2   : > { %v7930_v12 = vrot.slane %v6553_v47, %v10903_v51  ;;  %v7935_v31 = vrot.slane %v6554_v38, %v13367_v13 }
 0x3f3   : > { %v6205_v32 = vpop.xlane.xlu1 %6204  ;;  %v6208_v27 = vpop.xlane.xlu0 %6207 }
 0x3f4   : > { %v7931_v28 = vsel %vm6879_vm6, %v7930_v12, %v7926_v20  ;;  %v6555_v41 = vadd.f32 %v10882_v24, %v6205_v32  ;;  %v6556_v36 = vadd.f32 %v10882_v24, %v6208_v27 }
 0x3f5   : > { %v7936_v3 = vsel %vm6886_vm7, %v7935_v31, %v7931_v28 }
 0x3f6   : > { %v7940_v62 = vrot.slane %v6555_v41, %v13386_v48  ;;  %v7945_v35 = vrot.slane %v6556_v36, %v13388_v45 }
 0x3f7   : > { %v6211_v63 = vpop.xlane.xlu1 %6210  ;;  %v6214_v16 = vpop.xlane.xlu0 %6213 }
 0x3f8   : > { %v7941_v39 = vsel %vm6893_vm8, %v7940_v62, %v7936_v3  ;;  %v6557_v34 = vadd.f32 %v10882_v24, %v6211_v63  ;;  %v6558_v10 = vadd.f32 %v10882_v24, %v6214_v16 }
 0x3f9   : > { %v7946_v11 = vsel %vm6900_vm9, %v7945_v35, %v7941_v39 }
 0x3fa   : > { %v7950_v7 = vrot.slane %v6557_v34, %v13391_v2  ;;  %v7955_v58 = vrot.slane %v6558_v10, %v13377_v23 }
 0x3fb   : > { %v6217_v18 = vpop.xlane.xlu1 %6216  ;;  %v6220_v0 = vpop.xlane.xlu0 %6219 }
 0x3fc   : > { %v7951_v8 = vsel %vm6907_vm10, %v7950_v7, %v7946_v11  ;;  %v6559_v44 = vadd.f32 %v10882_v24, %v6217_v18  ;;  %v6560_v57 = vadd.f32 %v10882_v24, %v6220_v0 }
 0x3fd   : > { %v7956_v37 = vsel %vm6914_vm11, %v7955_v58, %v7951_v8 }
 0x3fe   : > { %v7960_v50 = vrot.slane %v6559_v44, %v11006_v60  ;;  %v7965_v9 = vrot.slane %v6560_v57, %v13380_v33 }
 0x3ff   : > { %v6223_v15 = vpop.xlane.xlu1 %6222  ;;  %v6226_v53 = vpop.xlane.xlu0 %6225 }
 0x400   : > { %v7961_v30 = vsel %vm6921_vm12, %v7960_v50, %v7956_v37  ;;  %v6561_v14 = vadd.f32 %v10882_v24, %v6223_v15  ;;  %v6562_v52 = vadd.f32 %v10882_v24, %v6226_v53 }
 0x401   : > { %v7966_v61 = vsel %vm6928_vm13, %v7965_v9, %v7961_v30 }
 0x402   : > { %v7970_v40 = vrot.slane %v6561_v14, %v13384_v42  ;;  %v7975_v25 = vrot.slane %v6562_v52, %v11066_v17 }
 0x403   : > { %v6229_v59 = vpop.xlane.xlu1 %6228  ;;  %v6235_v26 = vpop.xlane.xlu0 %6234 }
 0x404   : > { %v7971_v54 = vsel %vm6935_vm14, %v7970_v40, %v7966_v61  ;;  %v6563_v43 = vadd.f32 %v10882_v24, %v6229_v59  ;;  %v6565_v19 = vadd.f32 %v10882_v24, %v6235_v26 }
 0x405   : > { %v7976_v21 = vsel %vm13435_vm15, %v7975_v25, %v7971_v54  ;;  %vm13439_vm15 = vcmask 1045509  }
 0x406   : > { %v7980_v46 = vrot.slane %v6563_v43, %v13389_v6  ;;  %v7990_v38 = vrot.slane %v6565_v19, %v13398_v22 }
 0x407   : > { %v6232_v4 = vpop.xlane.xlu1 %6231  ;;  %v6238_v49 = vpop.xlane.xlu0 %6237 }
 0x408   : > { %v6564_v47 = vadd.f32 %v10882_v24, %v6232_v4  ;;  %v7981_v12 = vsel %vm13436_vm1, %v7980_v46, %v7976_v21  ;;  %v6566_v62 = vadd.f32 %v10882_v24, %v6238_v49  ;;  %vm13440_vm1 = vcmask 851712  }
 0x40a   : > { %v7985_v20 = vrot.slane %v6564_v47, %v13395_v56  ;;  %v7995_v16 = vrot.slane %v6566_v62, %v13381_v5 }
 0x40b   : > { %v6241_v32 = vpop.xlane.xlu1 %6240  ;;  %v6247_v27 = vpop.xlane.xlu0 %6246 }
 0x40c   : > { %v7986_v28 = vsel %vm13437_vm2, %v7985_v20, %v7981_v12  ;;  %v6567_v41 = vadd.f32 %v10882_v24, %v6241_v32  ;;  %v6569_v39 = vadd.f32 %v10882_v24, %v6247_v27  ;;  %vm13441_vm2 = vcmask 917312  }
 0x40d   : > { %v7991_v31 = vsel %vm13438_vm3, %v7990_v38, %v7986_v28  ;;  %vm13442_vm3 = vcmask 982912  }
 0x40e   : > { %v13201_v3 = vsel %vm13439_vm15, %v7991_v31, %v13151_v55  ;;  %v7999_v63 = vrot.slane %v6567_v41, %v10888_v29  ;;  %v8009_v55 = vrot.slane %v6569_v39, %v10903_v51  ;;  %vm13443_vm15 = vcmask 1048512  }
 0x40f   : > { %v6253_v36 = vpop.xlane.xlu1 %6252  ;;  %v6244_v35 = vpop.xlane.xlu0 %6243 }
 0x410   : > { %v6568_v34 = vadd.f32 %v10882_v24, %v6244_v35  ;;  %v8000_v10 = vsel %vm6865_vm4, %v7999_v63, %v7995_v16  ;;  %v6571_v30 = vadd.f32 %v10882_v24, %v6253_v36 }
 0x412   : > { %v8004_v7 = vrot.slane %v6568_v34, %v10917_v1  ;;  %v8019_v40 = vrot.slane %v6571_v30, %v13386_v48 }
 0x413   : > { %v6271_v11 = vpop.xlane.xlu1 %6270  ;;  %v6250_v18 = vpop.xlane.xlu0 %6249 }
 0x414   : > { %v8005_v8 = vsel %vm6872_vm5, %v8004_v7, %v8000_v10  ;;  %v6570_v37 = vadd.f32 %v10882_v24, %v6250_v18  ;;  %v6577_v4 = vadd.f32 %v10882_v24, %v6271_v11 }
 0x415   : > { %v8010_v58 = vsel %vm6879_vm6, %v8009_v55, %v8005_v8 }
 0x416   : > { %v8014_v57 = vrot.slane %v6570_v37, %v13367_v13  ;;  %v8049_v62 = vrot.slane %v6577_v4, %v13384_v42 }
 0x417   : > { %v6259_v44 = vpop.xlane.xlu0 %6258  ;;  %v6268_v0 = vpop.xlane.xlu1 %6267 }
 0x418   : > { %v8015_v53 = vsel %vm6886_vm7, %v8014_v57, %v8010_v58  ;;  %v6573_v52 = vadd.f32 %v10882_v24, %v6259_v44  ;;  %v6576_v21 = vadd.f32 %v10882_v24, %v6268_v0 }
 0x419   : > { %v8020_v54 = vsel %vm6893_vm8, %v8019_v40, %v8015_v53 }
 0x41a   : > { %v8029_v19 = vrot.slane %v6573_v52, %v13391_v2  ;;  %v8044_v31 = vrot.slane %v6576_v21, %v13380_v33 }
 0x41b   : > { %v6256_v50 = vpop.xlane.xlu0 %6255  ;;  %v6274_v9 = vpop.xlane.xlu1 %6273 }
 0x41c   : > { %v6572_v15 = vadd.f32 %v10882_v24, %v6256_v50  ;;  %v6578_v47 = vadd.f32 %v10882_v24, %v6274_v9 }
 0x41e   : > { %v8024_v61 = vrot.slane %v6572_v15, %v13388_v45  ;;  %v8054_v36 = vrot.slane %v6578_v47, %v11066_v17 }
 0x41f   : > { %v6265_v14 = vpop.xlane.xlu0 %6264 }
 0x420   : > { %v6286_v59 = vpop.xlane.xlu1 %6285  ;;  %v6575_v25 = vadd.f32 %v10882_v24, %v6265_v14  ;;  %v8025_v26 = vsel %vm6900_vm9, %v8024_v61, %v8020_v54 }
 0x421   : > { %v8030_v32 = vsel %vm6907_vm10, %v8029_v19, %v8025_v26  ;;  %v6582_v53 = vadd.f32 %v10882_v24, %v6286_v59 }
 0x422   : > { %v8039_v38 = vrot.slane %v6575_v25, %v11006_v60 }
 0x423   : > { %v6262_v43 = vpop.xlane.xlu0 %6261  ;;  %v8074_v25 = vrot.slane %v6582_v53, %v13381_v5 }
 0x424   : > { %v6574_v46 = vadd.f32 %v10882_v24, %v6262_v43  ;;  %v6280_v49 = vpop.xlane.xlu1 %6279 }
 0x425   : > { %v6580_v12 = vadd.f32 %v10882_v24, %v6280_v49 }
 0x426   : > { %v8034_v20 = vrot.slane %v6574_v46, %v13377_v23 }
 0x427   : > { %v6277_v28 = vpop.xlane.xlu0 %6276  ;;  %v8064_v16 = vrot.slane %v6580_v12, %v13395_v56 }
 0x428   : > { %v8035_v41 = vsel %vm6914_vm11, %v8034_v20, %v8030_v32  ;;  %v6579_v27 = vadd.f32 %v10882_v24, %v6277_v28  ;;  %v6283_v39 = vpop.xlane.xlu1 %6282 }
 0x429   : > { %v8040_v63 = vsel %vm6921_vm12, %v8039_v38, %v8035_v41  ;;  %v6581_v11 = vadd.f32 %v10882_v24, %v6283_v39 }
 0x42a   : > { %v8045_v35 = vsel %vm6928_vm13, %v8044_v31, %v8040_v63  ;;  %v8059_v34 = vrot.slane %v6579_v27, %v13389_v6 }
 0x42b   : > { %v8050_v7 = vsel %vm6935_vm14, %v8049_v62, %v8045_v35  ;;  %v6289_v10 = vpop.xlane.xlu0 %6288  ;;  %v8069_v18 = vrot.slane %v6581_v11, %v13398_v22 }
 0x42c   : > { %v8055_v55 = vsel %vm13440_vm1, %v8054_v36, %v8050_v7  ;;  %v6583_v30 = vadd.f32 %v10882_v24, %v6289_v10 }
 0x42d   : > { %v8060_v8 = vsel %vm13441_vm2, %v8059_v34, %v8055_v55 }
 0x42e   : > { %v8065_v58 = vsel %vm13442_vm3, %v8064_v16, %v8060_v8  ;;  %v8078_v61 = vrot.slane %v6583_v30, %v10888_v29 }
 0x42f   : > { %v8070_v44 = vsel %vm13443_vm15, %v8069_v18, %v8065_v58  ;;  %v6295_v0 = vpop.xlane.xlu0 %6294 }
 0x430   : > { %v8169_v37 = vsel %vm8160_vm0, %v8070_v44, %v13201_v3  ;;  %v6585_v3 = vadd.f32 %v10882_v24, %v6295_v0  ;;  %v8079_v43 = vsel %vm6865_vm4, %v8078_v61, %v8074_v25  ;;  %vm13444_vm4 = vmmov %vm13440_vm1 }
 0x432   : > { %v8088_v29 = vrot.slane %v6585_v3, %v10903_v51 }
 0x433   : > { %v6292_v50 = vpop.xlane.xlu0 %6291 }
 0x434   : > { %v6584_v14 = vadd.f32 %v10882_v24, %v6292_v50 }
 0x436   : > { %v8083_v52 = vrot.slane %v6584_v14, %v10917_v1 }
 0x437   : > { %v6301_v57 = vpop.xlane.xlu0 %6300 }
 0x438   : > { %v8084_v21 = vsel %vm6872_vm5, %v8083_v52, %v8079_v43  ;;  %v6587_v19 = vadd.f32 %v10882_v24, %v6301_v57  ;;  %vm13445_vm5 = vmmov %vm13441_vm2 }
 0x439   : > { %v8089_v1 = vsel %vm6879_vm6, %v8088_v29, %v8084_v21  ;;  %vm13446_vm6 = vmmov %vm13442_vm3 }
 0x43a   : > { %v8098_v20 = vrot.slane %v6587_v19, %v13386_v48 }
 0x43b   : > { %v6298_v15 = vpop.xlane.xlu0 %6297  ;;  %v6322_v41 = vpop.xlane.xlu1 %6321 }
 0x43c   : > { %v6586_v54 = vadd.f32 %v10882_v24, %v6298_v15  ;;  %v6594_v39 = vadd.f32 %v10882_v24, %v6322_v41 }
 0x43e   : > { %v8093_v46 = vrot.slane %v6586_v54, %v13367_v13  ;;  %v8133_v55 = vrot.slane %v6594_v39, %v11066_v17 }
 0x43f   : > { %v6307_v9 = vpop.xlane.xlu0 %6306  ;;  %v6331_v16 = vpop.xlane.xlu1 %6330 }
 0x440   : > { %v8094_v5 = vsel %vm6886_vm7, %v8093_v46, %v8089_v1  ;;  %v6589_v12 = vadd.f32 %v10882_v24, %v6307_v9  ;;  %vm13447_vm7 = vmmov %vm13443_vm15 }
 0x441   : > { %v8099_v13 = vsel %vm6893_vm8, %v8098_v20, %v8094_v5  ;;  %vm13448_vm8 = vcmask 1047559  }
 0x442   : > { %v8108_v28 = vrot.slane %v6589_v12, %v13391_v2 }
 0x443   : > { %v6304_v40 = vpop.xlane.xlu0 %6303 }
 0x444   : > { %v6588_v59 = vadd.f32 %v10882_v24, %v6304_v40 }
 0x446   : > { %v8103_v47 = vrot.slane %v6588_v59, %v13388_v45 }
 0x447   : > { %v6313_v26 = vpop.xlane.xlu0 %6312 }
 0x448   : > { %v8104_v51 = vsel %vm6900_vm9, %v8103_v47, %v8099_v13  ;;  %v6591_v31 = vadd.f32 %v10882_v24, %v6313_v26 }
 0x449   : > { %v8109_v45 = vsel %vm6907_vm10, %v8108_v28, %v8104_v51 }
 0x44a   : > { %v8118_v63 = vrot.slane %v6591_v31, %v11006_v60  ;;  %v6597_v60 = vadd.f32 %v10882_v24, %v6331_v16 }
 0x44b   : > { %v6310_v4 = vpop.xlane.xlu0 %6309 }
 0x44c   : > { %v6590_v49 = vadd.f32 %v10882_v24, %v6310_v4  ;;  %v8148_v44 = vrot.slane %v6597_v60, %v13398_v22 }
 0x44e   : > { %v8113_v32 = vrot.slane %v6590_v49, %v13377_v23 }
 0x44f   : > { %v6319_v38 = vpop.xlane.xlu0 %6318 }
 0x450   : > { %v6593_v27 = vadd.f32 %v10882_v24, %v6319_v38  ;;  %v8114_v48 = vsel %vm6914_vm11, %v8113_v32, %v8109_v45 }
 0x451   : > { %v8119_v35 = vsel %vm6921_vm12, %v8118_v63, %v8114_v48 }
 0x452   : > { %v8128_v2 = vrot.slane %v6593_v27, %v13384_v42 }
 0x453   : > { %v6316_v62 = vpop.xlane.xlu0 %6315 }
 0x454   : > { %v6592_v36 = vadd.f32 %v10882_v24, %v6316_v62 }
 0x456   : > { %v8123_v23 = vrot.slane %v6592_v36, %v13380_v33 }
 0x457   : > { %v6325_v34 = vpop.xlane.xlu0 %6324 }
 0x458   : > { %v8124_v11 = vsel %vm6928_vm13, %v8123_v23, %v8119_v35  ;;  %v6595_v7 = vadd.f32 %v10882_v24, %v6325_v34 }
 0x459   : > { %v8129_v10 = vsel %vm6935_vm14, %v8128_v2, %v8124_v11 }
 0x45a   : > { %v8138_v18 = vrot.slane %v6595_v7, %v13389_v6  ;;  %v8134_v42 = vsel %vm13444_vm4, %v8133_v55, %v8129_v10 }
 0x45b   : > { %v6328_v33 = vpop.xlane.xlu0 %6327 }
 0x45c   : > { %v6596_v8 = vadd.f32 %v10882_v24, %v6328_v33  ;;  %v8139_v0 = vsel %vm13445_vm5, %v8138_v18, %v8134_v42 }
 0x45e   : > { %v8143_v58 = vrot.slane %v6596_v8, %v13395_v56 }
 0x460   : > { %v8144_v50 = vsel %vm13446_vm6, %v8143_v58, %v8139_v0 }
 0x461   : > { %v8149_v57 = vsel %vm13447_vm7, %v8148_v44, %v8144_v50 }
 0x462   : > { %v8170_v17 = vsel %vm13448_vm8, %v8149_v57, %v8169_v37 }
 0x463   : > { %8174 = vst [vmem:[%s12686_s8 + $0x8] sm:$0xff] %v8170_v17 }
 0x464 PF: > { %s19_s26 = sadd.s32 1, %s9959_s26  }
 0x465   : > { %p16_p5 = scmp.ge.s32.totalorder %s19_s26, 4  }
 0x467   :  { %18 = sbr.rel (!%p16_p5) target bundleno = 3 (0x3), region = 78 }

</bundles_post_ra>
